<compile_context>
chip_gen: v7x
topology: tpu7x:2x2x1
jax: 0.10.0
libtpu: 0.0.40
codegen_flags: <defaults>
</compile_context>

<pallas_src>
import functools

import numpy as np
import jax
import jax.numpy as jnp
from jax import lax
from jax.experimental import pallas as pl
from jax.experimental.pallas import tpu as pltpu

NEG = -1e30          # additive mask for keys outside the clamped neighbourhood (f32 score path)
EPS = 1e-12          # F.normalize eps


# ---------------------------------------------------------------------------------------------
# Fused kernel: one grid step = one (batch, frame).
# ---------------------------------------------------------------------------------------------
def _na_frame_kernel(xp_ref, gp_ref, cbt_ref, wqkv_ref, bqkv_ref, wpt_ref, bpt_ref,
                     o_ref, qkv_s, *,
                     C, H, W, HW, R, KH, TQR, TQ, KR, KB, NQT, LOG2W):
    # Everything below works in the "punned" row basis (the `.view(b*t, h, w, c)` byte pun):
    # punned row s = a*R + b2 holds original channel a at original positions [b2*C, (b2+1)*C).

    # ---------------- RMS norm over original channels (strided groups in punned layout) -------
    xp = xp_ref[...]                                      # (HW, C) f32, one frame
    x3 = xp.reshape(C, R, C)                              # leading-dim regroup only (no lane move)
    ss = jnp.sum(x3 * x3, axis=0, keepdims=True)          # (1, R, C): per original spatial pos
    inv = lax.rsqrt(jnp.maximum(ss, EPS * EPS))           # EUP rsqrt == 1 / max(||x||, eps)
    xn = (x3 * inv).reshape(HW, C) * gp_ref[...]          # gamma_p already holds sqrt(C) * gamma

    # ---------------- packed QKV projection for the whole frame (one MXU matmul) --------------
    qkv = jnp.dot(xn.astype(jnp.bfloat16), wqkv_ref[...],
                  preferred_element_type=jnp.float32) + bqkv_ref[...]          # (HW, 3C) f32
    qkv_s[...] = qkv.astype(jnp.bfloat16)                 # VMEM scratch for banded slicing

    # ---------------- banded neighbourhood attention over query row tiles ---------------------
    def tile_body(qi, carry):
        qr0 = qi * TQR                                     # first query image row of this tile
        band0 = jnp.clip(qr0 - KH // 2, 0, H - KR)         # first image row of the key band
        q_off = pl.multiple_of(qi * TQ, TQ)                # punned row offset of the query tile
        b_off = pl.multiple_of(band0 * W, W)               # punned row offset of the key band

        q = qkv_s[pl.ds(q_off, TQ), 0:C]                   # (TQ, C) bf16 (q-scale folded in)
        k = qkv_s[pl.ds(b_off, KB), C:2 * C]               # (KB, C) bf16
        v = qkv_s[pl.ds(b_off, KB), 2 * C:3 * C]           # (KB, C) bf16

        # window mask + relative positional bias, built on the fly (rows) x precomputed (cols)
        lq = lax.broadcasted_iota(jnp.int32, (TQ, KB), 0)
        lk = lax.broadcasted_iota(jnp.int32, (TQ, KB), 1)
        i_q = qr0 + (lq >> LOG2W)                          # query image row
        i_k = band0 + (lk >> LOG2W)                        # key image row
        ni = jnp.clip(i_q - KH // 2, 0, H - KH)            # natten clamped window start row
        row_valid = (i_k >= ni) & (i_k < ni + KH)
        rel_i = i_k - i_q + (KH - 1)
        acc = jnp.zeros((TQ, KB), jnp.float32)
        for a in range(2 * KH - 1):                        # tiny static loop (5 for k=3)
            acc = acc + jnp.where(rel_i == a, cbt_ref[a], 0.0)
        bias = jnp.where(row_valid, acc, NEG)              # f32 only; never lower to bf16

        s = lax.dot_general(q, k, (((1,), (1,)), ((), ())),
                            preferred_element_type=jnp.float32) + bias          # (TQ, KB) f32
        m = jnp.max(s, axis=-1, keepdims=True)
        e = jnp.exp(s - m)
        p = (e * pl.reciprocal(jnp.sum(e, axis=-1, keepdims=True), approx=True)
             ).astype(jnp.bfloat16)

        # transposed epilogue -> per-frame output block (C, HW) is lane-dense
        out_t = lax.dot_general(v, p, (((0,), (1,)), ((), ())),
                                preferred_element_type=jnp.float32)             # (C, TQ)
        y_t = lax.dot_general(wpt_ref[...], out_t.astype(jnp.bfloat16),
                              (((1,), (0,)), ((), ())),
                              preferred_element_type=jnp.float32) + bpt_ref[...]
        o_ref[:, pl.ds(q_off, TQ)] = y_t
        return carry

    lax.fori_loop(0, NQT, tile_body, 0)


# ---------------------------------------------------------------------------------------------
# Wrapper
# ---------------------------------------------------------------------------------------------
@jax.jit
def spatial_na_block(x, gamma_p, cbt, wqkv, bqkv, wp_t, bp_t):
    """x: (b, c, t, h, w) f32.  gamma_p: (h*w, 1) f32 (sqrt(c)*gamma expanded to punned rows).
    cbt: (2kh-1, TQ, KB) f32 column bias/mask table.  wqkv: (c, 3c) bf16 (q-scale folded in),
    bqkv: (1, 3c) f32, wp_t: (c, c) bf16 (= Wp^T), bp_t: (c, 1) f32."""
    b, c, t, h, w = x.shape
    hw = h * w
    assert hw % c == 0, "pun block decomposition assumes h*w is a multiple of c"
    r = hw // c
    kh2m1, tq, kb = cbt.shape
    kh = (kh2m1 + 1) // 2
    tqr, kr = tq // w, kb // w
    nqt = h // tqr
    log2w = int(w).bit_length() - 1
    assert (1 << log2w) == w, "kernel assumes power-of-two image width"
    assert nqt * tqr == h and nqt * tq == hw

    # the `.view(b*t, h, w, c)` pun, hoisted to one XLA transpose + raw reshape
    xp = jnp.transpose(x, (0, 2, 1, 3, 4)).reshape(b, t, hw, c)

    kern = functools.partial(_na_frame_kernel, C=c, H=h, W=w, HW=hw, R=r, KH=kh,
                             TQR=tqr, TQ=tq, KR=kr, KB=kb, NQT=nqt, LOG2W=log2w)

    block_bytes = (hw * c * 4 + hw * 4 + kh2m1 * tq * kb * 4
                   + c * 3 * c * 2 + 3 * c * 4 + c * c * 2 + c * 4 + c * hw * 4)
    vmem_bytes = int(min(64 * 2 ** 20,
                         max(16 * 2 ** 20,
                             2 * block_bytes + hw * 3 * c * 2 + 16 * tq * kb * 4)))

    y = pl.pallas_call(
        kern,
        out_shape=jax.ShapeDtypeStruct((b, t, c, hw), jnp.float32),
        grid=(b, t),
        in_specs=[
            pl.BlockSpec((None, None, hw, c), lambda bi, ti: (bi, ti, 0, 0)),   # punned frame
            pl.BlockSpec((hw, 1), lambda bi, ti: (0, 0)),                       # gamma_p
            pl.BlockSpec((kh2m1, tq, kb), lambda bi, ti: (0, 0, 0)),            # column bias tbl
            pl.BlockSpec((c, 3 * c), lambda bi, ti: (0, 0)),                    # Wqkv (bf16)
            pl.BlockSpec((1, 3 * c), lambda bi, ti: (0, 0)),                    # bqkv (f32)
            pl.BlockSpec((c, c), lambda bi, ti: (0, 0)),                        # Wp^T (bf16)
            pl.BlockSpec((c, 1), lambda bi, ti: (0, 0)),                        # bp^T (f32)
        ],
        out_specs=pl.BlockSpec((None, None, c, hw), lambda bi, ti: (bi, ti, 0, 0)),
        scratch_shapes=[pltpu.VMEM((hw, 3 * c), jnp.bfloat16)],
        compiler_params=pltpu.CompilerParams(
            dimension_semantics=("parallel", "parallel"),
            vmem_limit_bytes=vmem_bytes),
    )(xp, gamma_p, cbt, wqkv, bqkv, wp_t, bp_t)

    # undo the pun of the NA output (raw reshape, as in PyTorch) and add the residual
    return y.transpose(0, 1, 3, 2).reshape(b, c, t, h, w) + x


# ---------------------------------------------------------------------------------------------
# Host-side parameter / table preparation
# ---------------------------------------------------------------------------------------------
def choose_query_tile(h, w, kh):
    tqr = max(1, min(h, (128 // w) if w <= 128 else 1))
    while h % tqr:
        tqr -= 1
    kr = min(tqr + kh - 1, h)
    return tqr, kr


def build_col_bias_table(w, kh, kw, rpb, tqr, kr):
    """cbt[a, jq, jk] = rpb[a, jk-jq+kw-1] if jk is inside jq's clamped column window else -1e30,
    tiled to the (TQ, KB) = (tqr*w, kr*w) attention tile shape.  Grid-invariant."""
    cb = np.full((2 * kh - 1, w, w), NEG, np.float32)
    for jq in range(w):
        nj = min(max(jq - kw // 2, 0), w - kw)
        for jk in range(nj, nj + kw):
            for a in range(2 * kh - 1):
                cb[a, jq, jk] = rpb[a, jk - jq + kw - 1]
    return np.tile(cb, (1, tqr, kr))


def prepare_kernel_params(gamma, wq, wk, wv, bq, bk, bv, wp, bp, rpb, c, h, w, kh, kw):
    assert h >= kh and w >= kw
    scale = float(c) ** -0.5
    wqkv = jnp.concatenate([wq * scale, wk, wv], axis=1).astype(jnp.bfloat16)    # (c, 3c)
    bqkv = jnp.concatenate([bq * scale, bk, bv], axis=1).astype(jnp.float32)     # (1, 3c)
    wp_t = jnp.transpose(wp).astype(jnp.bfloat16)                                # (c, c)
    bp_t = bp.reshape(c, 1).astype(jnp.float32)                                  # (c, 1)
    r = (h * w) // c
    gamma_p = (jnp.repeat(gamma, r) * (float(c) ** 0.5)).reshape(h * w, 1).astype(jnp.float32)
    tqr, kr = choose_query_tile(h, w, kh)
    cbt = jnp.asarray(build_col_bias_table(w, kh, kw, np.asarray(rpb), tqr, kr))
    return gamma_p, cbt, wqkv, bqkv, wp_t, bp_t


# ---------------------------------------------------------------------------------------------
# Pure-JAX f32 reference (same math as the PyTorch module) — only used for validation.
# ---------------------------------------------------------------------------------------------
def build_neighbourhood_bias(h, w, kh, kw, rpb):
    bias = np.full((h * w, h * w), NEG, dtype=np.float32)
    for i in range(h):
        ni = min(max(i - kh // 2, 0), h - kh)
        for j in range(w):
            nj = min(max(j - kw // 2, 0), w - kw)
            for ki in range(kh):
                for kj in range(kw):
                    i2, j2 = ni + ki, nj + kj
                    bias[i * w + j, i2 * w + j2] = rpb[i2 - i + kh - 1, j2 - j + kw - 1]
    return bias


def reference(x, gamma, wq, wk, wv, bq, bk, bv, wp, bp, bias_mat):
    b, c, t, h, w = x.shape
    n, hw = b * t, h * w
    scale = float(c) ** -0.5
    xr = jnp.transpose(x, (0, 2, 1, 3, 4)).reshape(n, c, hw)
    nrm = jnp.maximum(jnp.sqrt(jnp.sum(xr * xr, axis=1, keepdims=True)), EPS)
    xn = xr / nrm * (float(c) ** 0.5) * gamma[None, :, None]
    xs = xn.reshape(n, hw, c)                        # the `.view(b*t, h, w, c)` pun
    q = (xs @ wq + bq) * scale
    k = xs @ wk + bk
    v = xs @ wv + bv
    s = jnp.einsum('npc,nqc->npq', q, k) + bias_mat[None]
    m = jnp.max(s, axis=-1, keepdims=True)
    e = jnp.exp(s - m)
    p = e / jnp.sum(e, axis=-1, keepdims=True)
    o = jnp.einsum('npq,nqc->npc', p, v)
    y = o @ wp + bp
    return y.reshape(b, c, t, h, w) + x              # the `.view(b, c, t, h, w)` pun + residual


if __name__ == "__main__":
    # Small, TPU-friendly shapes: dim=32 channels, t=2 frames, 16x16 spatial (hw=256 lanes).
    b, c, t, h, w = 2, 32, 2, 16, 16
    kh, kw = 3, 3

    key = jax.random.PRNGKey(0)
    kx, *kp = jax.random.split(key, 10)

    x = jax.random.normal(kx, (b, c, t, h, w), jnp.float32)

    gamma = 1.0 + 0.1 * jax.random.normal(kp[0], (c,), jnp.float32)          # RMS_norm gamma
    wq = 0.1 * jax.random.normal(kp[1], (c, c), jnp.float32)                 # qkv linear (in,out)
    wk = 0.1 * jax.random.normal(kp[2], (c, c), jnp.float32)
    wv = 0.1 * jax.random.normal(kp[3], (c, c), jnp.float32)
    bq = 0.05 * jax.random.normal(kp[4], (1, c), jnp.float32)
    bk = 0.05 * jax.random.normal(kp[5], (1, c), jnp.float32)
    bv = 0.05 * jax.random.normal(kp[6], (1, c), jnp.float32)
    wp = 0.1 * jax.random.normal(kp[7], (c, c), jnp.float32)                 # output projection
    bp = 0.05 * jax.random.normal(kp[8], (1, c), jnp.float32)
    rpb = 0.02 * np.asarray(
        jax.random.normal(jax.random.PRNGKey(1), (2 * kh - 1, 2 * kw - 1), jnp.float32))

    params = prepare_kernel_params(gamma, wq, wk, wv, bq, bk, bv, wp, bp, rpb, c, h, w, kh, kw)

    out = spatial_na_block(x, *params)
    out = jax.block_until_ready(out)

    bias_mat = jnp.asarray(build_neighbourhood_bias(h, w, kh, kw, rpb))
    ref = reference(x, gamma, wq, wk, wv, bq, bk, bv, wp, bp, bias_mat)
    assert out.shape == x.shape and out.dtype == jnp.float32
    np.testing.assert_allclose(np.asarray(out), np.asarray(ref), rtol=2e-2, atol=2e-2)

    print("KERNEL_OK")
</pallas_src>

<mosaic_0001>
module attributes {stable_mosaic.version = 11 : i64} {
  func.func @_na_frame_kernel(%arg0: i32, %arg1: i32, %arg2: memref<1x1x256x32xf32, #tpu.memory_space<vmem>>, %arg3: memref<256x1xf32, #tpu.memory_space<vmem>>, %arg4: memref<5x128x160xf32, #tpu.memory_space<vmem>>, %arg5: memref<32x96xbf16, #tpu.memory_space<vmem>>, %arg6: memref<1x96xf32, #tpu.memory_space<vmem>>, %arg7: memref<32x32xbf16, #tpu.memory_space<vmem>>, %arg8: memref<32x1xf32, #tpu.memory_space<vmem>>, %arg9: memref<1x1x32x256xf32, #tpu.memory_space<vmem>>, %arg10: memref<256x96xbf16, #tpu.memory_space<vmem>>) attributes {dimension_semantics = [#tpu.dimension_semantics<parallel>, #tpu.dimension_semantics<parallel>], iteration_bounds = array<i64: 2, 2>, scalar_prefetch = 0 : i64, scratch_operands = 1 : i64, tpu.core_type = #tpu.core_type<tc>, window_params = [{transform_indices = @transform_0, window_bounds = array<i64: 1, 1, 256, 32>}, {pipeline_mode = #tpu.pipeline_mode<synchronous>, transform_indices = @transform_1, window_bounds = array<i64: 256, 1>}, {pipeline_mode = #tpu.pipeline_mode<synchronous>, transform_indices = @transform_2, window_bounds = array<i64: 5, 128, 160>}, {pipeline_mode = #tpu.pipeline_mode<synchronous>, transform_indices = @transform_3, window_bounds = array<i64: 32, 96>}, {pipeline_mode = #tpu.pipeline_mode<synchronous>, transform_indices = @transform_4, window_bounds = array<i64: 1, 96>}, {pipeline_mode = #tpu.pipeline_mode<synchronous>, transform_indices = @transform_5, window_bounds = array<i64: 32, 32>}, {pipeline_mode = #tpu.pipeline_mode<synchronous>, transform_indices = @transform_6, window_bounds = array<i64: 32, 1>}, {transform_indices = @transform_7, window_bounds = array<i64: 1, 1, 32, 256>}]} {
    %c0 = arith.constant 0 : index
    %c0_0 = arith.constant 0 : index
    %c0_1 = arith.constant 0 : index
    %c0_2 = arith.constant 0 : index
    %0 = vector.load %arg2[%c0, %c0_0, %c0_1, %c0_2] : memref<1x1x256x32xf32, #tpu.memory_space<vmem>>, vector<1x1x256x32xf32>
    %1 = vector.shape_cast %0 : vector<1x1x256x32xf32> to vector<256x32xf32>
    %2 = vector.shape_cast %1 : vector<256x32xf32> to vector<32x8x32xf32>
    %3 = arith.mulf %2, %2 : vector<32x8x32xf32>
    %cst = arith.constant dense<0.000000e+00> : vector<8x32xf32>
    %4 = vector.multi_reduction <add>, %3, %cst [0] : vector<32x8x32xf32> to vector<8x32xf32>
    %5 = vector.shape_cast %4 : vector<8x32xf32> to vector<1x8x32xf32>
    %cst_3 = arith.constant 1.000000e-24 : f32
    %6 = vector.broadcast %cst_3 : f32 to vector<1x8x32xf32>
    %7 = arith.maximumf %5, %6 : vector<1x8x32xf32>
    %8 = math.rsqrt %7 : vector<1x8x32xf32>
    %9 = vector.broadcast %8 : vector<1x8x32xf32> to vector<32x8x32xf32>
    %10 = arith.mulf %2, %9 : vector<32x8x32xf32>
    %11 = vector.shape_cast %10 : vector<32x8x32xf32> to vector<256x32xf32>
    %c0_4 = arith.constant 0 : index
    %c0_5 = arith.constant 0 : index
    %12 = vector.load %arg3[%c0_4, %c0_5] : memref<256x1xf32, #tpu.memory_space<vmem>>, vector<256x1xf32>
    %13 = vector.broadcast %12 : vector<256x1xf32> to vector<256x32xf32>
    %14 = arith.mulf %11, %13 : vector<256x32xf32>
    %15 = arith.truncf %14 : vector<256x32xf32> to vector<256x32xbf16>
    %c0_6 = arith.constant 0 : index
    %c0_7 = arith.constant 0 : index
    %16 = vector.load %arg5[%c0_6, %c0_7] : memref<32x96xbf16, #tpu.memory_space<vmem>>, vector<32x96xbf16>
    %cst_8 = arith.constant dense<0.000000e+00> : vector<256x96xf32>
    %17 = tpu.matmul %15, %16, %cst_8 {dimension_numbers = #tpu.dot_dimension_numbers<[1], [0], [0], [1], [0, 0, 1, 1], [], []>} : vector<256x32xbf16>, vector<32x96xbf16>, vector<256x96xf32> -> vector<256x96xf32>
    %c0_9 = arith.constant 0 : index
    %c0_10 = arith.constant 0 : index
    %18 = vector.load %arg6[%c0_9, %c0_10] : memref<1x96xf32, #tpu.memory_space<vmem>>, vector<1x96xf32>
    %19 = vector.broadcast %18 : vector<1x96xf32> to vector<256x96xf32>
    %20 = arith.addf %17, %19 : vector<256x96xf32>
    %21 = arith.truncf %20 : vector<256x96xf32> to vector<256x96xbf16>
    %c0_11 = arith.constant 0 : index
    %c0_12 = arith.constant 0 : index
    %22 = vector.load %arg10[%c0_11, %c0_12] : memref<256x96xbf16, #tpu.memory_space<vmem>>, vector<256x96xbf16>
    tpu.vector_store %arg10[%c0_11, %c0_12], %21 {strides = array<i32>} : memref<256x96xbf16, #tpu.memory_space<vmem>>, vector<256x96xbf16>,
    %c0_i32 = arith.constant 0 : i32
    %c2_i32 = arith.constant 2 : i32
    %23 = arith.addi %c0_i32, %c2_i32 : i32
    %c1_i32 = arith.constant 1 : i32
    scf.for %arg11 = %c0_i32 to %23 step %c1_i32  : i32 {
      %c8_i32 = arith.constant 8 : i32
      %24 = arith.muli %arg11, %c8_i32 : i32
      %c1_i32_14 = arith.constant 1 : i32
      %25 = arith.subi %24, %c1_i32_14 : i32
      %c0_i32_15 = arith.constant 0 : i32
      %c6_i32 = arith.constant 6 : i32
      %26 = arith.maxsi %c0_i32_15, %25 : i32
      %27 = arith.minsi %c6_i32, %26 : i32
      %c128_i32 = arith.constant 128 : i32
      %28 = arith.muli %arg11, %c128_i32 : i32
      %29 = tpu.assume_multiple %28, 128 : i32
      %c16_i32 = arith.constant 16 : i32
      %30 = arith.muli %27, %c16_i32 : i32
      %31 = tpu.assume_multiple %30, 16 : i32
      %32 = arith.index_cast %29 : i32 to index
      %c0_16 = arith.constant 0 : index
      %33 = vector.load %arg10[%32, %c0_16] : memref<256x96xbf16, #tpu.memory_space<vmem>>, vector<128x32xbf16>
      %34 = arith.index_cast %31 : i32 to index
      %c32 = arith.constant 32 : index
      %35 = vector.load %arg10[%34, %c32] : memref<256x96xbf16, #tpu.memory_space<vmem>>, vector<160x32xbf16>
      %36 = arith.index_cast %31 : i32 to index
      %c64 = arith.constant 64 : index
      %37 = vector.load %arg10[%36, %c64] : memref<256x96xbf16, #tpu.memory_space<vmem>>, vector<160x32xbf16>
      %38 = tpu.iota {dimensions = array<i32: 0>} : vector<128x160xi32>
      %39 = tpu.iota {dimensions = array<i32: 1>} : vector<128x160xi32>
      %c4_i32 = arith.constant 4 : i32
      %40 = vector.broadcast %c4_i32 : i32 to vector<128x160xi32>
      %41 = arith.shrsi %38, %40 : vector<128x160xi32>
      %42 = vector.broadcast %24 : i32 to vector<128x160xi32>
      %43 = arith.addi %42, %41 : vector<128x160xi32>
      %c4_i32_17 = arith.constant 4 : i32
      %44 = vector.broadcast %c4_i32_17 : i32 to vector<128x160xi32>
      %45 = arith.shrsi %39, %44 : vector<128x160xi32>
      %46 = vector.broadcast %27 : i32 to vector<128x160xi32>
      %47 = arith.addi %46, %45 : vector<128x160xi32>
      %c1_i32_18 = arith.constant 1 : i32
      %48 = vector.broadcast %c1_i32_18 : i32 to vector<128x160xi32>
      %49 = arith.subi %43, %48 : vector<128x160xi32>
      %c0_i32_19 = arith.constant 0 : i32
      %c13_i32 = arith.constant 13 : i32
      %50 = vector.broadcast %c0_i32_19 : i32 to vector<128x160xi32>
      %51 = arith.maxsi %50, %49 : vector<128x160xi32>
      %52 = vector.broadcast %c13_i32 : i32 to vector<128x160xi32>
      %53 = arith.minsi %52, %51 : vector<128x160xi32>
      %54 = arith.cmpi sge, %47, %53 : vector<128x160xi32>
      %c3_i32 = arith.constant 3 : i32
      %55 = vector.broadcast %c3_i32 : i32 to vector<128x160xi32>
      %56 = arith.addi %53, %55 : vector<128x160xi32>
      %57 = arith.cmpi slt, %47, %56 : vector<128x160xi32>
      %58 = arith.andi %54, %57 : vector<128x160xi1>
      %59 = arith.subi %47, %43 : vector<128x160xi32>
      %c2_i32_20 = arith.constant 2 : i32
      %60 = vector.broadcast %c2_i32_20 : i32 to vector<128x160xi32>
      %61 = arith.addi %59, %60 : vector<128x160xi32>
      %cst_21 = arith.constant 0.000000e+00 : f32
      %62 = vector.broadcast %cst_21 : f32 to vector<128x160xf32>
      %c0_i32_22 = arith.constant 0 : i32
      %63 = vector.broadcast %c0_i32_22 : i32 to vector<128x160xi32>
      %64 = arith.cmpi eq, %61, %63 : vector<128x160xi32>
      %c0_23 = arith.constant 0 : index
      %c0_24 = arith.constant 0 : index
      %c0_25 = arith.constant 0 : index
      %65 = vector.load %arg4[%c0_23, %c0_24, %c0_25] : memref<5x128x160xf32, #tpu.memory_space<vmem>>, vector<1x128x160xf32>
      %66 = vector.shape_cast %65 : vector<1x128x160xf32> to vector<128x160xf32>
      %cst_26 = arith.constant 0.000000e+00 : f32
      %67 = vector.broadcast %cst_26 : f32 to vector<128x160xf32>
      %68 = arith.select %64, %66, %67 : vector<128x160xi1>, vector<128x160xf32>
      %69 = arith.addf %62, %68 : vector<128x160xf32>
      %c1_i32_27 = arith.constant 1 : i32
      %70 = vector.broadcast %c1_i32_27 : i32 to vector<128x160xi32>
      %71 = arith.cmpi eq, %61, %70 : vector<128x160xi32>
      %c1 = arith.constant 1 : index
      %c0_28 = arith.constant 0 : index
      %c0_29 = arith.constant 0 : index
      %72 = vector.load %arg4[%c1, %c0_28, %c0_29] : memref<5x128x160xf32, #tpu.memory_space<vmem>>, vector<1x128x160xf32>
      %73 = vector.shape_cast %72 : vector<1x128x160xf32> to vector<128x160xf32>
      %cst_30 = arith.constant 0.000000e+00 : f32
      %74 = vector.broadcast %cst_30 : f32 to vector<128x160xf32>
      %75 = arith.select %71, %73, %74 : vector<128x160xi1>, vector<128x160xf32>
      %76 = arith.addf %69, %75 : vector<128x160xf32>
      %c2_i32_31 = arith.constant 2 : i32
      %77 = vector.broadcast %c2_i32_31 : i32 to vector<128x160xi32>
      %78 = arith.cmpi eq, %61, %77 : vector<128x160xi32>
      %c2 = arith.constant 2 : index
      %c0_32 = arith.constant 0 : index
      %c0_33 = arith.constant 0 : index
      %79 = vector.load %arg4[%c2, %c0_32, %c0_33] : memref<5x128x160xf32, #tpu.memory_space<vmem>>, vector<1x128x160xf32>
      %80 = vector.shape_cast %79 : vector<1x128x160xf32> to vector<128x160xf32>
      %cst_34 = arith.constant 0.000000e+00 : f32
      %81 = vector.broadcast %cst_34 : f32 to vector<128x160xf32>
      %82 = arith.select %78, %80, %81 : vector<128x160xi1>, vector<128x160xf32>
      %83 = arith.addf %76, %82 : vector<128x160xf32>
      %c3_i32_35 = arith.constant 3 : i32
      %84 = vector.broadcast %c3_i32_35 : i32 to vector<128x160xi32>
      %85 = arith.cmpi eq, %61, %84 : vector<128x160xi32>
      %c3 = arith.constant 3 : index
      %c0_36 = arith.constant 0 : index
      %c0_37 = arith.constant 0 : index
      %86 = vector.load %arg4[%c3, %c0_36, %c0_37] : memref<5x128x160xf32, #tpu.memory_space<vmem>>, vector<1x128x160xf32>
      %87 = vector.shape_cast %86 : vector<1x128x160xf32> to vector<128x160xf32>
      %cst_38 = arith.constant 0.000000e+00 : f32
      %88 = vector.broadcast %cst_38 : f32 to vector<128x160xf32>
      %89 = arith.select %85, %87, %88 : vector<128x160xi1>, vector<128x160xf32>
      %90 = arith.addf %83, %89 : vector<128x160xf32>
      %c4_i32_39 = arith.constant 4 : i32
      %91 = vector.broadcast %c4_i32_39 : i32 to vector<128x160xi32>
      %92 = arith.cmpi eq, %61, %91 : vector<128x160xi32>
      %c4 = arith.constant 4 : index
      %c0_40 = arith.constant 0 : index
      %c0_41 = arith.constant 0 : index
      %93 = vector.load %arg4[%c4, %c0_40, %c0_41] : memref<5x128x160xf32, #tpu.memory_space<vmem>>, vector<1x128x160xf32>
      %94 = vector.shape_cast %93 : vector<1x128x160xf32> to vector<128x160xf32>
      %cst_42 = arith.constant 0.000000e+00 : f32
      %95 = vector.broadcast %cst_42 : f32 to vector<128x160xf32>
      %96 = arith.select %92, %94, %95 : vector<128x160xi1>, vector<128x160xf32>
      %97 = arith.addf %90, %96 : vector<128x160xf32>
      %cst_43 = arith.constant -1.000000e+30 : f32
      %98 = vector.broadcast %cst_43 : f32 to vector<128x160xf32>
      %99 = arith.select %58, %97, %98 : vector<128x160xi1>, vector<128x160xf32>
      %cst_44 = arith.constant dense<0.000000e+00> : vector<128x160xf32>
      %100 = tpu.matmul %33, %35, %cst_44 {dimension_numbers = #tpu.dot_dimension_numbers<[1], [1], [0], [0], [0, 0, 1, 0], [], []>} : vector<128x32xbf16>, vector<160x32xbf16>, vector<128x160xf32> -> vector<128x160xf32>
      %101 = arith.addf %100, %99 : vector<128x160xf32>
      %cst_45 = arith.constant dense<0xFF800000> : vector<128xf32>
      %102 = vector.multi_reduction <maximumf>, %101, %cst_45 [1] : vector<128x160xf32> to vector<128xf32>
      %103 = vector.shape_cast %102 : vector<128xf32> to vector<128x1xf32>
      %104 = vector.broadcast %103 : vector<128x1xf32> to vector<128x160xf32>
      %105 = arith.subf %101, %104 : vector<128x160xf32>
      %106 = math.exp %105 : vector<128x160xf32>
      %cst_46 = arith.constant dense<0.000000e+00> : vector<128xf32>
      %107 = vector.multi_reduction <add>, %106, %cst_46 [1] : vector<128x160xf32> to vector<128xf32>
      %108 = vector.shape_cast %107 : vector<128xf32> to vector<128x1xf32>
      %109 = tpu.reciprocal %108 {approx = true} : vector<128x1xf32> -> vector<128x1xf32>
      %110 = vector.broadcast %109 : vector<128x1xf32> to vector<128x160xf32>
      %111 = arith.mulf %106, %110 : vector<128x160xf32>
      %112 = arith.truncf %111 : vector<128x160xf32> to vector<128x160xbf16>
      %cst_47 = arith.constant dense<0.000000e+00> : vector<32x128xf32>
      %113 = tpu.matmul %37, %112, %cst_47 {dimension_numbers = #tpu.dot_dimension_numbers<[0], [1], [1], [0], [0, 1, 1, 0], [], []>} : vector<160x32xbf16>, vector<128x160xbf16>, vector<32x128xf32> -> vector<32x128xf32>
      %c0_48 = arith.constant 0 : index
      %c0_49 = arith.constant 0 : index
      %114 = vector.load %arg7[%c0_48, %c0_49] : memref<32x32xbf16, #tpu.memory_space<vmem>>, vector<32x32xbf16>
      %115 = arith.truncf %113 : vector<32x128xf32> to vector<32x128xbf16>
      %cst_50 = arith.constant dense<0.000000e+00> : vector<32x128xf32>
      %116 = tpu.matmul %114, %115, %cst_50 {dimension_numbers = #tpu.dot_dimension_numbers<[1], [0], [0], [1], [0, 0, 1, 1], [], []>} : vector<32x32xbf16>, vector<32x128xbf16>, vector<32x128xf32> -> vector<32x128xf32>
      %c0_51 = arith.constant 0 : index
      %c0_52 = arith.constant 0 : index
      %117 = vector.load %arg8[%c0_51, %c0_52] : memref<32x1xf32, #tpu.memory_space<vmem>>, vector<32x1xf32>
      %118 = vector.broadcast %117 : vector<32x1xf32> to vector<32x128xf32>
      %119 = arith.addf %116, %118 : vector<32x128xf32>
      %c0_53 = arith.constant 0 : index
      %c0_54 = arith.constant 0 : index
      %c0_55 = arith.constant 0 : index
      %120 = arith.index_cast %29 : i32 to index
      %121 = vector.load %arg9[%c0_53, %c0_54, %c0_55, %120] : memref<1x1x32x256xf32, #tpu.memory_space<vmem>>, vector<1x1x32x128xf32>
      %122 = vector.shape_cast %121 : vector<1x1x32x128xf32> to vector<32x128xf32>
      %123 = vector.shape_cast %119 : vector<32x128xf32> to vector<1x1x32x128xf32>
      tpu.vector_store %arg9[%c0_53, %c0_54, %c0_55, %120], %123 {strides = array<i32>} : memref<1x1x32x256xf32, #tpu.memory_space<vmem>>, vector<1x1x32x128xf32>,
    }
    %c2_i32_13 = arith.constant 2 : i32
    return
  }
  func.func @transform_0(%arg0: i32, %arg1: i32) -> (i32, i32, i32, i32) {
    %c0_i32 = arith.constant 0 : i32
    %c0_i32_0 = arith.constant 0 : i32
    %c0_i32_1 = arith.constant 0 : i32
    return %arg0, %arg1, %c0_i32, %c0_i32_0 : i32, i32, i32, i32
  }
  func.func @transform_1(%arg0: i32, %arg1: i32) -> (i32, i32) {
    %c0_i32 = arith.constant 0 : i32
    %c0_i32_0 = arith.constant 0 : i32
    %c0_i32_1 = arith.constant 0 : i32
    return %c0_i32, %c0_i32_0 : i32, i32
  }
  func.func @transform_2(%arg0: i32, %arg1: i32) -> (i32, i32, i32) {
    %c0_i32 = arith.constant 0 : i32
    %c0_i32_0 = arith.constant 0 : i32
    %c0_i32_1 = arith.constant 0 : i32
    %c0_i32_2 = arith.constant 0 : i32
    return %c0_i32, %c0_i32_0, %c0_i32_1 : i32, i32, i32
  }
  func.func @transform_3(%arg0: i32, %arg1: i32) -> (i32, i32) {
    %c0_i32 = arith.constant 0 : i32
    %c0_i32_0 = arith.constant 0 : i32
    %c0_i32_1 = arith.constant 0 : i32
    return %c0_i32, %c0_i32_0 : i32, i32
  }
  func.func @transform_4(%arg0: i32, %arg1: i32) -> (i32, i32) {
    %c0_i32 = arith.constant 0 : i32
    %c0_i32_0 = arith.constant 0 : i32
    %c0_i32_1 = arith.constant 0 : i32
    return %c0_i32, %c0_i32_0 : i32, i32
  }
  func.func @transform_5(%arg0: i32, %arg1: i32) -> (i32, i32) {
    %c0_i32 = arith.constant 0 : i32
    %c0_i32_0 = arith.constant 0 : i32
    %c0_i32_1 = arith.constant 0 : i32
    return %c0_i32, %c0_i32_0 : i32, i32
  }
  func.func @transform_6(%arg0: i32, %arg1: i32) -> (i32, i32) {
    %c0_i32 = arith.constant 0 : i32
    %c0_i32_0 = arith.constant 0 : i32
    %c0_i32_1 = arith.constant 0 : i32
    return %c0_i32, %c0_i32_0 : i32, i32
  }
  func.func @transform_7(%arg0: i32, %arg1: i32) -> (i32, i32, i32, i32) {
    %c0_i32 = arith.constant 0 : i32
    %c0_i32_0 = arith.constant 0 : i32
    %c0_i32_1 = arith.constant 0 : i32
    return %arg0, %arg1, %c0_i32, %c0_i32_0 : i32, i32, i32, i32
  }
}

</mosaic_0001>

<bundles_post_ra>
// kernel: spatial_na_block.1
= control target key start
LH: loop header
LB: loop body
LE: loop exit
PB: predicated region body
PF: predicated region fallthrough
CT: control target
= control target key end

     0   :  { %s3383_s24 = smov 0   ;;  %s3385_s25 = smov 0   ;;  %s5917_s0 = inlined_call_operand.vmem [shape: f32[2,2,256,32], index: 0, kind: input, shape index: {}]   ;;  %s5918_s1 = inlined_call_operand.vmem [shape: f32[256,1], index: 1, kind: input, shape index: {}]   ;;  %s5919_s2 = inlined_call_operand.vmem [shape: f32[5,128,160], index: 2, kind: input, shape index: {}]   ;;  %s5920_s3 = inlined_call_operand.vmem [shape: bf16[32,96], index: 3, kind: input, shape index: {}]   ;;  %s5921_s4 = inlined_call_operand.vmem [shape: f32[1,96], index: 4, kind: input, shape index: {}]   ;;  %s5922_s5 = inlined_call_operand.vmem [shape: bf16[32,32], index: 5, kind: input, shape index: {}]   ;;  %s5923_s6 = inlined_call_operand.vmem [shape: f32[32,1], index: 6, kind: input, shape index: {}]   ;;  %s5924_s7 = inlined_call_operand.vmem [shape: f32[2,2,32,256], index: 7, kind: output, shape index: {}]  }
   0x1   :  { %s3387_s26 = smov 0   ;;  %s3389_s27 = smov 0  }
   0x2   :  { %s3391_s28 = smov 0  }
   0x3 LB: > { %s26_s29 = sadd.s32 1, %s3325_s26  ;;  %s29_s30 = sadd.s32 1, %s3329_s27  ;;  %s3333_s28 = sphi %s3391_s28, %s17_s28   ;;  %s3329_s27 = sphi %s3389_s27, %s6151_s27   ;;  %s3325_s26 = sphi %s3387_s26, %s6150_s26   ;;  %s3321_s25 = sphi %s3385_s25, %s6149_s25   ;;  %s3317_s24 = sphi %s3383_s24, %s6148_s24  }
   0x4   : > { %p27_p0 = scmp.ge.s32.totalorder %s26_s29, 2  ;;  %p2852_p1 = scmp.ge.s32.totalorder %s3333_s28, 1 }
   0x5   : > { %p257_p2 = scmp.lt.s32.totalorder %s3333_s28, 5 }
   0x6   : > { %s6153_s29 = smov (%p27_p0, %s26_s29), 0  ;;  %s6155_s30 = smov (!%p27_p0, %s29_s30), %s3329_s27 }
   0x7   : > { %p258_p3 = pnand %p2852_p1, %p257_p2  ;;  %p31_p4 = scmp.ge.s32.totalorder %s6155_s30, 2 }
   0x8   : > { %v494_v0 = vld [vmem:[%s5918_s1 + $0x80] sm:$0xff] (!%p258_p3)  ;;  %p297_p5 = scmp.lt.s32.totalorder (!%p258_p3), %s3321_s25, 1  ;;  %p299_p6 = scmp.lt.s32.totalorder (!%p258_p3), %s3317_s24, 1  ;;  %v3339_v2 = vmov (!%p258_p3), 0   ;;  %v495_v3 = vld [vmem:[%s5918_s1 + $0x88] sm:$0xff] (!%p258_p3)  ;;  %v481_v5 = vld [vmem:[%s5918_s1 + $0x18] sm:$0xff] (!%p258_p3) }
   0x9   : > { %s6157_s30 = smov (%p31_p4, %s6155_s30), 0  ;;  %261 = sbr.rel (%p258_p3) target bundleno = 1753 (0x6d9), region = 48 }
   0xa   : > { %v478_v1 = vld [vmem:[%s5918_s1] sm:$0xff] (!%p258_p3)  ;;  %3183 = vset.pattern.permute.xlu1 (!%p258_p3), %v3339_v2  ;;  %3182 = vset.pattern.permute.xlu0 (!%p258_p3), %v3339_v2  ;;  %v479_v4 = vld [vmem:[%s5918_s1 + $0x8] sm:$0xff] (!%p258_p3)  ;;  %v480_v6 = vld [vmem:[%s5918_s1 + $0x10] sm:$0xff] (!%p258_p3)  ;;  %vm5925_vm0 = vcmask (!%p258_p3), 261120   ;;  %vm966_vm1 = vcmask (!%p258_p3), 785408   ;;  %s3856_s9 = smov (!%p258_p3), 0  }
   0xb   : > { %592 = vperm.xlu1 (!%p258_p3), %3183, %v494_v0   ;;  %512 = vperm.xlu0 (!%p258_p3), %3182, %v478_v1   ;;  %v497_v7 = vld [vmem:[%s5918_s1 + $0x98] sm:$0xff] (!%p258_p3)  ;;  %v496_v8 = vld [vmem:[%s5918_s1 + $0x90] sm:$0xff] (!%p258_p3)  ;;  %v483_v18 = vld [vmem:[%s5918_s1 + $0x28] sm:$0xff] (!%p258_p3) }
   0xc   : > { %v482_v21 = vld [vmem:[%s5918_s1 + $0x20] sm:$0xff] (!%p258_p3)  ;;  %v499_v32 = vld [vmem:[%s5918_s1 + $0xa8] sm:$0xff] (!%p258_p3)  ;;  %v485_v38 = vld [vmem:[%s5918_s1 + $0x38] sm:$0xff] (!%p258_p3) }
   0xd   : > { %v498_v33 = vld [vmem:[%s5918_s1 + $0xa0] sm:$0xff] (!%p258_p3)  ;;  %v484_v41 = vld [vmem:[%s5918_s1 + $0x30] sm:$0xff] (!%p258_p3)  ;;  %v3185_v48 = vld [vmem:[%s5920_s3 + $0x8] sm:$0xff] (!%p258_p3)  }
   0xe   : > { %v3184_v45 = vld [vmem:[%s5920_s3] sm:$0xff] (!%p258_p3)   ;;  %v501_v55 = vld [vmem:[%s5918_s1 + $0xb8] sm:$0xff] (!%p258_p3)  ;;  %v500_v56 = vld [vmem:[%s5918_s1 + $0xb0] sm:$0xff] (!%p258_p3) }
   0xf   : > { %597 = vperm.xlu1 (!%p258_p3), %3183, %v495_v3   ;;  %517 = vperm.xlu0 (!%p258_p3), %3182, %v479_v4   ;;  %v487_v1 = vld [vmem:[%s5918_s1 + $0x48] sm:$0xff] (!%p258_p3)  ;;  %v486_v2 = vld [vmem:[%s5918_s1 + $0x40] sm:$0xff] (!%p258_p3) }
  0x10   : > { %s6159_s25 = smov (!%p297_p5, %s3321_s25), 1  ;;  %s6161_s24 = smov (!%p299_p6, %s3317_s24), 1  ;;  %3082 = vmatprep.subr.bf16.mxu0 %v3184_v45  ;;  %3126 = vmatprep.subr.bf16.mxu1 %v3184_v45 }
  0x11   : > { %s2854_s16 = sshll.u32 %s6159_s25, 6  ;;  %s2853_s17 = sshll.u32 %s6161_s24, 5  ;;  %3083 = vmatpush3.bf16.msra.mxu0 %v3184_v45  ;;  %3128 = vmatpush3.bf16.msra.mxu1 %v3184_v45 }
  0x12   : > { %s303_s18 = sadd.s32 %s2854_s16, %s2853_s17  ;;  %s2856_s15 = sshll.u32 %s6161_s24, 3  ;;  %3084 = vmatprep.subr.bf16.mxu0 %v3185_v48  ;;  %3127 = vmatprep.subr.bf16.mxu1 %v3185_v48 }
  0x13   : > { %s2855_s23 = sshll.u32 %s303_s18, 3  ;;  %527 = vperm.xlu1 %3183, %v481_v5   ;;  %522 = vperm.xlu0 %3182, %v480_v6   ;;  %s2857_s16 = sshll.u32 %s6159_s25, 4 }
  0x14   : > { %s3437_s10 = scalar_lea.vmem %s5917_s0, %s2855_s23  ;;  %s312_s17 = sadd.s32 %s2857_s16, %s2856_s15 }
  0x15   : > { %v3446_v9 = vld [vmem:[%s3437_s10] sm:$0xff]  ;;  %v3449_v10 = vld [vmem:[%s3437_s10 + $0x8] sm:$0xff]  ;;  %v3452_v11 = vld [vmem:[%s3437_s10 + $0x10] sm:$0xff]  ;;  %s2858_s20 = sshll.u32 %s312_s17, 3  ;;  %3085 = vmatpush3.bf16.msra.mxu0 %v3185_v48  ;;  %3129 = vmatpush3.bf16.msra.mxu1 %v3185_v48 }
  0x16   : > { %v3455_v12 = vld [vmem:[%s3437_s10 + $0x18] sm:$0xff]  ;;  %v348_v13 = vmul.f32 %v3446_v9, %v3446_v9  ;;  %v349_v14 = vmul.f32 %v3449_v10, %v3449_v10  ;;  %v350_v15 = vmul.f32 %v3452_v11, %v3452_v11  ;;  %v3465_v16 = vld [vmem:[%s3437_s10 + $0x20] sm:$0xff]  ;;  %v3478_v22 = vld [vmem:[%s3437_s10 + $0x28] sm:$0xff]  ;;  %s3486_s23 = scalar_lea.vmem %s5924_s7, %s2858_s20 }
  0x17   : > { %607 = vperm.xlu1 %3183, %v497_v7   ;;  %602 = vperm.xlu0 %3182, %v496_v8   ;;  %v351_v19 = vmul.f32 %v3455_v12, %v3455_v12  ;;  %v3481_v23 = vld [vmem:[%s3437_s10 + $0x30] sm:$0xff]  ;;  %v352_v25 = vmul.f32 %v3465_v16, %v3465_v16  ;;  %v3492_v27 = vld [vmem:[%s3437_s10 + $0x38] sm:$0xff]  ;;  %v353_v29 = vmul.f32 %v3478_v22, %v3478_v22  ;;  %v3506_v34 = vld [vmem:[%s3437_s10 + $0x40] sm:$0xff] }
  0x18   : > { %v381_v17 = vsel %vm5925_vm0, %v348_v13, 0.0  ;;  %v382_v20 = vsel %vm5925_vm0, %v349_v14, 0.0  ;;  %v384_v26 = vsel %vm5925_vm0, %v350_v15, 0.0  ;;  %v354_v30 = vmul.f32 %v3481_v23, %v3481_v23  ;;  %v3515_v39 = vld [vmem:[%s3437_s10 + $0x48] sm:$0xff]  ;;  %v3528_v46 = vld [vmem:[%s3437_s10 + $0x50] sm:$0xff]  ;;  %v3537_v51 = vld [vmem:[%s3437_s10 + $0x58] sm:$0xff] }
  0x19   : > { %v383_v24 = vadd.f32 %v382_v20, %v381_v17  ;;  %v386_v31 = vsel %vm5925_vm0, %v351_v19, 0.0  ;;  %v355_v36 = vmul.f32 %v3492_v27, %v3492_v27  ;;  %v388_v37 = vsel %vm5925_vm0, %v352_v25, 0.0  ;;  %v3549_v57 = vld [vmem:[%s3437_s10 + $0x60] sm:$0xff]  ;;  %v3555_v61 = vld [vmem:[%s3437_s10 + $0x68] sm:$0xff]  ;;  %v3567_v3 = vld [vmem:[%s3437_s10 + $0x70] sm:$0xff] }
  0x1a   : > { %v356_v42 = vmul.f32 %v3506_v34, %v3506_v34  ;;  %v390_v43 = vsel %vm5925_vm0, %v353_v29, 0.0  ;;  %v392_v44 = vsel %vm5925_vm0, %v354_v30, 0.0  ;;  %v357_v49 = vmul.f32 %v3515_v39, %v3515_v39  ;;  %v503_v14 = vld [vmem:[%s5918_s1 + $0xc8] sm:$0xff]  ;;  %v502_v15 = vld [vmem:[%s5918_s1 + $0xc0] sm:$0xff]  ;;  %v3582_v17 = vld [vmem:[%s3437_s10 + $0x78] sm:$0xff] }
  0x1b   : > { %v385_v28 = vadd.f32 %v384_v26, %v383_v24  ;;  %537 = vperm.xlu1 %3183, %v483_v18   ;;  %532 = vperm.xlu0 %3182, %v482_v21   ;;  %v394_v50 = vsel %vm5925_vm0, %v355_v36, 0.0  ;;  %v358_v53 = vmul.f32 %v3528_v46, %v3528_v46  ;;  %v359_v59 = vmul.f32 %v3537_v51, %v3537_v51  ;;  %v489_v25 = vld [vmem:[%s5918_s1 + $0x58] sm:$0xff]  ;;  %v488_v26 = vld [vmem:[%s5918_s1 + $0x50] sm:$0xff]  ;;  %v3607_v36 = vld [vmem:[%s3437_s10 + $0x88] sm:$0xff] }
  0x1c   : > { %v396_v54 = vsel %vm5925_vm0, %v356_v42, 0.0  ;;  %v398_v60 = vsel %vm5925_vm0, %v357_v49, 0.0  ;;  %v360_v63 = vmul.f32 %v3549_v57, %v3549_v57  ;;  %v361_v5 = vmul.f32 %v3555_v61, %v3555_v61  ;;  %v490_v42 = vld [vmem:[%s5918_s1 + $0x60] sm:$0xff]  ;;  %v507_v48 = vld [vmem:[%s5918_s1 + $0xe8] sm:$0xff] }
  0x1d   : > { %v387_v35 = vadd.f32 %v386_v31, %v385_v28  ;;  %v400_v0 = vsel %vm5925_vm0, %v358_v53, 0.0  ;;  %v402_v6 = vsel %vm5925_vm0, %v359_v59, 0.0  ;;  %v362_v8 = vmul.f32 %v3567_v3, %v3567_v3  ;;  %v3595_v28 = vld [vmem:[%s3437_s10 + $0x80] sm:$0xff] }
  0x1e   : > { %v404_v13 = vsel %vm5925_vm0, %v360_v63, 0.0  ;;  %v406_v19 = vsel %vm5925_vm0, %v361_v5, 0.0  ;;  %v363_v21 = vmul.f32 %v3582_v17, %v3582_v17  ;;  %v364_v31 = vmul.f32 %v3595_v28, %v3595_v28  ;;  %v506_v49 = vld [vmem:[%s5918_s1 + $0xe0] sm:$0xff]  ;;  %v509_v63 = vld [vmem:[%s5918_s1 + $0xf8] sm:$0xff] }
  0x1f   : > { %v389_v40 = vadd.f32 %v388_v37, %v387_v35  ;;  %617 = vperm.xlu1 %3183, %v499_v32   ;;  %612 = vperm.xlu0 %3182, %v498_v33   ;;  %v408_v24 = vsel %vm5925_vm0, %v362_v8, 0.0  ;;  %v505_v33 = vld [vmem:[%s5918_s1 + $0xd8] sm:$0xff]  ;;  %v504_v35 = vld [vmem:[%s5918_s1 + $0xd0] sm:$0xff] }
  0x20   : > { %v410_v32 = vsel %vm5925_vm0, %v363_v21, 0.0 }
  0x21   : > { %v391_v47 = vadd.f32 %v390_v43, %v389_v40  ;;  %v412_v40 = vsel %vm5925_vm0, %v364_v31, 0.0  ;;  %v3619_v43 = vld [vmem:[%s3437_s10 + $0x90] sm:$0xff] }
  0x22   : > { %v366_v45 = vmul.f32 %v3619_v43, %v3619_v43 }
  0x23   : > { %v393_v52 = vadd.f32 %v392_v44, %v391_v47  ;;  %547 = vperm.xlu1 %3183, %v485_v38   ;;  %542 = vperm.xlu0 %3182, %v484_v41   ;;  %v365_v38 = vmul.f32 %v3607_v36, %v3607_v36  ;;  %v491_v41 = vld [vmem:[%s5918_s1 + $0x68] sm:$0xff] }
  0x25   : > { %v395_v58 = vadd.f32 %v394_v50, %v393_v52  ;;  %v414_v47 = vsel %vm5925_vm0, %v365_v38, 0.0  ;;  %v3631_v50 = vld [vmem:[%s3437_s10 + $0x98] sm:$0xff] }
  0x26   : > { %v367_v53 = vmul.f32 %v3631_v50, %v3631_v50  ;;  %v3691_v38 = vld [vmem:[%s3437_s10 + $0xd8] sm:$0xff] }
  0x27   : > { %v397_v62 = vadd.f32 %v396_v54, %v395_v58  ;;  %627 = vperm.xlu1 %3183, %v501_v55   ;;  %622 = vperm.xlu0 %3182, %v500_v56   ;;  %v416_v54 = vsel %vm5925_vm0, %v366_v45, 0.0  ;;  %v493_v55 = vld [vmem:[%s5918_s1 + $0x78] sm:$0xff]  ;;  %v492_v56 = vld [vmem:[%s5918_s1 + $0x70] sm:$0xff]  ;;  %v3643_v58 = vld [vmem:[%s3437_s10 + $0xa0] sm:$0xff] }
  0x29   : > { %v399_v4 = vadd.f32 %v398_v60, %v397_v62  ;;  %v368_v60 = vmul.f32 %v3643_v58, %v3643_v58  ;;  %v418_v62 = vsel %vm5925_vm0, %v367_v53, 0.0 }
  0x2b   : > { %v401_v7 = vadd.f32 %v400_v0, %v399_v4  ;;  %557 = vperm.xlu1 %3183, %v487_v1   ;;  %552 = vperm.xlu0 %3182, %v486_v2   ;;  %v508_v0 = vld [vmem:[%s5918_s1 + $0xf0] sm:$0xff]  ;;  %v3655_v1 = vld [vmem:[%s3437_s10 + $0xa8] sm:$0xff]  ;;  %v420_v5 = vsel %vm5925_vm0, %v368_v60, 0.0 }
  0x2c   : > { %v369_v4 = vmul.f32 %v3655_v1, %v3655_v1 }
  0x2d   : > { %v403_v18 = vadd.f32 %v402_v6, %v401_v7  ;;  %v3661_v6 = vld [vmem:[%s3437_s10 + $0xb0] sm:$0xff] }
  0x2e   : > { %v370_v8 = vmul.f32 %v3661_v6, %v3661_v6 }
  0x2f   : > { %v405_v20 = vadd.f32 %v404_v13, %v403_v18  ;;  %637 = vperm.xlu1 %3183, %v503_v14   ;;  %632 = vperm.xlu0 %3182, %v502_v15   ;;  %v422_v13 = vsel %vm5925_vm0, %v369_v4, 0.0  ;;  %v3667_v14 = vld [vmem:[%s3437_s10 + $0xb8] sm:$0xff] }
  0x30   : > { %v371_v18 = vmul.f32 %v3667_v14, %v3667_v14 }
  0x31   : > { %v407_v29 = vadd.f32 %v406_v19, %v405_v20  ;;  %v424_v19 = vsel %vm5925_vm0, %v370_v8, 0.0  ;;  %v3673_v20 = vld [vmem:[%s3437_s10 + $0xc0] sm:$0xff] }
  0x33   : > { %v409_v30 = vadd.f32 %v408_v24, %v407_v29  ;;  %567 = vperm.xlu1 %3183, %v489_v25   ;;  %562 = vperm.xlu0 %3182, %v488_v26   ;;  %v372_v24 = vmul.f32 %v3673_v20, %v3673_v20  ;;  %v426_v25 = vsel %vm5925_vm0, %v371_v18, 0.0  ;;  %v3679_v26 = vld [vmem:[%s3437_s10 + $0xc8] sm:$0xff] }
  0x35   : > { %v411_v37 = vadd.f32 %v410_v32, %v409_v30  ;;  %v373_v30 = vmul.f32 %v3679_v26, %v3679_v26  ;;  %v428_v31 = vsel %vm5925_vm0, %v372_v24, 0.0  ;;  %v3685_v32 = vld [vmem:[%s3437_s10 + $0xd0] sm:$0xff] }
  0x37   : > { %647 = vperm.xlu1 %3183, %v505_v33   ;;  %642 = vperm.xlu0 %3182, %v504_v35   ;;  %v413_v44 = vadd.f32 %v412_v40, %v411_v37  ;;  %v374_v35 = vmul.f32 %v3685_v32, %v3685_v32  ;;  %v430_v37 = vsel %vm5925_vm0, %v373_v30, 0.0 }
  0x39   : > { %v415_v52 = vadd.f32 %v414_v47, %v413_v44  ;;  %v3697_v44 = vld [vmem:[%s3437_s10 + $0xe0] sm:$0xff] }
  0x3a   : > { %v376_v47 = vmul.f32 %v3697_v44, %v3697_v44 }
  0x3b   : > { %577 = vperm.xlu1 %3183, %v491_v41   ;;  %572 = vperm.xlu0 %3182, %v490_v42   ;;  %v417_v59 = vadd.f32 %v416_v54, %v415_v52  ;;  %v375_v41 = vmul.f32 %v3691_v38, %v3691_v38  ;;  %v432_v42 = vsel %vm5925_vm0, %v374_v35, 0.0 }
  0x3c   : > { %v436_v54 = vsel %vm5925_vm0, %v376_v47, 0.0 }
  0x3d   : > { %v419_v2 = vadd.f32 %v418_v62, %v417_v59  ;;  %v3715_v62 = vld [vmem:[%s3437_s10 + $0xf8] sm:$0xff] }
  0x3f   : > { %657 = vperm.xlu1 %3183, %v507_v48   ;;  %652 = vperm.xlu0 %3182, %v506_v49   ;;  %v421_v7 = vadd.f32 %v420_v5, %v419_v2  ;;  %v434_v48 = vsel %vm5925_vm0, %v375_v41, 0.0  ;;  %v3703_v49 = vld [vmem:[%s3437_s10 + $0xe8] sm:$0xff] }
  0x40   : > { %v377_v53 = vmul.f32 %v3703_v49, %v3703_v49 }
  0x41   : > { %v423_v15 = vadd.f32 %v422_v13, %v421_v7 }
  0x42   : > { %v438_v60 = vsel %vm5925_vm0, %v377_v53, 0.0 }
  0x43   : > { %587 = vperm.xlu1 %3183, %v493_v55   ;;  %582 = vperm.xlu0 %3182, %v492_v56   ;;  %v425_v21 = vadd.f32 %v424_v19, %v423_v15  ;;  %v3709_v55 = vld [vmem:[%s3437_s10 + $0xf0] sm:$0xff] }
  0x44   : > { %v378_v59 = vmul.f32 %v3709_v55, %v3709_v55 }
  0x45   : > { %v427_v29 = vadd.f32 %v426_v25, %v425_v21 }
  0x46   : > { %v440_v2 = vsel %vm5925_vm0, %v378_v59, 0.0 }
  0x47   : > { %667 = vperm.xlu1 %3183, %v509_v63   ;;  %662 = vperm.xlu0 %3182, %v508_v0   ;;  %v429_v33 = vadd.f32 %v428_v31, %v427_v29  ;;  %v379_v0 = vmul.f32 %v3715_v62, %v3715_v62 }
  0x49   : > { %v431_v40 = vadd.f32 %v430_v37, %v429_v33  ;;  %v442_v5 = vsel %vm5925_vm0, %v379_v0, 0.0 }
  0x4b   : > { %v433_v45 = vadd.f32 %v432_v42, %v431_v40 }
  0x4d   : > { %v435_v52 = vadd.f32 %v434_v48, %v433_v45 }
  0x4f   : > { %v437_v56 = vadd.f32 %v436_v54, %v435_v52 }
  0x51   : > { %v439_v63 = vadd.f32 %v438_v60, %v437_v56 }
  0x53   : > { %v441_v4 = vadd.f32 %v440_v2, %v439_v63 }
  0x55   : > { %v443_v7 = vadd.f32 %v442_v5, %v441_v4 }
  0x57   : > { %v444_v8 = vmax.f32 %v443_v7, 1e-24 }
  0x59   : > { %3186 = vrsqrt.f32 %v444_v8 }
  0x63   : > { %v3721_v13 = vpop.eup %3186 }
  0x64   : > { %v462_v19 = vmul.f32 %v3721_v13, %v3595_v28  ;;  %v446_v21 = vmul.f32 %v3721_v13, %v3446_v9  ;;  %v463_v24 = vmul.f32 %v3721_v13, %v3607_v36  ;;  %v447_v25 = vmul.f32 %v3721_v13, %v3449_v10 }
  0x65   : > { %v449_v31 = vmul.f32 %v3721_v13, %v3455_v12  ;;  %v448_v33 = vmul.f32 %v3721_v13, %v3452_v11  ;;  %v465_v36 = vmul.f32 %v3721_v13, %v3631_v50  ;;  %v464_v11 = vmul.f32 %v3721_v13, %v3619_v43 }
  0x66   : > { %v451_v56 = vmul.f32 %v3721_v13, %v3478_v22  ;;  %v450_v50 = vmul.f32 %v3721_v13, %v3465_v16  ;;  %v467_v43 = vmul.f32 %v3721_v13, %v3655_v1  ;;  %v466_v4 = vmul.f32 %v3721_v13, %v3643_v58 }
  0x67   : > { %v453_v16 = vmul.f32 %v3721_v13, %v3492_v27  ;;  %v469_v58 = vmul.f32 %v3721_v13, %v3667_v14 }
  0x8a   : > { %v593_v15 = vpop.permute.xlu1 %592  ;;  %v513_v18 = vpop.permute.xlu0 %512 }
  0x8b   : > { %v686_v35 = vmul.f32 %v593_v15, %v462_v19  ;;  %v670_v37 = vmul.f32 %v513_v18, %v446_v21  ;;  %v452_v18 = vmul.f32 %v3721_v13, %v3481_v23  ;;  %v455_v23 = vmul.f32 %v3721_v13, %v3515_v39 }
  0x8e   : > { %v598_v29 = vpop.permute.xlu1 %597  ;;  %v518_v30 = vpop.permute.xlu0 %517 }
  0x8f   : > { %v687_v28 = vmul.f32 %v598_v29, %v463_v24  ;;  %v671_v40 = vmul.f32 %v518_v30, %v447_v25  ;;  %v468_v29 = vmul.f32 %v3721_v13, %v3661_v6  ;;  %v471_v6 = vmul.f32 %v3721_v13, %v3679_v26 }
  0x91   : > { %v702_v41 = vpack.c.bf16 %v671_v40, %v670_v37  ;;  %v710_v9 = vpack.c.bf16 %v687_v28, %v686_v35  ;;  %v454_v37 = vmul.f32 %v3721_v13, %v3506_v34  ;;  %v457_v34 = vmul.f32 %v3721_v13, %v3537_v51 }
  0x92   : > { %v528_v42 = vpop.permute.xlu1 %527  ;;  %v523_v45 = vpop.permute.xlu0 %522 }
  0x93   : > { %v673_v10 = vmul.f32 %v528_v42, %v449_v31  ;;  %v672_v47 = vmul.f32 %v523_v45, %v448_v33  ;;  %3086 = vmatprep.mubr.msk.bf16.mxu0 %vm5925_vm0, %v702_v41  ;;  %3102 = vmatprep.mubr.msk.bf16.mxu1 %vm5925_vm0, %v710_v9  ;;  %v470_v42 = vmul.f32 %v3721_v13, %v3673_v20 }
  0x94   : > { %v473_v20 = vmul.f32 %v3721_v13, %v3691_v38 }
  0x95   : > { %v703_v12 = vpack.c.bf16 %v673_v10, %v672_v47 }
  0x96   : > { %v608_v48 = vpop.permute.xlu1 %607  ;;  %v603_v52 = vpop.permute.xlu0 %602 }
  0x97   : > { %v689_v53 = vmul.f32 %v608_v48, %v465_v36  ;;  %v688_v54 = vmul.f32 %v603_v52, %v464_v11  ;;  %3087 = vmatmul.mubr.msk.bf16.vlgmr.msra.gmra.mrb[0].mxu0 %vm5925_vm0, %v703_v12  ;;  %v456_v11 = vmul.f32 %v3721_v13, %v3528_v46  ;;  %v459_v46 = vmul.f32 %v3721_v13, %v3555_v61 }
  0x99   : > { %v711_v59 = vpack.c.bf16 %v689_v53, %v688_v54  ;;  %v472_v54 = vmul.f32 %v3721_v13, %v3685_v32  ;;  %v475_v32 = vmul.f32 %v3721_v13, %v3703_v49 }
  0x9a   : > { %v538_v60 = vpop.permute.xlu1 %537  ;;  %v533_v63 = vpop.permute.xlu0 %532 }
  0x9b   : > { %v675_v0 = vmul.f32 %v538_v60, %v451_v56  ;;  %v674_v2 = vmul.f32 %v533_v63, %v450_v50  ;;  %3103 = vmatmul.mubr.msk.bf16.vlgmr.msra.gmra.mrb[0].mxu1 %vm5925_vm0, %v711_v59  ;;  %v458_v63 = vmul.f32 %v3721_v13, %v3549_v57  ;;  %v461_v57 = vmul.f32 %v3721_v13, %v3582_v17 }
  0x9d   : > { %v704_v5 = vpack.c.bf16 %v675_v0, %v674_v2 }
  0x9e   : > { %v618_v7 = vpop.permute.xlu1 %617  ;;  %v613_v8 = vpop.permute.xlu0 %612 }
  0x9f   : > { %v691_v22 = vmul.f32 %v618_v7, %v467_v43  ;;  %v690_v15 = vmul.f32 %v613_v8, %v466_v4  ;;  %3090 = vmatprep.mubr.msk.bf16.mxu0 %vm5925_vm0, %v704_v5  ;;  %v474_v5 = vmul.f32 %v3721_v13, %v3697_v44  ;;  %v477_v44 = vmul.f32 %v3721_v13, %v3715_v62 }
  0xa1   : > { %v712_v19 = vpack.c.bf16 %v691_v22, %v690_v15 }
  0xa2   : > { %v548_v21 = vpop.permute.xlu1 %547  ;;  %v543_v24 = vpop.permute.xlu0 %542 }
  0xa3   : > { %v677_v1 = vmul.f32 %v548_v21, %v453_v16  ;;  %v676_v25 = vmul.f32 %v543_v24, %v452_v18  ;;  %3106 = vmatprep.mubr.msk.bf16.mxu1 %vm5925_vm0, %v712_v19  ;;  %v460_v16 = vmul.f32 %v3721_v13, %v3567_v3 }
  0xa5   : > { %v705_v30 = vpack.c.bf16 %v677_v1, %v676_v25  ;;  %v476_v1 = vmul.f32 %v3721_v13, %v3709_v55 }
  0xa6   : > { %v628_v31 = vpop.permute.xlu1 %627  ;;  %v623_v33 = vpop.permute.xlu0 %622 }
  0xa7   : > { %v693_v27 = vmul.f32 %v628_v31, %v469_v58  ;;  %v692_v35 = vmul.f32 %v623_v33, %v468_v29  ;;  %3091 = vmatmul.mubr.msk.bf16.gmra.mrb[4].mxu0 %vm5925_vm0, %v705_v30  ;;  %v3806_v33 = vld [vmem:[%s5921_s4] ss:$0 sm:$0xff] }
  0xa9   : > { %v713_v28 = vpack.c.bf16 %v693_v27, %v692_v35 }
  0xaa   : > { %v558_v40 = vpop.permute.xlu1 %557  ;;  %v553_v41 = vpop.permute.xlu0 %552 }
  0xab   : > { %v679_v14 = vmul.f32 %v558_v40, %v455_v23  ;;  %v678_v9 = vmul.f32 %v553_v41, %v454_v37  ;;  %3107 = vmatmul.mubr.msk.bf16.gmra.mrb[4].mxu1 %vm5925_vm0, %v713_v28 }
  0xad   : > { %v706_v45 = vpack.c.bf16 %v679_v14, %v678_v9 }
  0xae   : > { %v638_v36 = vpop.permute.xlu1 %637  ;;  %v633_v10 = vpop.permute.xlu0 %632 }
  0xaf   : > { %v695_v39 = vmul.f32 %v638_v36, %v471_v6  ;;  %v694_v47 = vmul.f32 %v633_v10, %v470_v42  ;;  %3094 = vmatprep.mubr.msk.bf16.mxu0 %vm5925_vm0, %v706_v45 }
  0xb1   : > { %v714_v12 = vpack.c.bf16 %v695_v39, %v694_v47 }
  0xb2   : > { %v568_v48 = vpop.permute.xlu1 %567  ;;  %v563_v52 = vpop.permute.xlu0 %562 }
  0xb3   : > { %v681_v26 = vmul.f32 %v568_v48, %v457_v34  ;;  %v680_v53 = vmul.f32 %v563_v52, %v456_v11  ;;  %3110 = vmatprep.mubr.msk.bf16.mxu1 %vm5925_vm0, %v714_v12 }
  0xb5   : > { %v707_v56 = vpack.c.bf16 %v681_v26, %v680_v53 }
  0xb6   : > { %v648_v50 = vpop.permute.xlu1 %647  ;;  %v643_v59 = vpop.permute.xlu0 %642 }
  0xb7   : > { %v697_v51 = vmul.f32 %v648_v50, %v473_v20  ;;  %v696_v60 = vmul.f32 %v643_v59, %v472_v54  ;;  %3095 = vmatmul.mubr.msk.bf16.gmra.mrb[8].mxu0 %vm5925_vm0, %v707_v56 }
  0xb9   : > { %v715_v0 = vpack.c.bf16 %v697_v51, %v696_v60 }
  0xba   : > { %v578_v2 = vpop.permute.xlu1 %577  ;;  %v573_v43 = vpop.permute.xlu0 %572 }
  0xbb   : > { %v683_v38 = vmul.f32 %v578_v2, %v459_v46  ;;  %v682_v4 = vmul.f32 %v573_v43, %v458_v63  ;;  %3111 = vmatmul.mubr.msk.bf16.gmra.mrb[8].mxu1 %vm5925_vm0, %v715_v0 }
  0xbd   : > { %v708_v7 = vpack.c.bf16 %v683_v38, %v682_v4 }
  0xbe   : > { %v658_v8 = vpop.permute.xlu1 %657  ;;  %v653_v22 = vpop.permute.xlu0 %652 }
  0xbf   : > { %v699_v61 = vmul.f32 %v658_v8, %v475_v32  ;;  %v698_v15 = vmul.f32 %v653_v22, %v474_v5  ;;  %3098 = vmatprep.mubr.msk.bf16.mxu0 %vm5925_vm0, %v708_v7 }
  0xc1   : > { %v716_v18 = vpack.c.bf16 %v699_v61, %v698_v15 }
  0xc2   : > { %v588_v19 = vpop.permute.xlu1 %587  ;;  %v583_v21 = vpop.permute.xlu0 %582 }
  0xc3   : > { %v685_v49 = vmul.f32 %v588_v19, %v461_v57  ;;  %v684_v24 = vmul.f32 %v583_v21, %v460_v16  ;;  %3114 = vmatprep.mubr.msk.bf16.mxu1 %vm5925_vm0, %v716_v18 }
  0xc5   : > { %v709_v25 = vpack.c.bf16 %v685_v49, %v684_v24 }
  0xc6   : > { %v668_v58 = vpop.permute.xlu1 %667  ;;  %v663_v29 = vpop.permute.xlu0 %662 }
  0xc7   : > { %v701_v17 = vmul.f32 %v668_v58, %v477_v44  ;;  %v700_v30 = vmul.f32 %v663_v29, %v476_v1  ;;  %3099 = vmatmul.mubr.msk.bf16.gmra.mrb[12].mxu0 %vm5925_vm0, %v709_v25 }
  0xc9   : > { %v717_v3 = vpack.c.bf16 %v701_v17, %v700_v30 }
  0xcb   : > { %3115 = vmatmul.mubr.msk.bf16.gmra.mrb[12].mxu1 %vm5925_vm0, %v717_v3 }
 0x16a   : > { %v3088_v31 = vpop.f32.mrb[0].mxu0 }
 0x16b   : > { %v823_v62 = vpop.f32.mrb[1].mxu0  ;;  %v832_v55 = vadd.f32 %v3088_v31, %v3806_v33 }
 0x16c   : > { %v3089_v27 = vpop.f32.mrb[2].mxu0  ;;  %v824_v23 = vadd.f32 %v3806_v33, %v823_v62 }
 0x16d   : > { %v835_v13 = vadd.f32 %v3089_v27, %v3806_v33  ;;  %v826_v35 = vpop.f32.mrb[3].mxu0 }
 0x16e   : > { %v827_v37 = vadd.f32 %v3806_v33, %v826_v35  ;;  %v3104_v28 = vpop.f32.mrb[0].mxu1 }
 0x16f   : > { %v951_v40 = vpack.c.bf16 %v835_v13, %v832_v55  ;;  %v887_v41 = vpop.f32.mrb[1].mxu1  ;;  %v896_v6 = vadd.f32 %v3104_v28, %v3806_v33 }
 0x170   : > { %v950_v14 = vpack.c.bf16 %v827_v37, %v824_v23  ;;  %v3105_v9 = vpop.f32.mrb[2].mxu1  ;;  %v888_v36 = vadd.f32 %v3806_v33, %v887_v41 }
 0x171   : > { %968 = vst.msk [vmem:[#allocation2 + $0x8] sm:$0xff] %vm966_vm1, %v951_v40  ;;  %v899_v42 = vadd.f32 %v3105_v9, %v3806_v33  ;;  %v890_v45 = vpop.f32.mrb[3].mxu1 }
 0x172   : > { %967 = vst.msk [vmem:[#allocation2] sm:$0xff] %vm966_vm1, %v950_v14  ;;  %v891_v10 = vadd.f32 %v3806_v33, %v890_v45 }
 0x173   : > { %v959_v39 = vpack.c.bf16 %v899_v42, %v896_v6 }
 0x174   : > { %v958_v47 = vpack.c.bf16 %v891_v10, %v888_v36 }
 0x175   : > { %976 = vst.msk [vmem:[#allocation2 + $0x48] sm:$0xff] %vm966_vm1, %v959_v39 }
 0x176   : > { %975 = vst.msk [vmem:[#allocation2 + $0x40] sm:$0xff] %vm966_vm1, %v958_v47 }
 0x17a   : > { %v3092_v34 = vpop.f32.mrb[4].mxu0 }
 0x17b   : > { %v839_v11 = vpop.f32.mrb[5].mxu0  ;;  %v848_v48 = vadd.f32 %v3092_v34, %v3806_v33 }
 0x17c   : > { %v3093_v12 = vpop.f32.mrb[6].mxu0  ;;  %v840_v53 = vadd.f32 %v3806_v33, %v839_v11 }
 0x17d   : > { %v851_v52 = vadd.f32 %v3093_v12, %v3806_v33  ;;  %v842_v26 = vpop.f32.mrb[7].mxu0 }
 0x17e   : > { %v843_v20 = vadd.f32 %v3806_v33, %v842_v26  ;;  %v3108_v54 = vpop.f32.mrb[4].mxu1 }
 0x17f   : > { %v953_v56 = vpack.c.bf16 %v851_v52, %v848_v48  ;;  %v903_v50 = vpop.f32.mrb[5].mxu1  ;;  %v912_v60 = vadd.f32 %v3108_v54, %v3806_v33 }
 0x180   : > { %v952_v59 = vpack.c.bf16 %v843_v20, %v840_v53  ;;  %v3109_v51 = vpop.f32.mrb[6].mxu1  ;;  %v904_v0 = vadd.f32 %v3806_v33, %v903_v50 }
 0x181   : > { %970 = vst.msk [vmem:[#allocation2 + $0x18] sm:$0xff] %vm966_vm1, %v953_v56  ;;  %v915_v46 = vadd.f32 %v3109_v51, %v3806_v33  ;;  %v906_v63 = vpop.f32.mrb[7].mxu1 }
 0x182   : > { %969 = vst.msk [vmem:[#allocation2 + $0x10] sm:$0xff] %vm966_vm1, %v952_v59  ;;  %v907_v2 = vadd.f32 %v3806_v33, %v906_v63 }
 0x183   : > { %v961_v43 = vpack.c.bf16 %v915_v46, %v912_v60 }
 0x184   : > { %v960_v38 = vpack.c.bf16 %v907_v2, %v904_v0 }
 0x185   : > { %978 = vst.msk [vmem:[#allocation2 + $0x58] sm:$0xff] %vm966_vm1, %v961_v43 }
 0x186   : > { %977 = vst.msk [vmem:[#allocation2 + $0x50] sm:$0xff] %vm966_vm1, %v960_v38 }
 0x18a   : > { %v3096_v4 = vpop.f32.mrb[8].mxu0 }
 0x18b   : > { %v855_v32 = vpop.f32.mrb[9].mxu0  ;;  %v864_v7 = vadd.f32 %v3096_v4, %v3806_v33 }
 0x18c   : > { %v3097_v5 = vpop.f32.mrb[10].mxu0  ;;  %v856_v61 = vadd.f32 %v3806_v33, %v855_v32 }
 0x18d   : > { %v867_v8 = vadd.f32 %v3097_v5, %v3806_v33  ;;  %v858_v22 = vpop.f32.mrb[11].mxu0 }
 0x18e   : > { %v859_v15 = vadd.f32 %v3806_v33, %v858_v22  ;;  %v3112_v57 = vpop.f32.mrb[8].mxu1 }
 0x18f   : > { %v955_v16 = vpack.c.bf16 %v867_v8, %v864_v7  ;;  %v919_v18 = vpop.f32.mrb[9].mxu1  ;;  %v928_v49 = vadd.f32 %v3112_v57, %v3806_v33 }
 0x190   : > { %v954_v19 = vpack.c.bf16 %v859_v15, %v856_v61  ;;  %v3113_v21 = vpop.f32.mrb[10].mxu1  ;;  %v920_v1 = vadd.f32 %v3806_v33, %v919_v18 }
 0x191   : > { %972 = vst.msk [vmem:[#allocation2 + $0x28] sm:$0xff] %vm966_vm1, %v955_v16  ;;  %v931_v24 = vadd.f32 %v3113_v21, %v3806_v33  ;;  %v922_v44 = vpop.f32.mrb[11].mxu1 }
 0x192   : > { %971 = vst.msk [vmem:[#allocation2 + $0x20] sm:$0xff] %vm966_vm1, %v954_v19  ;;  %v923_v25 = vadd.f32 %v3806_v33, %v922_v44 }
 0x193   : > { %v963_v58 = vpack.c.bf16 %v931_v24, %v928_v49 }
 0x194   : > { %v962_v29 = vpack.c.bf16 %v923_v25, %v920_v1 }
 0x195   : > { %980 = vst.msk [vmem:[#allocation2 + $0x68] sm:$0xff] %vm966_vm1, %v963_v58 }
 0x196   : > { %979 = vst.msk [vmem:[#allocation2 + $0x60] sm:$0xff] %vm966_vm1, %v962_v29 }
 0x19a   : > { %v3100_v17 = vpop.f32.mrb[12].mxu0 }
 0x19b   : > { %v871_v30 = vpop.f32.mrb[13].mxu0  ;;  %v880_v31 = vadd.f32 %v3100_v17, %v3806_v33 }
 0x19c   : > { %v3101_v3 = vpop.f32.mrb[14].mxu0  ;;  %v872_v55 = vadd.f32 %v3806_v33, %v871_v30 }
 0x19d   : > { %v883_v62 = vadd.f32 %v3101_v3, %v3806_v33  ;;  %v874_v27 = vpop.f32.mrb[15].mxu0 }
 0x19e   : > { %v875_v13 = vadd.f32 %v3806_v33, %v874_v27  ;;  %v3116_v35 = vpop.f32.mrb[12].mxu1 }
 0x19f   : > { %v957_v23 = vpack.c.bf16 %v883_v62, %v880_v31  ;;  %v935_v37 = vpop.f32.mrb[13].mxu1  ;;  %v944_v41 = vadd.f32 %v3116_v35, %v3806_v33 }
 0x1a0   : > { %v956_v28 = vpack.c.bf16 %v875_v13, %v872_v55  ;;  %v3117_v40 = vpop.f32.mrb[14].mxu1  ;;  %v936_v6 = vadd.f32 %v3806_v33, %v935_v37 }
 0x1a1   : > { %974 = vst.msk [vmem:[#allocation2 + $0x38] sm:$0xff] %vm966_vm1, %v957_v23  ;;  %v947_v14 = vadd.f32 %v3117_v40, %v3806_v33  ;;  %v938_v9 = vpop.f32.mrb[15].mxu1 }
 0x1a2   : > { %973 = vst.msk [vmem:[#allocation2 + $0x30] sm:$0xff] %vm966_vm1, %v956_v28  ;;  %v939_v42 = vadd.f32 %v3806_v33, %v938_v9 }
 0x1a3   : > { %v965_v45 = vpack.c.bf16 %v947_v14, %v944_v41 }
 0x1a4   : > { %v964_v36 = vpack.c.bf16 %v939_v42, %v936_v6 }
 0x1a5   : > { %982 = vst.msk [vmem:[#allocation2 + $0x78] sm:$0xff] %vm966_vm1, %v965_v45 }
 0x1a6   : > { %981 = vst.msk [vmem:[#allocation2 + $0x70] sm:$0xff] %vm966_vm1, %v964_v36 }
 0x1a7 LB: >> { %s2878_s11 = sshll.u32 %s3337_s9, 3  ;;  %v5927_v10 = vmov 0   ;;  %s3341_s17 = smov 96   ;;  %vm5949_vm0 = vcmask 261120   ;;  %v1023_v24 = vlaneseq  ;;  %v1369_v14 = vld [vmem:[%s5919_s2] sm:$0xff]  ;;  %s3337_s9 = sphi %s3856_s9, %s988_s9  }
 0x1a8   : >> { %2097 = vmatprep.subr.bf16.mxu0 %v5927_v10  ;;  %2129 = vmatprep.mubr.bf16.mxu0 %v5927_v10  ;;  %s2879_s12 = sadd.s32 4294967295, %s2878_s11  ;;  %s3342_s18 = smov 64   ;;  %v3928_v17 = vstv %s2878_s11  ;;  %v2905_v9 = vld [vmem:[%s5919_s2 + $0x100] sm:$0xff] }
 0x1a9   : >> { %p991_p7 = scmp.gt.s32.totalorder %s2879_s12, 0  ;;  %p2880_p8 = scmp.lt.s32.totalorder %s2879_s12, 6  ;;  %v1041_v44 = vand.u32 127, %v1023_v24  ;;  %v3923_v1 = vshrl.u32 %v1023_v24, 7  ;;  %v2937_v45 = vld [vmem:[%s5919_s2 + $0x200] sm:$0xff] }
 0x1aa   : >> { %s2885_s19 = sshll.u32 %s3337_s9, 7  ;;  %s988_s9 = sadd.s32 1, %s3337_s9  }
 0x1ab   : >> { %s6163_s12 = smov (!%p991_p7, %s2879_s12), 0  ;;  %s997_s20 = sshra.s32 %s2885_s19, 4  ;;  %v1076_v58 = vshra.s32 %v1041_v44, 4  ;;  %v1043_v29 = vshra.s32 %v3923_v1, 4  ;;  %v1042_v3 = vadd.s32 128, %v1041_v44  ;;  %v1025_v23 = vadd.s32 8, %v3923_v1 }
 0x1ac   : >> { %s6165_s12 = smov (!%p2880_p8, %s6163_s12), 6  ;;  %s2887_s24 = sshll.u32 %s997_s20, 3  ;;  %v3002_v44 = vld [vmem:[%s5919_s2 + $0x408] sm:$0xff] }
 0x1ad   : >> { %s2886_s13 = sshll.u32 %s6165_s12, 4  ;;  %s1000_s25 = scalar_lea.vmem [#allocation2], %s2887_s24  ;;  %v1078_v30 = vstv %s6165_s12  ;;  %v1060_v62 = vadd.s32 %v3928_v17, %v1043_v29  ;;  %v1077_v27 = vshra.s32 %v1042_v3, 4  ;;  %v1044_v28 = vshra.s32 %v1025_v23, 4 }
 0x1ae   : >> { %s1009_s14 = sshra.s32 %s2886_s13, 4  ;;  %v1001_v15 = vld [vmem:[%s1000_s25] sm:$0xff]  ;;  %v1002_v57 = vld [vmem:[%s1000_s25 + $0x8] sm:$0xff]  ;;  %v1003_v16 = vld [vmem:[%s1000_s25 + $0x10] sm:$0xff]  ;;  %v3932_v31 = vadd.s32 %v1078_v30, %v1076_v58  ;;  %v1027_v29 = vadd.s32 24, %v3923_v1  ;;  %s2734_s12 = sshra.s32 %s2885_s19, 7 }
 0x1af   : >> { %s2888_s15 = sshll.u32 %s1009_s14, 3  ;;  %v1004_v18 = vld [vmem:[%s1000_s25 + $0x18] sm:$0xff]  ;;  %v1005_v19 = vld [vmem:[%s1000_s25 + $0x20] sm:$0xff]  ;;  %v1006_v21 = vld [vmem:[%s1000_s25 + $0x28] sm:$0xff]  ;;  %v3936_v13 = vadd.s32 %v1078_v30, %v1077_v27  ;;  %v2889_v35 = vadd.s32 4294967295, %v1060_v62  ;;  %v1061_v41 = vadd.s32 %v3928_v17, %v1044_v28  ;;  %s3055_s13 = sshll.u32 %s2734_s12, 3 }
 0x1b0   : >> { %s3869_s16 = scalar_lea.vmem [#allocation2], %s2888_s15  ;;  %v1007_v49 = vld [vmem:[%s1000_s25 + $0x30] sm:$0xff]  ;;  %v1008_v25 = vld [vmem:[%s1000_s25 + $0x38] sm:$0xff]  ;;  %v1273_v55 = vsub.s32 %v3932_v31, %v1060_v62  ;;  %s2737_s14 = scalar_lea.vmem %s3486_s23, %s3055_s13 }
 0x1b1   : >> { %v1013_v33 = vld [vmem:[%s3869_s16] sm:$0xff]  ;;  %v1015_v39 = vld [vmem:[%s3869_s16 + $0x10] sm:$0xff]  ;;  %v1014_v47 = vld [vmem:[%s3869_s16 + $0x8] sm:$0xff]  ;;  %v1274_v40 = vsub.s32 %v3936_v13, %v1060_v62  ;;  %vm1097_vm2 = vcmp.gt.s32.totalorder %v2889_v35, 0  ;;  %v1275_v6 = vsub.s32 %v3932_v31, %v1061_v41  ;;  %p985_p9 = scmp.ge.s32.totalorder %s988_s9, 2  }
 0x1b2   : >> { %2023 = vrot.lane.b32.xlu0 %v1013_v33, %s3341_s17  ;;  %2027 = vrot.lane.b32.xlu1 %v1015_v39, %s3341_s17  ;;  %v1016_v34 = vld [vmem:[%s3869_s16 + $0x18] sm:$0xff]  ;;  %v1017_v11 = vld [vmem:[%s3869_s16 + $0x20] sm:$0xff]  ;;  %v3939_v37 = vadd.s32 2, %v1273_v55  ;;  %v1098_v42 = vsel %vm1097_vm2, %v2889_v35, 0 }
 0x1b3   : >> { %v1018_v12 = vld [vmem:[%s3869_s16 + $0x28] sm:$0xff]  ;;  %v1019_v48 = vld [vmem:[%s3869_s16 + $0x30] sm:$0xff]  ;;  %v1020_v52 = vld [vmem:[%s3869_s16 + $0x38] sm:$0xff]  ;;  %v3956_v36 = vadd.s32 2, %v1274_v40  ;;  %vm1129_vm8 = vcmp.lt.s32.totalorder %v1098_v42, 13 }
 0x1b4   : >> { %v1021_v26 = vld [vmem:[%s3869_s16 + $0x40] sm:$0xff]  ;;  %v1022_v53 = vld [vmem:[%s3869_s16 + $0x48] sm:$0xff]  ;;  %vm1337_vm3 = vcmp.eq.s32.totalorder %v3939_v37, 0  ;;  %vm1465_vm4 = vcmp.eq.s32.totalorder %v3939_v37, 1  ;;  %vm1594_vm5 = vcmp.eq.s32.totalorder %v3939_v37, 2  ;;  %vm1723_vm13 = vcmp.eq.s32.totalorder %v3939_v37, 3 }
 0x1b5   : >> { %vm1338_vm6 = vcmp.eq.s32.totalorder %v3956_v36, 0  ;;  %vm1466_vm7 = vcmp.eq.s32.totalorder %v3956_v36, 1  ;;  %vm1595_vm11 = vcmp.eq.s32.totalorder %v3956_v36, 2  ;;  %vm1852_vm15 = vcmp.eq.s32.totalorder %v3939_v37, 4  ;;  %v3003_v30 = vld [vmem:[%s5919_s2 + $0x410] sm:$0xff]  ;;  %v1372_v62 = vld [vmem:[%s5919_s2 + $0x18] sm:$0xff] }
 0x1b6   : >> { %2025 = vrot.lane.b32.xlu0 %v1014_v47, %s3341_s17  ;;  %2029 = vrot.lane.b32.xlu1 %v1016_v34, %s3341_s17  ;;  %vm1724_vm1 = vcmp.eq.s32.totalorder %v3956_v36, 3  ;;  %v2908_v27 = vld [vmem:[%s5919_s2 + $0x118] sm:$0xff] }
 0x1ba   : >> { %2031 = vrot.lane.b32.xlu0 %v1017_v11, %s3341_s17  ;;  %2033 = vrot.lane.b32.xlu1 %v1018_v12, %s3341_s17 }
 0x1be   : >> { %2035 = vrot.lane.b32.xlu0 %v1019_v48, %s3341_s17  ;;  %2037 = vrot.lane.b32.xlu1 %v1020_v52, %s3341_s17  ;;  %v2890_v48 = vadd.s32 4294967295, %v1061_v41  ;;  %v1371_v52 = vld [vmem:[%s5919_s2 + $0x10] sm:$0xff] }
 0x1c0   : >> { %vm1099_vm12 = vcmp.gt.s32.totalorder %v2890_v48, 0 }
 0x1c2   : >> { %2039 = vrot.lane.b32.xlu0 %v1021_v26, %s3341_s17  ;;  %2041 = vrot.lane.b32.xlu1 %v1022_v53, %s3341_s17  ;;  %v2907_v26 = vld [vmem:[%s5919_s2 + $0x110] sm:$0xff] }
 0x1c6   : >> { %2498 = vrot.lane.b32.xlu1 %v1013_v33, %s3342_s18  ;;  %2500 = vrot.lane.b32.xlu0 %v1014_v47, %s3342_s18  ;;  %v1401_v33 = vsel %vm1337_vm3, %v1369_v14, 0.0  ;;  %v3958_v47 = vadd.s32 2, %v1275_v6 }
 0x1c8   : >> { %vm1339_vm9 = vcmp.eq.s32.totalorder %v3958_v47, 0  ;;  %vm1467_vm10 = vcmp.eq.s32.totalorder %v3958_v47, 1  ;;  %vm1596_vm14 = vcmp.eq.s32.totalorder %v3958_v47, 2  ;;  %vm1725_vm3 = vcmp.eq.s32.totalorder %v3958_v47, 3 }
 0x1ca   : >> { %2502 = vrot.lane.b32.xlu1 %v1015_v39, %s3342_s18  ;;  %2506 = vrot.lane.b32.xlu0 %v1017_v11, %s3342_s18  ;;  %v1530_v39 = vsel %vm1465_vm4, %v2905_v9, 0.0  ;;  %v2906_v11 = vld [vmem:[%s5919_s2 + $0x108] sm:$0xff]  ;;  %vm1853_vm4 = vcmp.eq.s32.totalorder %v3956_v36, 4  ;;  %v1046_v9 = vshra.s32 %v1027_v29, 4 }
 0x1cb   : >> { %v1562_v53 = vadd.f32 %v1530_v39, %v1401_v33  ;;  %v1918_v23 = vsel %vm1853_vm4, %v3002_v44, 0.0  ;;  %v1373_v39 = vld [vmem:[%s5919_s2 + $0x20] sm:$0xff] }
 0x1cc   : >> { %v3005_v44 = vld [vmem:[%s5919_s2 + $0x420] sm:$0xff] }
 0x1ce   : >> { %2504 = vrot.lane.b32.xlu1 %v1016_v34, %s3342_s18  ;;  %v1370_v34 = vld [vmem:[%s5919_s2 + $0x8] sm:$0xff] }
 0x1d2   : >> { %2508 = vrot.lane.b32.xlu1 %v1018_v12, %s3342_s18  ;;  %v1659_v12 = vsel %vm1594_vm5, %v2937_v45, 0.0 }
 0x224   : >> { %v2024_v20 = vpop.permute.xlu0 %2023  ;;  %v2028_v59 = vpop.permute.xlu1 %2027 }
 0x225   : >> { %v2068_v54 = vsel %vm5949_vm0, %v2024_v20, 0  ;;  %v2074_v51 = vsel %vm5949_vm0, %v2028_v59, 0  ;;  %v1402_v20 = vsel %vm1338_vm6, %v1370_v34, 0.0  ;;  %v1532_v59 = vsel %vm1467_vm10, %v2907_v26, 0.0 }
 0x226   : >> { %2098 = vmatpush1.bf16.xpose.msra.mxu0 %v2068_v54  ;;  %v1531_v54 = vsel %vm1466_vm7, %v2906_v11, 0.0  ;;  %vm1854_vm7 = vcmp.eq.s32.totalorder %v3958_v47, 4  ;;  %v2909_v47 = vld [vmem:[%s5919_s2 + $0x120] sm:$0xff]  ;;  %v1063_v26 = vadd.s32 %v3928_v17, %v1046_v9 }
 0x227   : >> { %2099 = vmatprep.subr.bf16.mxu0 %v5927_v10  ;;  %v1919_v40 = vsel %vm1854_vm7, %v3003_v30, 0.0 }
 0x228   : >> { %v2026_v56 = vpop.permute.xlu0 %2025  ;;  %v2030_v60 = vpop.permute.xlu1 %2029 }
 0x229   : >> { %v2071_v50 = vsel %vm5949_vm0, %v2026_v56, 0  ;;  %v2077_v46 = vsel %vm5949_vm0, %v2030_v60, 0  ;;  %v2938_v56 = vld [vmem:[%s5919_s2 + $0x208] sm:$0xff]  ;;  %v2969_v60 = vld [vmem:[%s5919_s2 + $0x300] sm:$0xff] }
 0x22c   : >> { %v2032_v63 = vpop.permute.xlu0 %2031  ;;  %v2034_v2 = vpop.permute.xlu1 %2033 }
 0x22d   : >> { %v2080_v0 = vsel %vm5949_vm0, %v2032_v63, 0  ;;  %v2083_v43 = vsel %vm5949_vm0, %v2034_v2, 0  ;;  %v1563_v63 = vadd.f32 %v1531_v54, %v1402_v20  ;;  %v1276_v2 = vsub.s32 %v3936_v13, %v1061_v41 }
 0x22e   : >> { %2100 = vmatpush1.bf16.xpose.msra.mxu0 %v2071_v50  ;;  %v1403_v50 = vsel %vm1339_vm9, %v1371_v52, 0.0  ;;  %v2941_v52 = vld [vmem:[%s5919_s2 + $0x220] sm:$0xff] }
 0x22f   : >> { %2101 = vmatprep.subr.bf16.mxu0 %v5927_v10 }
 0x230   : >> { %v2036_v38 = vpop.permute.xlu0 %2035  ;;  %v2038_v32 = vpop.permute.xlu1 %2037 }
 0x231   : >> { %v2086_v4 = vsel %vm5949_vm0, %v2036_v38, 0  ;;  %v2089_v5 = vsel %vm5949_vm0, %v2038_v32, 0  ;;  %v1691_v38 = vadd.f32 %v1659_v12, %v1562_v53  ;;  %v1564_v32 = vadd.f32 %v1532_v59, %v1403_v50  ;;  %v2940_v12 = vld [vmem:[%s5919_s2 + $0x218] sm:$0xff] }
 0x234   : >> { %v2040_v7 = vpop.permute.xlu0 %2039  ;;  %v2042_v22 = vpop.permute.xlu1 %2041 }
 0x235   : >> { %v2092_v8 = vsel %vm5949_vm0, %v2040_v7, 0  ;;  %v2095_v61 = vsel %vm5949_vm0, %v2042_v22, 0  ;;  %v3001_v7 = vld [vmem:[%s5919_s2 + $0x400] sm:$0xff] }
 0x236   : >> { %2102 = vmatpush1.bf16.xpose.msra.mxu0 %v2074_v51  ;;  %v3980_v51 = vsel %vm1129_vm8, %v1098_v42, 13 }
 0x237   : >> { %2103 = vmatprep.subr.bf16.mxu0 %v5927_v10  ;;  %vm1161_vm5 = vcmp.ge.s32.totalorder %v3932_v31, %v3980_v51  ;;  %vm1162_vm10 = vcmp.ge.s32.totalorder %v3936_v13, %v3980_v51 }
 0x23e   : >> { %2104 = vmatpush1.bf16.xpose.msra.mxu0 %v2077_v46  ;;  %v2939_v46 = vld [vmem:[%s5919_s2 + $0x210] sm:$0xff] }
 0x23f   : >> { %2105 = vmatprep.subr.bf16.mxu0 %v5927_v10  ;;  %v1661_v22 = vsel %vm1596_vm14, %v2939_v46, 0.0 }
 0x240   : >> { %v1693_v24 = vadd.f32 %v1661_v22, %v1564_v32  ;;  %v4119_v32 = vadd.s32 40, %v3923_v1  ;;  %v1279_v22 = vsub.s32 %v3932_v31, %v1063_v26 }
 0x246   : >> { %2106 = vmatpush1.bf16.xpose.msra.mxu0 %v2080_v0  ;;  %v1100_v0 = vsel %vm1099_vm12, %v2890_v48, 0 }
 0x247   : >> { %2107 = vmatprep.subr.bf16.mxu0 %v5927_v10  ;;  %vm1131_vm2 = vcmp.lt.s32.totalorder %v1100_v0, 13 }
 0x24e   : >> { %2108 = vmatpush1.bf16.xpose.msra.mxu0 %v2083_v43  ;;  %v1026_v43 = vadd.s32 16, %v3923_v1 }
 0x24f   : >> { %2109 = vmatprep.subr.bf16.mxu0 %v5927_v10 }
 0x256   : >> { %2110 = vmatpush1.bf16.xpose.msra.mxu0 %v2086_v4  ;;  %v1660_v4 = vsel %vm1595_vm11, %v2938_v56, 0.0 }
 0x257   : >> { %2111 = vmatprep.subr.bf16.mxu0 %v5927_v10 }
 0x25e   : >> { %2112 = vmatpush1.bf16.xpose.msra.mxu0 %v2089_v5  ;;  %v1788_v5 = vsel %vm1723_vm13, %v2969_v60, 0.0 }
 0x25f   : >> { %2113 = vmatprep.subr.bf16.mxu0 %v5927_v10 }
 0x266   : >> { %2114 = vmatpush1.bf16.xpose.msra.mxu0 %v2092_v8  ;;  %v2970_v8 = vld [vmem:[%s5919_s2 + $0x308] sm:$0xff] }
 0x267   : >> { %2115 = vmatprep.subr.bf16.mxu0 %v5927_v10 }
 0x26e   : >> { %2116 = vmatpush1.bf16.xpose.msra.mxu0 %v2095_v61  ;;  %v1193_v61 = vadd.s32 3, %v3980_v51 }
 0x270   : >> { %vm1209_vm6 = vcmp.lt.s32.totalorder %v3932_v31, %v1193_v61  ;;  %vm1210_vm11 = vcmp.lt.s32.totalorder %v3936_v13, %v1193_v61 }
 0x271   : >> { %vm4057_vm13 = vmand %vm1161_vm5, %vm1209_vm6 }
 0x272   : >> { %vm4082_vm4 = vmand %vm1162_vm10, %vm1210_vm11 }
 0x275   : >> { %3033 = vmatmul.mubr.msk.bf16.vlgmr.msra.gmra.mrb[0].mxu0 %vm5949_vm0, %v1001_v15  ;;  %v2971_v15 = vld [vmem:[%s5919_s2 + $0x310] sm:$0xff] }
 0x276   : >> { %2139 = vmatprep.mubr.bf16.mxu0 %v5927_v10  ;;  %v1790_v58 = vsel %vm1725_vm3, %v2971_v15, 0.0 }
 0x277   : >> { %v1822_v28 = vadd.f32 %v1790_v58, %v1693_v24  ;;  %v1280_v24 = vsub.s32 %v3936_v13, %v1063_v26 }
 0x279   : >> { %v4065_v11 = vadd.f32 %v1919_v40, %v1822_v28  ;;  %v2942_v28 = vld [vmem:[%s5919_s2 + $0x228] sm:$0xff]  ;;  %v2911_v40 = vld [vmem:[%s5919_s2 + $0x130] sm:$0xff] }
 0x27d   : >> { %3034 = vmatmul.mubr.msk.bf16.gmra.mrb[4].mxu0 %vm5949_vm0, %v1002_v57  ;;  %v1692_v57 = vadd.f32 %v1660_v4, %v1563_v63  ;;  %v2972_v63 = vld [vmem:[%s5919_s2 + $0x318] sm:$0xff]  ;;  %v2892_v4 = vadd.s32 4294967295, %v1063_v26  ;;  %v2974_v26 = vld [vmem:[%s5919_s2 + $0x328] sm:$0xff] }
 0x27e   : >> { %2149 = vmatprep.mubr.bf16.mxu0 %v5927_v10 }
 0x285   : >> { %3035 = vmatmul.mubr.msk.bf16.gmra.mrb[8].mxu0 %vm5949_vm0, %v1003_v16  ;;  %v4005_v16 = vadd.s32 2, %v1276_v2  ;;  %v4109_v2 = vadd.s32 32, %v3923_v1 }
 0x286   : >> { %2159 = vmatprep.mubr.bf16.mxu0 %v5927_v10 }
 0x287   : >> { %vm1340_vm8 = vcmp.eq.s32.totalorder %v4005_v16, 0  ;;  %vm1468_vm9 = vcmp.eq.s32.totalorder %v4005_v16, 1  ;;  %vm1726_vm7 = vcmp.eq.s32.totalorder %v4005_v16, 3  ;;  %v1047_v58 = vshra.s32 %v4109_v2, 4 }
 0x288   : >> { %v1404_v6 = vsel %vm1340_vm8, %v1372_v62, 0.0  ;;  %v1533_v42 = vsel %vm1468_vm9, %v2908_v27, 0.0  ;;  %vm1855_vm8 = vcmp.eq.s32.totalorder %v4005_v16, 4  ;;  %v1791_v61 = vsel %vm1726_vm7, %v2972_v63, 0.0  ;;  %v1375_v27 = vld [vmem:[%s5919_s2 + $0x30] sm:$0xff] }
 0x289   : >> { %v1565_v48 = vadd.f32 %v1533_v42, %v1404_v6  ;;  %v4150_v62 = vadd.s32 2, %v1279_v22  ;;  %v4171_v6 = vadd.s32 2, %v1280_v24  ;;  %v1064_v63 = vadd.s32 %v3928_v17, %v1047_v58 }
 0x28b   : >> { %v1281_v24 = vsub.s32 %v3932_v31, %v1064_v63 }
 0x28d   : >> { %3036 = vmatmul.mubr.msk.bf16.gmra.mrb[12].mxu0 %vm5949_vm0, %v1004_v18  ;;  %v1045_v18 = vshra.s32 %v1026_v43, 4  ;;  %v3004_v43 = vld [vmem:[%s5919_s2 + $0x418] sm:$0xff] }
 0x28e   : >> { %2169 = vmatprep.mubr.bf16.mxu0 %v5927_v10 }
 0x28f   : >> { %v1062_v55 = vadd.s32 %v3928_v17, %v1045_v18  ;;  %v2910_v18 = vld [vmem:[%s5919_s2 + $0x128] sm:$0xff] }
 0x291   : >> { %v2891_v41 = vadd.s32 4294967295, %v1062_v55  ;;  %v1277_v14 = vsub.s32 %v3932_v31, %v1062_v55  ;;  %v1278_v36 = vsub.s32 %v3936_v13, %v1062_v55 }
 0x293   : >> { %vm1101_vm12 = vcmp.gt.s32.totalorder %v2891_v41, 0  ;;  %v4044_v33 = vadd.s32 2, %v1277_v14  ;;  %v4101_v46 = vadd.s32 2, %v1278_v36 }
 0x294   : >> { %v1102_v20 = vsel %vm1101_vm12, %v2891_v41, 0  ;;  %v4166_v41 = vadd.s32 48, %v3923_v1 }
 0x295   : >> { %3037 = vmatmul.mubr.msk.bf16.gmra.mrb[16].mxu0 %vm5949_vm0, %v1005_v19  ;;  %v1820_v19 = vadd.f32 %v1788_v5, %v1691_v38  ;;  %vm1469_vm3 = vcmp.eq.s32.totalorder %v4044_v33, 1  ;;  %vm1598_vm5 = vcmp.eq.s32.totalorder %v4044_v33, 2  ;;  %vm1133_vm9 = vcmp.lt.s32.totalorder %v1102_v20, 13  ;;  %v2973_v38 = vld [vmem:[%s5919_s2 + $0x320] sm:$0xff] }
 0x296   : >> { %2179 = vmatprep.mubr.bf16.mxu0 %v5927_v10  ;;  %v1534_v56 = vsel %vm1469_vm3, %v2909_v47, 0.0  ;;  %vm1727_vm10 = vcmp.eq.s32.totalorder %v4044_v33, 3  ;;  %vm1342_vm11 = vcmp.eq.s32.totalorder %v4101_v46, 0  ;;  %vm1470_vm12 = vcmp.eq.s32.totalorder %v4101_v46, 1 }
 0x297   : >> { %vm1471_vm3 = vcmp.eq.s32.totalorder %v4150_v62, 1  ;;  %vm1728_vm7 = vcmp.eq.s32.totalorder %v4101_v46, 3 }
 0x29d   : >> { %3038 = vmatmul.mubr.msk.bf16.gmra.mrb[20].mxu0 %vm5949_vm0, %v1006_v21  ;;  %v1917_v21 = vsel %vm1852_vm15, %v3001_v7, 0.0 }
 0x29e   : >> { %2189 = vmatprep.mubr.bf16.mxu0 %v5927_v10  ;;  %v4030_v35 = vadd.f32 %v1917_v21, %v1820_v19  ;;  %v1920_v19 = vsel %vm1855_vm8, %v3004_v43, 0.0  ;;  %v4139_v21 = vsel %vm1133_vm9, %v1102_v20, 13  ;;  %v1793_v43 = vsel %vm1728_vm7, %v2974_v26, 0.0 }
 0x29f   : >> { %v4156_v55 = vadd.s32 3, %v4139_v21  ;;  %vm1858_vm7 = vcmp.eq.s32.totalorder %v4150_v62, 4 }
 0x2a5   : >> { %3039 = vmatmul.mubr.msk.bf16.gmra.mrb[24].mxu0 %vm5949_vm0, %v1007_v49  ;;  %v1789_v49 = vsel %vm1724_vm1, %v2970_v8, 0.0  ;;  %vm1597_vm1 = vcmp.eq.s32.totalorder %v4005_v16, 2  ;;  %v1048_v16 = vshra.s32 %v4119_v32, 4 }
 0x2a6   : >> { %2199 = vmatprep.mubr.bf16.mxu0 %v5927_v10  ;;  %v1821_v3 = vadd.f32 %v1789_v49, %v1692_v57  ;;  %v1662_v51 = vsel %vm1597_vm1, %v2940_v12, 0.0  ;;  %v1374_v57 = vld [vmem:[%s5919_s2 + $0x28] sm:$0xff]  ;;  %v1792_v49 = vsel %vm1727_vm10, %v2973_v38, 0.0  ;;  %vm1599_vm1 = vcmp.eq.s32.totalorder %v4101_v46, 2  ;;  %v3013_v10 = vld [vmem:[%s5919_s2 + $0x460] sm:$0xff] }
 0x2a7   : >> { %v1694_v8 = vadd.f32 %v1662_v51, %v1565_v48  ;;  %v1406_v30 = vsel %vm1342_vm11, %v1374_v57, 0.0  ;;  %v1664_v12 = vsel %vm1599_vm1, %v2942_v28, 0.0  ;;  %v1376_v48 = vld [vmem:[%s5919_s2 + $0x38] sm:$0xff]  ;;  %vm1857_vm10 = vcmp.eq.s32.totalorder %v4101_v46, 4  ;;  %v3006_v38 = vld [vmem:[%s5919_s2 + $0x428] sm:$0xff]  ;;  %v2913_v46 = vld [vmem:[%s5919_s2 + $0x140] sm:$0xff] }
 0x2a8   : >> { %v4041_v45 = vadd.f32 %v1918_v23, %v1821_v3  ;;  %v1535_v3 = vsel %vm1470_vm12, %v2910_v18, 0.0  ;;  %vm1165_vm12 = vcmp.ge.s32.totalorder %v3932_v31, %v4139_v21  ;;  %vm1344_vm1 = vcmp.eq.s32.totalorder %v4171_v6, 0  ;;  %v2976_v18 = vld [vmem:[%s5919_s2 + $0x338] sm:$0xff] }
 0x2a9   : >> { %v1823_v29 = vadd.f32 %v1791_v61, %v1694_v8  ;;  %v1567_v42 = vadd.f32 %v1535_v3, %v1406_v30  ;;  %v1408_v2 = vsel %vm1344_vm1, %v1376_v48, 0.0  ;;  %vm1730_vm1 = vcmp.eq.s32.totalorder %v4171_v6, 3  ;;  %v3025_v48 = vld [vmem:[%s5919_s2 + $0x4c0] sm:$0xff] }
 0x2aa   : >> { %v4241_v3 = vadd.s32 %v3928_v17, %v1048_v16  ;;  %v4243_v28 = vadd.s32 2, %v1281_v24  ;;  %v3008_v16 = vld [vmem:[%s5919_s2 + $0x438] sm:$0xff]  ;;  %v6042_v34 = vsel %vm4082_vm4, %v4041_v45, -1e+30  ;;  %vm6045_vm4 = vcmask 261120  }
 0x2ab   : >> { %v4178_v47 = vadd.f32 %v1920_v19, %v1823_v29  ;;  %v3007_v19 = vld [vmem:[%s5919_s2 + $0x430] sm:$0xff]  ;;  %v1922_v29 = vsel %vm1857_vm10, %v3006_v38, 0.0  ;;  %vm1859_vm10 = vcmp.eq.s32.totalorder %v4171_v6, 4 }
 0x2ac   : >> { %v1923_v32 = vsel %vm1858_vm7, %v3007_v19, 0.0  ;;  %v3017_v19 = vld [vmem:[%s5919_s2 + $0x480] sm:$0xff] }
 0x2ad   : >> { %3040 = vmatmul.mubr.msk.bf16.gmra.mrb[28].mxu0 %vm5949_vm0, %v1008_v25  ;;  %v4011_v25 = vsel %vm1131_vm2, %v1100_v0, 13  ;;  %vm1341_vm2 = vcmp.eq.s32.totalorder %v4044_v33, 0  ;;  %v1663_v0 = vsel %vm1598_vm5, %v2941_v52, 0.0  ;;  %vm1600_vm5 = vcmp.eq.s32.totalorder %v4150_v62, 2 }
 0x2ae   : >> { %v4035_v37 = vadd.s32 3, %v4011_v25  ;;  %vm1163_vm14 = vcmp.ge.s32.totalorder %v3932_v31, %v4011_v25  ;;  %v1405_v54 = vsel %vm1341_vm2, %v1373_v39, 0.0  ;;  %vm1343_vm2 = vcmp.eq.s32.totalorder %v4150_v62, 0  ;;  %v2943_v39 = vld [vmem:[%s5919_s2 + $0x230] sm:$0xff] }
 0x2af   : >> { %v1566_v60 = vadd.f32 %v1534_v56, %v1405_v54  ;;  %v1407_v36 = vsel %vm1343_vm2, %v1375_v27, 0.0  ;;  %vm1164_vm8 = vcmp.ge.s32.totalorder %v3936_v13, %v4011_v25  ;;  %v2912_v54 = vld [vmem:[%s5919_s2 + $0x138] sm:$0xff]  ;;  %v1665_v51 = vsel %vm1600_vm5, %v2943_v39, 0.0 }
 0x2b0   : >> { %vm1211_vm15 = vcmp.lt.s32.totalorder %v3932_v31, %v4035_v37  ;;  %vm1212_vm9 = vcmp.lt.s32.totalorder %v3936_v13, %v4035_v37  ;;  %v2944_v56 = vld [vmem:[%s5919_s2 + $0x238] sm:$0xff]  ;;  %vm1166_vm2 = vcmp.ge.s32.totalorder %v3936_v13, %v4139_v21  ;;  %vm1472_vm5 = vcmp.eq.s32.totalorder %v4171_v6, 1 }
 0x2b1   : >> { %vm4097_vm6 = vmand %vm1163_vm14, %vm1211_vm15  ;;  %v1695_v15 = vadd.f32 %v1663_v0, %v1566_v60  ;;  %vm1856_vm14 = vcmp.eq.s32.totalorder %v4044_v33, 4  ;;  %vm1103_vm15 = vcmp.gt.s32.totalorder %v2892_v4, 0  ;;  %v1536_v33 = vsel %vm1471_vm3, %v2911_v40, 0.0  ;;  %v2975_v60 = vld [vmem:[%s5919_s2 + $0x330] sm:$0xff]  ;;  %v1377_v40 = vld [vmem:[%s5919_s2 + $0x40] sm:$0xff] }
 0x2b2   : >> { %v1921_v14 = vsel %vm1856_vm14, %v3005_v44, 0.0  ;;  %v1104_v9 = vsel %vm1103_vm15, %v2892_v4, 0  ;;  %v1568_v20 = vadd.f32 %v1536_v33, %v1407_v36  ;;  %vm1213_vm14 = vcmp.lt.s32.totalorder %v3932_v31, %v4156_v55 }
 0x2b3   : >> { %v1824_v23 = vadd.f32 %v1792_v49, %v1695_v15  ;;  %vm1135_vm11 = vcmp.lt.s32.totalorder %v1104_v9, 13  ;;  %vm1729_vm15 = vcmp.eq.s32.totalorder %v4150_v62, 3  ;;  %vm1214_vm3 = vcmp.lt.s32.totalorder %v3936_v13, %v4156_v55  ;;  %v2945_v62 = vld [vmem:[%s5919_s2 + $0x240] sm:$0xff] }
 0x2b4   : >> { %v1696_v0 = vadd.f32 %v1664_v12, %v1567_v42  ;;  %vm1601_vm0 = vcmp.eq.s32.totalorder %v4171_v6, 2  ;;  %v1136_v4 = vsel %vm1135_vm11, %v1104_v9, 13  ;;  %v1537_v8 = vsel %vm1472_vm5, %v2912_v54, 0.0  ;;  %v1378_v6 = vld [vmem:[%s5919_s2 + $0x48] sm:$0xff] }
 0x2b5   : >> { %v4188_v52 = vadd.f32 %v1921_v14, %v1824_v23  ;;  %v1666_v22 = vsel %vm1601_vm0, %v2944_v56, 0.0  ;;  %v1697_v61 = vadd.f32 %v1665_v51, %v1568_v20  ;;  %v1794_v15 = vsel %vm1729_vm15, %v2975_v60, 0.0  ;;  %v2914_v54 = vld [vmem:[%s5919_s2 + $0x148] sm:$0xff] }
 0x2b6   : >> { %v1569_v57 = vadd.f32 %v1537_v8, %v1408_v2  ;;  %v2893_v49 = vadd.s32 4294967295, %v1064_v63  ;;  %v1282_v44 = vsub.s32 %v3936_v13, %v1064_v63  ;;  %v1825_v58 = vadd.f32 %v1793_v43, %v1696_v0  ;;  %v2977_v0 = vld [vmem:[%s5919_s2 + $0x340] sm:$0xff] }
 0x2b7   : >> { %v1196_v27 = vadd.s32 3, %v1136_v4  ;;  %v1795_v23 = vsel %vm1730_vm1, %v2976_v18, 0.0  ;;  %v1826_v14 = vadd.f32 %v1794_v15, %v1697_v61  ;;  %v2894_v9 = vadd.s32 4294967295, %v4241_v3  ;;  %vm4272_vm1 = vmand %vm1164_vm8, %vm1212_vm9  ;;  %v2988_v61 = vld [vmem:[%s5919_s2 + $0x398] sm:$0xff] }
 0x2b8   : >> { %v1698_v30 = vadd.f32 %v1666_v22, %v1569_v57  ;;  %vm1105_vm0 = vcmp.gt.s32.totalorder %v2893_v49, 0  ;;  %vm1345_vm11 = vcmp.eq.s32.totalorder %v4243_v28, 0  ;;  %vm1473_vm15 = vcmp.eq.s32.totalorder %v4243_v28, 1  ;;  %v2946_v57 = vld [vmem:[%s5919_s2 + $0x248] sm:$0xff] }
 0x2b9   : >> { %v1106_v42 = vsel %vm1105_vm0, %v2893_v49, 0  ;;  %v4260_v36 = vadd.s32 2, %v1282_v44  ;;  %v1409_v12 = vsel %vm1345_vm11, %v1377_v40, 0.0  ;;  %v1538_v33 = vsel %vm1473_vm15, %v2913_v46, 0.0  ;;  %vm4288_vm11 = vmand %vm1165_vm12, %vm1213_vm14  ;;  %v2978_v40 = vld [vmem:[%s5919_s2 + $0x348] sm:$0xff]  ;;  %v2947_v46 = vld [vmem:[%s5919_s2 + $0x250] sm:$0xff] }
 0x2ba   : >> { %v1827_v39 = vadd.f32 %v1795_v23, %v1698_v30  ;;  %vm1602_vm5 = vcmp.eq.s32.totalorder %v4243_v28, 2  ;;  %v4276_v26 = vadd.f32 %v1922_v29, %v1825_v58  ;;  %vm1167_vm7 = vcmp.ge.s32.totalorder %v3932_v31, %v1136_v4  ;;  %vm4306_vm12 = vmand %vm1166_vm2, %vm1214_vm3  ;;  %v1386_v44 = vld [vmem:[%s5919_s2 + $0x88] sm:$0xff] }
 0x2bb   : >> { %vm1215_vm0 = vcmp.lt.s32.totalorder %v3932_v31, %v1196_v27  ;;  %v1924_v20 = vsel %vm1859_vm10, %v3008_v16, 0.0  ;;  %vm1168_vm8 = vcmp.ge.s32.totalorder %v3936_v13, %v1136_v4  ;;  %vm1216_vm9 = vcmp.lt.s32.totalorder %v3936_v13, %v1196_v27  ;;  %v2915_v27 = vld [vmem:[%s5919_s2 + $0x150] sm:$0xff]  ;;  %v3009_v16 = vld [vmem:[%s5919_s2 + $0x440] sm:$0xff] }
 0x2bc   : >> { %vm1137_vm15 = vcmp.lt.s32.totalorder %v1106_v42, 13  ;;  %v1570_v37 = vadd.f32 %v1538_v33, %v1409_v12  ;;  %v4310_v51 = vadd.f32 %v1923_v32, %v1826_v14  ;;  %v1667_v60 = vsel %vm1602_vm5, %v2945_v62, 0.0  ;;  %vm4318_vm10 = vmand %vm1167_vm7, %vm1215_vm0 }
 0x2bd   : >> { %vm1107_vm14 = vcmp.gt.s32.totalorder %v2894_v9, 0  ;;  %v1283_v63 = vsub.s32 %v3932_v31, %v4241_v3  ;;  %v4322_v21 = vadd.f32 %v1924_v20, %v1827_v39  ;;  %vm1731_vm2 = vcmp.eq.s32.totalorder %v4243_v28, 3  ;;  %vm4334_vm7 = vmand %vm1168_vm8, %vm1216_vm9  ;;  %v2979_v39 = vld [vmem:[%s5919_s2 + $0x350] sm:$0xff] }
 0x2be   : >> { %vm1346_vm3 = vcmp.eq.s32.totalorder %v4260_v36, 0  ;;  %vm1474_vm5 = vcmp.eq.s32.totalorder %v4260_v36, 1  ;;  %v5964_v2 = vmov 0  ;;  %v4339_v43 = vsel %vm1137_vm15, %v1106_v42, 13 }
 0x2bf   : >> { %v5965_v2 = vsel %vm4334_vm7, 4294967295, %v5964_v2  ;;  %v1410_v38 = vsel %vm1346_vm3, %v1378_v6, 0.0  ;;  %v1539_v8 = vsel %vm1474_vm5, %v2914_v54, 0.0  ;;  %v1284_v22 = vsub.s32 %v3936_v13, %v4241_v3  ;;  %v1379_v3 = vld [vmem:[%s5919_s2 + $0x50] sm:$0xff]  ;;  %v2916_v6 = vld [vmem:[%s5919_s2 + $0x158] sm:$0xff] }
 0x2c0   : >> { %v1699_v15 = vadd.f32 %v1667_v60, %v1570_v37  ;;  %vm1603_vm0 = vcmp.eq.s32.totalorder %v4260_v36, 2  ;;  %v1796_v49 = vsel %vm1731_vm2, %v2977_v0, 0.0  ;;  %v1108_v24 = vsel %vm1107_vm14, %v2894_v9, 0  ;;  %v1380_v37 = vld [vmem:[%s5919_s2 + $0x58] sm:$0xff]  ;;  %v3010_v0 = vld [vmem:[%s5919_s2 + $0x448] sm:$0xff] }
 0x2c1   : >> { %v4366_v58 = vadd.s32 3, %v4339_v43  ;;  %v1571_v29 = vadd.f32 %v1539_v8, %v1410_v38  ;;  %v1315_v30 = vadd.s32 2, %v1283_v63  ;;  %v1668_v23 = vsel %vm1603_vm0, %v2946_v57, 0.0  ;;  %v2948_v57 = vld [vmem:[%s5919_s2 + $0x258] sm:$0xff] }
 0x2c2   : >> { %vm1732_vm9 = vcmp.eq.s32.totalorder %v4260_v36, 3  ;;  %v4382_v14 = vadd.s32 2, %v1284_v22  ;;  %v1828_v32 = vadd.f32 %v1796_v49, %v1699_v15  ;;  %vm1139_vm14 = vcmp.lt.s32.totalorder %v1108_v24, 13 }
 0x2c3   : >> { %vm1347_vm2 = vcmp.eq.s32.totalorder %v1315_v30, 0  ;;  %vm1475_vm3 = vcmp.eq.s32.totalorder %v1315_v30, 1  ;;  %vm1604_vm0 = vcmp.eq.s32.totalorder %v1315_v30, 2  ;;  %vm1733_vm8 = vcmp.eq.s32.totalorder %v1315_v30, 3 }
 0x2c4   : >> { %v1411_v9 = vsel %vm1347_vm2, %v1379_v3, 0.0  ;;  %v1540_v42 = vsel %vm1475_vm3, %v2915_v27, 0.0  ;;  %v1700_v12 = vadd.f32 %v1668_v23, %v1571_v29  ;;  %v1797_v33 = vsel %vm1732_vm9, %v2978_v40, 0.0  ;;  %v2980_v23 = vld [vmem:[%s5919_s2 + $0x358] sm:$0xff] }
 0x2c5   : >> { %v1572_v62 = vadd.f32 %v1540_v42, %v1411_v9  ;;  %v1669_v20 = vsel %vm1604_vm0, %v2947_v46, 0.0  ;;  %v4403_v54 = vsel %vm1139_vm14, %v1108_v24, 13  ;;  %vm1348_vm2 = vcmp.eq.s32.totalorder %v4382_v14, 0 }
 0x2c6   : >> { %vm1476_vm3 = vcmp.eq.s32.totalorder %v4382_v14, 1  ;;  %v1049_v60 = vshra.s32 %v4166_v41, 4  ;;  %vm5966_vm9 = vcmp.eq.s32.totalorder %v4243_v28, 4  ;;  %vm1861_vm0 = vcmp.eq.s32.totalorder %v4260_v36, 4  ;;  %v3011_v41 = vld [vmem:[%s5919_s2 + $0x450] sm:$0xff] }
 0x2c7   : >> { %v1925_v63 = vsel %vm5966_vm9, %v3009_v16, 0.0  ;;  %v1701_v38 = vadd.f32 %v1669_v20, %v1572_v62  ;;  %v1798_v8 = vsel %vm1733_vm8, %v2979_v39, 0.0  ;;  %vm1217_vm14 = vcmp.lt.s32.totalorder %v3932_v31, %v4366_v58  ;;  %v1381_v20 = vld [vmem:[%s5919_s2 + $0x60] sm:$0xff] }
 0x2c8   : >> { %vm1862_vm5 = vcmp.eq.s32.totalorder %v1315_v30, 4  ;;  %v1412_v22 = vsel %vm1348_vm2, %v1380_v37, 0.0  ;;  %v1541_v28 = vsel %vm1476_vm3, %v2916_v6, 0.0  ;;  %v1829_v36 = vadd.f32 %v1797_v33, %v1700_v12  ;;  %v2917_v37 = vld [vmem:[%s5919_s2 + $0x160] sm:$0xff] }
 0x2c9   : >> { %v4423_v15 = vadd.s32 3, %v4403_v54  ;;  %vm1605_vm15 = vcmp.eq.s32.totalorder %v4382_v14, 2  ;;  %v4429_v49 = vadd.f32 %v1925_v63, %v1828_v32  ;;  %v1926_v24 = vsel %vm1861_vm0, %v3010_v0, 0.0  ;;  %v3012_v63 = vld [vmem:[%s5919_s2 + $0x458] sm:$0xff] }
 0x2ca   : >> { %v1830_v29 = vadd.f32 %v1798_v8, %v1701_v38  ;;  %v1066_v30 = vadd.s32 %v3928_v17, %v1049_v60  ;;  %v1927_v3 = vsel %vm1862_vm5, %v3011_v41, 0.0  ;;  %v1573_v27 = vadd.f32 %v1541_v28, %v1412_v22 }
 0x2cb   : >> { %vm1734_vm8 = vcmp.eq.s32.totalorder %v4382_v14, 3  ;;  %v1031_v40 = vadd.s32 56, %v3923_v1  ;;  %v1670_v46 = vsel %vm1605_vm15, %v2948_v57, 0.0  ;;  %v4439_v42 = vadd.f32 %v1926_v24, %v1829_v36 }
 0x2cc   : >> { %v2895_v16 = vadd.s32 4294967295, %v1066_v30  ;;  %v1285_v9 = vsub.s32 %v3932_v31, %v1066_v30  ;;  %v1286_v32 = vsub.s32 %v3936_v13, %v1066_v30  ;;  %vm5967_vm15 = vcmp.ge.s32.totalorder %v3932_v31, %v4339_v43  ;;  %v1382_v30 = vld [vmem:[%s5919_s2 + $0x68] sm:$0xff] }
 0x2cd   : >> { %vm4452_vm0 = vmand %vm5967_vm15, %vm1217_vm14  ;;  %v5968_v39 = vmov 0  ;;  %v4456_v12 = vadd.f32 %v1927_v3, %v1830_v29  ;;  %v1799_v33 = vsel %vm1734_vm8, %v2980_v23, 0.0  ;;  %vm5970_vm14 = vcmp.lt.s32.totalorder %v3936_v13, %v4366_v58 }
 0x2ce   : >> { %v5969_v39 = vsel %vm4452_vm0, 4294967295, %v5968_v39  ;;  %vm1109_vm9 = vcmp.gt.s32.totalorder %v2895_v16, 0  ;;  %v4458_v62 = vadd.s32 2, %v1285_v9  ;;  %vm5971_vm15 = vcmp.ge.s32.totalorder %v3936_v13, %v4339_v43  ;;  %v2949_v43 = vld [vmem:[%s5919_s2 + $0x260] sm:$0xff] }
 0x2cf   : >> { %vm4472_vm3 = vmand %vm5971_vm15, %vm5970_vm14  ;;  %v5972_v6 = vmov 0  ;;  %v1702_v60 = vadd.f32 %v1670_v46, %v1573_v27  ;;  %v1110_v0 = vsel %vm1109_vm9, %v2895_v16, 0  ;;  %v4479_v38 = vadd.s32 2, %v1286_v32  ;;  %v2981_v16 = vld [vmem:[%s5919_s2 + $0x360] sm:$0xff] }
 0x2d0   : >> { %v5973_v6 = vsel %vm4472_vm3, 4294967295, %v5972_v6  ;;  %v1050_v8 = vshra.s32 %v1031_v40, 4  ;;  %vm1141_vm8 = vcmp.lt.s32.totalorder %v1110_v0, 13  ;;  %vm1349_vm5 = vcmp.eq.s32.totalorder %v4458_v62, 0  ;;  %v2918_v40 = vld [vmem:[%s5919_s2 + $0x168] sm:$0xff] }
 0x2d1   : >> { %vm1477_vm2 = vcmp.eq.s32.totalorder %v4458_v62, 1  ;;  %vm5974_vm9 = vcmp.lt.s32.totalorder %v3932_v31, %v4423_v15  ;;  %vm5975_vm14 = vcmp.ge.s32.totalorder %v3932_v31, %v4403_v54  ;;  %v5976_v41 = vmov 0 }
 0x2d2   : >> { %vm4496_vm15 = vmand %vm5975_vm14, %vm5974_vm9  ;;  %v1413_v22 = vsel %vm1349_vm5, %v1381_v20, 0.0  ;;  %v1542_v28 = vsel %vm1477_vm2, %v2917_v37, 0.0  ;;  %v1032_v36 = vadd.s32 64, %v3923_v1  ;;  %vm5978_vm7 = vcmp.eq.s32.totalorder %v4382_v14, 4  ;;  %v2950_v20 = vld [vmem:[%s5919_s2 + $0x268] sm:$0xff] }
 0x2d3   : >> { %v5977_v41 = vsel %vm4496_vm15, 4294967295, %v5976_v41  ;;  %v1928_v24 = vsel %vm5978_vm7, %v3012_v63, 0.0  ;;  %v1574_v29 = vadd.f32 %v1542_v28, %v1413_v22  ;;  %v4510_v3 = vadd.s32 72, %v3923_v1 }
 0x2d4   : >> { %v1831_v27 = vadd.f32 %v1799_v33, %v1702_v60  ;;  %v4517_v23 = vsel %vm1141_vm8, %v1110_v0, 13  ;;  %vm5979_vm7 = vcmp.eq.s32.totalorder %v4458_v62, 2  ;;  %vm1350_vm9 = vcmp.eq.s32.totalorder %v4479_v38, 0 }
 0x2d5   : >> { %v1671_v14 = vsel %vm5979_vm7, %v2949_v43, 0.0  ;;  %vm1735_vm14 = vcmp.eq.s32.totalorder %v4458_v62, 3  ;;  %v1067_v9 = vadd.s32 %v3928_v17, %v1050_v8  ;;  %v4534_v32 = vadd.s32 80, %v3923_v1 }
 0x2d6   : >> { %v1414_v33 = vsel %vm1350_vm9, %v1382_v30, 0.0  ;;  %vm1478_vm8 = vcmp.eq.s32.totalorder %v4479_v38, 1  ;;  %vm1607_vm7 = vcmp.eq.s32.totalorder %v4479_v38, 2  ;;  %v1051_v37 = vshra.s32 %v1032_v36, 4 }
 0x2d7   : >> { %v4542_v60 = vadd.s32 3, %v4517_v23  ;;  %v1703_v63 = vadd.f32 %v1671_v14, %v1574_v29  ;;  %v1543_v0 = vsel %vm1478_vm8, %v2918_v40, 0.0  ;;  %v1052_v8 = vshra.s32 %v4510_v3, 4  ;;  %v1383_v14 = vld [vmem:[%s5919_s2 + $0x70] sm:$0xff] }
 0x2d8   : >> { %v4545_v43 = vadd.f32 %v1928_v24, %v1831_v27  ;;  %v1800_v22 = vsel %vm1735_vm14, %v2981_v16, 0.0  ;;  %v1575_v28 = vadd.f32 %v1543_v0, %v1414_v33  ;;  %v2896_v30 = vadd.s32 4294967295, %v1067_v9  ;;  %v2982_v24 = vld [vmem:[%s5919_s2 + $0x368] sm:$0xff]  ;;  %v2919_v33 = vld [vmem:[%s5919_s2 + $0x170] sm:$0xff] }
 0x2d9   : >> { %vm1864_vm9 = vcmp.eq.s32.totalorder %v4458_v62, 4  ;;  %v1672_v46 = vsel %vm1607_vm7, %v2950_v20, 0.0  ;;  %v1287_v36 = vsub.s32 %v3932_v31, %v1067_v9  ;;  %v1288_v57 = vsub.s32 %v3936_v13, %v1067_v9  ;;  %v3014_v9 = vld [vmem:[%s5919_s2 + $0x468] sm:$0xff] }
 0x2da   : >> { %vm1736_vm5 = vcmp.eq.s32.totalorder %v4479_v38, 3  ;;  %vm1111_vm14 = vcmp.gt.s32.totalorder %v2896_v30, 0  ;;  %v4560_v62 = vadd.s32 %v3928_v17, %v1051_v37  ;;  %v1832_v29 = vadd.f32 %v1800_v22, %v1703_v63 }
 0x2db   : >> { %v1112_v3 = vsel %vm1111_vm14, %v2896_v30, 0  ;;  %v4564_v27 = vadd.s32 2, %v1287_v36  ;;  %v1929_v40 = vsel %vm1864_vm9, %v3013_v10, 0.0  ;;  %v1704_v16 = vadd.f32 %v1672_v46, %v1575_v28  ;;  %v2951_v46 = vld [vmem:[%s5919_s2 + $0x270] sm:$0xff] }
 0x2dc   : >> { %v2897_v20 = vadd.s32 4294967295, %v4560_v62  ;;  %v1801_v37 = vsel %vm1736_vm5, %v2982_v24, 0.0  ;;  %v4579_v63 = vadd.s32 2, %v1288_v57  ;;  %vm5980_vm5 = vcmp.lt.s32.totalorder %v3936_v13, %v4423_v15  ;;  %v1384_v15 = vld [vmem:[%s5919_s2 + $0x78] sm:$0xff] }
 0x2dd   : >> { %vm1351_vm14 = vcmp.eq.s32.totalorder %v4564_v27, 0  ;;  %vm1479_vm7 = vcmp.eq.s32.totalorder %v4564_v27, 1  ;;  %vm1608_vm2 = vcmp.eq.s32.totalorder %v4564_v27, 2  ;;  %vm5981_vm15 = vcmp.ge.s32.totalorder %v3936_v13, %v4403_v54 }
 0x2de   : >> { %v1415_v10 = vsel %vm1351_vm14, %v1383_v14, 0.0  ;;  %vm4593_vm3 = vmand %vm5981_vm15, %vm5980_vm5  ;;  %v5982_v57 = vmov 0  ;;  %v4597_v0 = vadd.f32 %v1929_v40, %v1832_v29  ;;  %vm5984_vm9 = vcmp.eq.s32.totalorder %v4479_v38, 4  ;;  %v2920_v38 = vld [vmem:[%s5919_s2 + $0x178] sm:$0xff] }
 0x2df   : >> { %v5983_v57 = vsel %vm4593_vm3, 4294967295, %v5982_v57  ;;  %v1930_v22 = vsel %vm5984_vm9, %v3014_v9, 0.0  ;;  %v1544_v28 = vsel %vm1479_vm7, %v2919_v33, 0.0  ;;  %vm5985_vm8 = vcmp.lt.s32.totalorder %v3932_v31, %v4542_v60 }
 0x2e0   : >> { %vm5986_vm15 = vcmp.ge.s32.totalorder %v3932_v31, %v4517_v23  ;;  %v5987_v54 = vmov 0  ;;  %v1833_v30 = vadd.f32 %v1801_v37, %v1704_v16  ;;  %v1576_v36 = vadd.f32 %v1544_v28, %v1415_v10  ;;  %v2983_v16 = vld [vmem:[%s5919_s2 + $0x370] sm:$0xff] }
 0x2e1   : >> { %vm4612_vm5 = vmand %vm5986_vm15, %vm5985_vm8  ;;  %v1289_v24 = vsub.s32 %v3932_v31, %v4560_v62  ;;  %vm5989_vm9 = vcmp.lt.s32.totalorder %v1112_v3, 13  ;;  %v1673_v14 = vsel %vm1608_vm2, %v2951_v46, 0.0  ;;  %vm1352_vm14 = vcmp.eq.s32.totalorder %v4579_v63, 0 }
 0x2e2   : >> { %v5988_v54 = vsel %vm4612_vm5, 4294967295, %v5987_v54  ;;  %v4622_v29 = vsel %vm5989_vm9, %v1112_v3, 13  ;;  %v1290_v40 = vsub.s32 %v3936_v13, %v4560_v62  ;;  %vm1737_vm8 = vcmp.eq.s32.totalorder %v4564_v27, 3  ;;  %v2952_v3 = vld [vmem:[%s5919_s2 + $0x278] sm:$0xff] }
 0x2e3   : >> { %v1416_v9 = vsel %vm1352_vm14, %v1384_v15, 0.0  ;;  %vm1480_vm15 = vcmp.eq.s32.totalorder %v4579_v63, 1  ;;  %vm1609_vm7 = vcmp.eq.s32.totalorder %v4579_v63, 2  ;;  %v4643_v10 = vadd.s32 %v3928_v17, %v1052_v8 }
 0x2e4   : >> { %v1545_v37 = vsel %vm1480_vm15, %v2920_v38, 0.0  ;;  %v4645_v46 = vadd.f32 %v1930_v22, %v1833_v30  ;;  %v4648_v28 = vadd.s32 3, %v4622_v29  ;;  %v1705_v15 = vadd.f32 %v1673_v14, %v1576_v36  ;;  %v2984_v30 = vld [vmem:[%s5919_s2 + $0x378] sm:$0xff] }
 0x2e5   : >> { %v1577_v58 = vadd.f32 %v1545_v37, %v1416_v9  ;;  %vm5990_vm2 = vcmp.lt.s32.totalorder %v3936_v13, %v4542_v60  ;;  %vm5991_vm14 = vcmp.ge.s32.totalorder %v3936_v13, %v4517_v23  ;;  %v5992_v33 = vmov 0  ;;  %v3015_v23 = vld [vmem:[%s5919_s2 + $0x470] sm:$0xff]  ;;  %v1385_v60 = vld [vmem:[%s5919_s2 + $0x80] sm:$0xff]  ;;  %v3016_v14 = vld [vmem:[%s5919_s2 + $0x478] sm:$0xff] }
 0x2e6   : >> { %vm4656_vm9 = vmand %vm5991_vm14, %vm5990_vm2  ;;  %v1802_v8 = vsel %vm1737_vm8, %v2983_v16, 0.0  ;;  %v1674_v22 = vsel %vm1609_vm7, %v2952_v3, 0.0  ;;  %vm5994_vm15 = vcmp.gt.s32.totalorder %v2897_v20, 0  ;;  %v4666_v38 = vadd.s32 2, %v1289_v24 }
 0x2e7   : >> { %v5993_v33 = vsel %vm4656_vm9, 4294967295, %v5992_v33  ;;  %v1114_v36 = vsel %vm5994_vm15, %v2897_v20, 0  ;;  %vm1866_vm2 = vcmp.eq.s32.totalorder %v4564_v27, 4  ;;  %vm1738_vm8 = vcmp.eq.s32.totalorder %v4579_v63, 3  ;;  %v2921_v20 = vld [vmem:[%s5919_s2 + $0x180] sm:$0xff] }
 0x2e8   : >> { %v4681_v24 = vadd.s32 2, %v1290_v40  ;;  %vm1353_vm14 = vcmp.eq.s32.totalorder %v4666_v38, 0  ;;  %vm1481_vm15 = vcmp.eq.s32.totalorder %v4666_v38, 1  ;;  %v2953_v27 = vld [vmem:[%s5919_s2 + $0x280] sm:$0xff]  ;;  %v1834_v40 = vadd.f32 %v1802_v8, %v1705_v15 }
 0x2e9   : >> { %v1706_v16 = vadd.f32 %v1674_v22, %v1577_v58  ;;  %v1931_v9 = vsel %vm1866_vm2, %v3015_v23, 0.0  ;;  %v1803_v3 = vsel %vm1738_vm8, %v2984_v30, 0.0  ;;  %v1417_v37 = vsel %vm1353_vm14, %v1385_v60, 0.0  ;;  %v2985_v22 = vld [vmem:[%s5919_s2 + $0x380] sm:$0xff]  ;;  %v2922_v30 = vld [vmem:[%s5919_s2 + $0x188] sm:$0xff] }
 0x2ea   : >> { %v1546_v62 = vsel %vm1481_vm15, %v2921_v20, 0.0  ;;  %vm5995_vm3 = vcmp.lt.s32.totalorder %v1114_v36, 13  ;;  %vm5996_vm2 = vcmp.eq.s32.totalorder %v4666_v38, 2  ;;  %vm1867_vm8 = vcmp.eq.s32.totalorder %v4579_v63, 4  ;;  %v2954_v20 = vld [vmem:[%s5919_s2 + $0x288] sm:$0xff]  ;;  %v1387_v63 = vld [vmem:[%s5919_s2 + $0x90] sm:$0xff] }
 0x2eb   : >> { %v4705_v58 = vsel %vm5995_vm3, %v1114_v36, 13  ;;  %v1578_v15 = vadd.f32 %v1546_v62, %v1417_v37  ;;  %v1675_v8 = vsel %vm5996_vm2, %v2953_v27, 0.0  ;;  %vm1739_vm14 = vcmp.eq.s32.totalorder %v4666_v38, 3 }
 0x2ec   : >> { %vm1354_vm15 = vcmp.eq.s32.totalorder %v4681_v24, 0  ;;  %v2898_v36 = vadd.s32 4294967295, %v4643_v10  ;;  %v4719_v62 = vadd.f32 %v1931_v9, %v1834_v40  ;;  %v1835_v23 = vadd.f32 %v1803_v3, %v1706_v16 }
 0x2ed   : >> { %v1418_v60 = vsel %vm1354_vm15, %v1386_v44, 0.0  ;;  %v1291_v27 = vsub.s32 %v3932_v31, %v4643_v10  ;;  %vm5997_vm3 = vcmp.lt.s32.totalorder %v3932_v31, %v4648_v28  ;;  %vm5998_vm2 = vcmp.ge.s32.totalorder %v3932_v31, %v4622_v29 }
 0x2ee   : >> { %vm4732_vm5 = vmand %vm5998_vm2, %vm5997_vm3  ;;  %v5999_v37 = vmov 0  ;;  %v4737_v40 = vadd.s32 3, %v4705_v58  ;;  %v1707_v44 = vadd.f32 %v1675_v8, %v1578_v15  ;;  %vm1482_vm15 = vcmp.eq.s32.totalorder %v4681_v24, 1  ;;  %v2986_v8 = vld [vmem:[%s5919_s2 + $0x388] sm:$0xff] }
 0x2ef   : >> { %v6000_v37 = vsel %vm4732_vm5, 4294967295, %v5999_v37  ;;  %vm1611_vm7 = vcmp.eq.s32.totalorder %v4681_v24, 2  ;;  %v1932_v16 = vsel %vm1867_vm8, %v3016_v14, 0.0  ;;  %v1804_v9 = vsel %vm1739_vm14, %v2985_v22, 0.0 }
 0x2f0   : >> { %vm1868_vm9 = vcmp.eq.s32.totalorder %v4666_v38, 4  ;;  %v1547_v3 = vsel %vm1482_vm15, %v2922_v30, 0.0  ;;  %v1676_v4 = vsel %vm1611_vm7, %v2954_v20, 0.0  ;;  %vm1115_vm3 = vcmp.gt.s32.totalorder %v2898_v36, 0  ;;  %v2923_v20 = vld [vmem:[%s5919_s2 + $0x190] sm:$0xff] }
 0x2f1   : >> { %v1579_v18 = vadd.f32 %v1547_v3, %v1418_v60  ;;  %v1292_v15 = vsub.s32 %v3936_v13, %v4643_v10  ;;  %vm1740_vm8 = vcmp.eq.s32.totalorder %v4681_v24, 3  ;;  %v1116_v22 = vsel %vm1115_vm3, %v2898_v36, 0  ;;  %v2955_v36 = vld [vmem:[%s5919_s2 + $0x290] sm:$0xff] }
 0x2f2   : >> { %v1323_v30 = vadd.s32 2, %v1291_v27  ;;  %v4761_v60 = vadd.f32 %v1932_v16, %v1835_v23  ;;  %v1836_v10 = vadd.f32 %v1804_v9, %v1707_v44  ;;  %v1933_v3 = vsel %vm1868_vm9, %v3017_v19, 0.0 }
 0x2f3   : >> { %v1708_v14 = vadd.f32 %v1676_v4, %v1579_v18  ;;  %v1805_v23 = vsel %vm1740_vm8, %v2986_v8, 0.0  ;;  %vm1147_vm7 = vcmp.lt.s32.totalorder %v1116_v22, 13  ;;  %v4777_v44 = vadd.s32 2, %v1292_v15  ;;  %v2987_v4 = vld [vmem:[%s5919_s2 + $0x390] sm:$0xff]  ;;  %v1388_v15 = vld [vmem:[%s5919_s2 + $0x98] sm:$0xff]  ;;  %v3018_v8 = vld [vmem:[%s5919_s2 + $0x488] sm:$0xff] }
 0x2f4   : >> { %6001 = vst [vmem:[#allocation3_spill] sm:$0xff] %v4761_v60  ;;  %vm1355_vm2 = vcmp.eq.s32.totalorder %v1323_v30, 0  ;;  %vm1483_vm15 = vcmp.eq.s32.totalorder %v1323_v30, 1  ;;  %vm1226_vm14 = vcmp.lt.s32.totalorder %v3936_v13, %v4737_v40  ;;  %vm1612_vm9 = vcmp.eq.s32.totalorder %v1323_v30, 2  ;;  %v2926_v60 = vld [vmem:[%s5919_s2 + $0x1a8] sm:$0xff] }
 0x2f5   : >> { %v1419_v27 = vsel %vm1355_vm2, %v1387_v63, 0.0  ;;  %v1548_v38 = vsel %vm1483_vm15, %v2923_v20, 0.0  ;;  %vm1741_vm5 = vcmp.eq.s32.totalorder %v1323_v30, 3  ;;  %vm6002_vm0 = vcmp.lt.s32.totalorder %v3936_v13, %v4648_v28  ;;  %v2924_v28 = vld [vmem:[%s5919_s2 + $0x198] sm:$0xff] }
 0x2f6   : >> { %vm6003_vm8 = vcmp.ge.s32.totalorder %v3936_v13, %v4622_v29  ;;  %v6004_v18 = vmov 0  ;;  %v4794_v19 = vadd.f32 %v1933_v3, %v1836_v10  ;;  %vm1869_vm2 = vcmp.eq.s32.totalorder %v4681_v24, 4 }
 0x2f7   : >> { %vm4790_vm3 = vmand %vm6003_vm8, %vm6002_vm0  ;;  %v1580_v16 = vadd.f32 %v1548_v38, %v1419_v27  ;;  %v1677_v9 = vsel %vm1612_vm9, %v2955_v36, 0.0  ;;  %vm6007_vm0 = vcmp.lt.s32.totalorder %v3932_v31, %v4737_v40  ;;  %vm6008_vm15 = vcmp.ge.s32.totalorder %v3932_v31, %v4705_v58  ;;  %v1389_v40 = vld [vmem:[%s5919_s2 + $0xa0] sm:$0xff] }
 0x2f8   : >> { %v6005_v18 = vsel %vm4790_vm3, 4294967295, %v6004_v18  ;;  %6006 = vst [vmem:[#allocation4_spill] sm:$0xff] %v4794_v19  ;;  %vm4809_vm8 = vmand %vm6008_vm15, %vm6007_vm0  ;;  %v6009_v29 = vmov 0  ;;  %v1837_v63 = vadd.f32 %v1805_v23, %v1708_v14  ;;  %v4817_v10 = vsel %vm1147_vm7, %v1116_v22, 13  ;;  %v3019_v14 = vld [vmem:[%s5919_s2 + $0x490] sm:$0xff] }
 0x2f9   : >> { %v6010_v29 = vsel %vm4809_vm8, 4294967295, %v6009_v29  ;;  %v1053_v20 = vshra.s32 %v4534_v32, 4  ;;  %v1035_v3 = vadd.s32 88, %v3923_v1  ;;  %v1709_v36 = vadd.f32 %v1677_v9, %v1580_v16  ;;  %v2956_v32 = vld [vmem:[%s5919_s2 + $0x298] sm:$0xff] }
 0x2fa   : >> { %6011 = vst [vmem:[#allocation5_spill] sm:$0xff] %v6010_v29  ;;  %v1806_v27 = vsel %vm1741_vm5, %v2987_v4, 0.0  ;;  %vm1356_vm9 = vcmp.eq.s32.totalorder %v4777_v44, 0  ;;  %vm1484_vm0 = vcmp.eq.s32.totalorder %v4777_v44, 1  ;;  %vm1870_vm15 = vcmp.eq.s32.totalorder %v1323_v30, 4  ;;  %v1390_v29 = vld [vmem:[%s5919_s2 + $0xa8] sm:$0xff] }
 0x2fb   : >> { %v1420_v23 = vsel %vm1356_vm9, %v1388_v15, 0.0  ;;  %v1549_v38 = vsel %vm1484_vm0, %v2924_v28, 0.0  ;;  %vm1613_vm7 = vcmp.eq.s32.totalorder %v4777_v44, 2  ;;  %v1934_v16 = vsel %vm1869_vm2, %v3018_v8, 0.0 }
 0x2fc   : >> { %v4840_v9 = vadd.s32 3, %v4817_v10  ;;  %v1838_v15 = vadd.f32 %v1806_v27, %v1709_v36  ;;  %v1581_v28 = vadd.f32 %v1549_v38, %v1420_v23  ;;  %vm1742_vm5 = vcmp.eq.s32.totalorder %v4777_v44, 3 }
 0x2fd   : >> { %v1070_v22 = vadd.s32 %v3928_v17, %v1053_v20  ;;  %v1935_v4 = vsel %vm1870_vm15, %v3019_v14, 0.0  ;;  %v1678_v24 = vsel %vm1613_vm7, %v2956_v32, 0.0  ;;  %v1054_v8 = vshra.s32 %v1035_v3, 4  ;;  %v3020_v14 = vld [vmem:[%s5919_s2 + $0x498] sm:$0xff]  ;;  %v2957_v32 = vld [vmem:[%s5919_s2 + $0x2a0] sm:$0xff] }
 0x2fe   : >> { %v4850_v7 = vadd.f32 %v1934_v16, %v1837_v63  ;;  %vm1227_vm2 = vcmp.lt.s32.totalorder %v3932_v31, %v4840_v9  ;;  %v1807_v23 = vsel %vm1742_vm5, %v2988_v61, 0.0  ;;  %v4858_v20 = vadd.s32 96, %v3923_v1 }
 0x2ff   : >> { %v2899_v5 = vadd.s32 4294967295, %v1070_v22  ;;  %v1293_v36 = vsub.s32 %v3932_v31, %v1070_v22  ;;  %v1294_v27 = vsub.s32 %v3936_v13, %v1070_v22  ;;  %vm6013_vm15 = vcmp.ge.s32.totalorder %v3936_v13, %v4705_v58  ;;  %v2925_v58 = vld [vmem:[%s5919_s2 + $0x1a0] sm:$0xff] }
 0x300   : >> { %6012 = vst [vmem:[#allocation6_spill] sm:$0xff] %v4850_v7  ;;  %vm4866_vm7 = vmand %vm6013_vm15, %vm1226_vm14  ;;  %v6014_v30 = vmov 0  ;;  %v4870_v63 = vadd.f32 %v1935_v4, %v1838_v15  ;;  %v1710_v61 = vadd.f32 %v1678_v24, %v1581_v28  ;;  %v1071_v4 = vadd.s32 %v3928_v17, %v1054_v8 }
 0x301   : >> { %v6015_v30 = vsel %vm4866_vm7, 4294967295, %v6014_v30  ;;  %vm1117_vm9 = vcmp.gt.s32.totalorder %v2899_v5, 0  ;;  %v1325_v3 = vadd.s32 2, %v1293_v36  ;;  %v4888_v22 = vadd.s32 2, %v1294_v27 }
 0x302   : >> { %6016 = vst [vmem:[#allocation7_spill] sm:$0xff] %v6015_v30  ;;  %6017 = vst [vmem:[#allocation8_spill] sm:$0xff] %v4870_v63  ;;  %v1118_v38 = vsel %vm1117_vm9, %v2899_v5, 0  ;;  %v4892_v16 = vadd.s32 104, %v3923_v1  ;;  %vm6018_vm14 = vcmp.ge.s32.totalorder %v3932_v31, %v4817_v10  ;;  %v6019_v15 = vmov 0  ;;  %v3021_v63 = vld [vmem:[%s5919_s2 + $0x4a0] sm:$0xff] }
 0x303   : >> { %vm4900_vm15 = vmand %vm6018_vm14, %vm1227_vm2  ;;  %vm1149_vm9 = vcmp.lt.s32.totalorder %v1118_v38, 13  ;;  %vm1357_vm5 = vcmp.eq.s32.totalorder %v1325_v3, 0  ;;  %vm1485_vm0 = vcmp.eq.s32.totalorder %v1325_v3, 1  ;;  %vm1614_vm8 = vcmp.eq.s32.totalorder %v1325_v3, 2 }
 0x304   : >> { %v6020_v15 = vsel %vm4900_vm15, 4294967295, %v6019_v15  ;;  %v4907_v28 = vsel %vm1149_vm9, %v1118_v38, 13  ;;  %v1421_v24 = vsel %vm1357_vm5, %v1389_v40, 0.0  ;;  %v1550_v8 = vsel %vm1485_vm0, %v2925_v58, 0.0  ;;  %v2958_v40 = vld [vmem:[%s5919_s2 + $0x2a8] sm:$0xff] }
 0x305   : >> { %6021 = vst [vmem:[#allocation9_spill] sm:$0xff] %v6020_v15  ;;  %v1839_v36 = vadd.f32 %v1807_v23, %v1710_v61  ;;  %vm6022_vm3 = vcmp.eq.s32.totalorder %v4777_v44, 4  ;;  %v1582_v50 = vadd.f32 %v1550_v8, %v1421_v24  ;;  %v1679_v19 = vsel %vm1614_vm8, %v2957_v32, 0.0  ;;  %v2989_v44 = vld [vmem:[%s5919_s2 + $0x3a0] sm:$0xff] }
 0x306   : >> { %v1936_v27 = vsel %vm6022_vm3, %v3020_v14, 0.0  ;;  %vm1743_vm2 = vcmp.eq.s32.totalorder %v1325_v3, 3  ;;  %vm1358_vm3 = vcmp.eq.s32.totalorder %v4888_v22, 0  ;;  %v2900_v23 = vadd.s32 4294967295, %v1071_v4 }
 0x307   : >> { %v4925_v61 = vadd.s32 3, %v4907_v28  ;;  %v1295_v58 = vsub.s32 %v3932_v31, %v1071_v4  ;;  %v1055_v14 = vshra.s32 %v4858_v20, 4  ;;  %v1711_v24 = vadd.f32 %v1679_v19, %v1582_v50  ;;  %v2990_v50 = vld [vmem:[%s5919_s2 + $0x3a8] sm:$0xff] }
 0x308   : >> { %v1422_v8 = vsel %vm1358_vm3, %v1390_v29, 0.0  ;;  %vm1486_vm8 = vcmp.eq.s32.totalorder %v4888_v22, 1  ;;  %vm1615_vm0 = vcmp.eq.s32.totalorder %v4888_v22, 2  ;;  %v4935_v38 = vadd.f32 %v1936_v27, %v1839_v36  ;;  %v2927_v27 = vld [vmem:[%s5919_s2 + $0x1b0] sm:$0xff] }
 0x309   : >> { %v1808_v5 = vsel %vm1743_vm2, %v2989_v44, 0.0  ;;  %vm1872_vm5 = vcmp.eq.s32.totalorder %v1325_v3, 4  ;;  %v1551_v15 = vsel %vm1486_vm8, %v2926_v60, 0.0  ;;  %v1680_v30 = vsel %vm1615_vm0, %v2958_v40, 0.0  ;;  %v1391_v60 = vld [vmem:[%s5919_s2 + $0xb0] sm:$0xff] }
 0x30a   : >> { %6023 = vst [vmem:[#allocation10_spill] sm:$0xff] %v4935_v38  ;;  %v1583_v7 = vadd.f32 %v1551_v15, %v1422_v8  ;;  %vm1119_vm14 = vcmp.gt.s32.totalorder %v2900_v23, 0  ;;  %v1296_v20 = vsub.s32 %v3936_v13, %v1071_v4  ;;  %v1327_v29 = vadd.s32 2, %v1295_v58  ;;  %v2959_v3 = vld [vmem:[%s5919_s2 + $0x2b0] sm:$0xff]  ;;  %v2928_v8 = vld [vmem:[%s5919_s2 + $0x1b8] sm:$0xff] }
 0x30b   : >> { %v1120_v19 = vsel %vm1119_vm14, %v2900_v23, 0  ;;  %vm6024_vm2 = vcmp.lt.s32.totalorder %v3936_v13, %v4840_v9  ;;  %vm6025_vm8 = vcmp.ge.s32.totalorder %v3936_v13, %v4817_v10  ;;  %v6026_v4 = vmov 0  ;;  %v3022_v10 = vld [vmem:[%s5919_s2 + $0x4a8] sm:$0xff] }
 0x30c   : >> { %vm4956_vm0 = vmand %vm6025_vm8, %vm6024_vm2  ;;  %v1840_v15 = vadd.f32 %v1808_v5, %v1711_v24  ;;  %v1937_v36 = vsel %vm1872_vm5, %v3021_v63, 0.0  ;;  %vm1151_vm14 = vcmp.lt.s32.totalorder %v1120_v19, 13  ;;  %v1712_v44 = vadd.f32 %v1680_v30, %v1583_v7  ;;  %v1392_v24 = vld [vmem:[%s5919_s2 + $0xb8] sm:$0xff] }
 0x30d   : >> { %v6027_v4 = vsel %vm4956_vm0, 4294967295, %v6026_v4  ;;  %vm1873_vm3 = vcmp.eq.s32.totalorder %v4888_v22, 4  ;;  %vm1359_vm2 = vcmp.eq.s32.totalorder %v1327_v29, 0  ;;  %vm1487_vm8 = vcmp.eq.s32.totalorder %v1327_v29, 1 }
 0x30e   : >> { %6028 = vst [vmem:[#allocation11_spill] sm:$0xff] %v6027_v4  ;;  %vm6029_vm15 = vcmp.eq.s32.totalorder %v4888_v22, 3  ;;  %v4972_v5 = vsel %vm1151_vm14, %v1120_v19, 13  ;;  %v1423_v63 = vsel %vm1359_vm2, %v1391_v60, 0.0  ;;  %v1328_v23 = vadd.s32 2, %v1296_v20 }
 0x30f   : >> { %v1809_v9 = vsel %vm6029_vm15, %v2990_v50, 0.0  ;;  %v1552_v30 = vsel %vm1487_vm8, %v2927_v27, 0.0  ;;  %vm1616_vm9 = vcmp.eq.s32.totalorder %v1327_v29, 2  ;;  %v4982_v40 = vadd.f32 %v1937_v36, %v1840_v15  ;;  %v2960_v15 = vld [vmem:[%s5919_s2 + $0x2b8] sm:$0xff]  ;;  %v2991_v27 = vld [vmem:[%s5919_s2 + $0x3b0] sm:$0xff] }
 0x310   : >> { %v1938_v22 = vsel %vm1873_vm3, %v3022_v10, 0.0  ;;  %v1584_v58 = vadd.f32 %v1552_v30, %v1423_v63  ;;  %vm6030_vm14 = vcmp.lt.s32.totalorder %v3932_v31, %v4925_v61  ;;  %vm6031_vm2 = vcmp.ge.s32.totalorder %v3932_v31, %v4907_v28 }
 0x311   : >> { %vm4998_vm8 = vmand %vm6031_vm2, %vm6030_vm14  ;;  %v6032_v20 = vmov 0  ;;  %v1841_v50 = vadd.f32 %v1809_v9, %v1712_v44  ;;  %v5003_v19 = vadd.s32 3, %v4972_v5  ;;  %v1681_v60 = vsel %vm1616_vm9, %v2959_v3, 0.0  ;;  %v3023_v44 = vld [vmem:[%s5919_s2 + $0x4b0] sm:$0xff] }
 0x312   : >> { %v6033_v20 = vsel %vm4998_vm8, 4294967295, %v6032_v20  ;;  %v1072_v36 = vadd.s32 %v3928_v17, %v1055_v14  ;;  %vm1745_vm3 = vcmp.eq.s32.totalorder %v1327_v29, 3  ;;  %vm1360_vm2 = vcmp.eq.s32.totalorder %v1328_v23, 0  ;;  %v2992_v14 = vld [vmem:[%s5919_s2 + $0x3b8] sm:$0xff] }
 0x313   : >> { %6034 = vst [vmem:[#allocation12_spill] sm:$0xff] %v6033_v20  ;;  %vm1488_vm5 = vcmp.eq.s32.totalorder %v1328_v23, 1  ;;  %v1424_v10 = vsel %vm1360_vm2, %v1392_v24, 0.0  ;;  %vm1617_vm9 = vcmp.eq.s32.totalorder %v1328_v23, 2  ;;  %vm1746_vm15 = vcmp.eq.s32.totalorder %v1328_v23, 3 }
 0x314   : >> { %v1553_v9 = vsel %vm1488_vm5, %v2928_v8, 0.0  ;;  %v1713_v3 = vadd.f32 %v1681_v60, %v1584_v58  ;;  %v1682_v7 = vsel %vm1617_vm9, %v2960_v15, 0.0  ;;  %v5021_v32 = vadd.f32 %v1938_v22, %v1841_v50  ;;  %v3024_v22 = vld [vmem:[%s5919_s2 + $0x4b8] sm:$0xff]  ;;  %v1393_v60 = vld [vmem:[%s5919_s2 + $0xc0] sm:$0xff] }
 0x315   : >> { %v1585_v30 = vadd.f32 %v1553_v9, %v1424_v10  ;;  %v1810_v24 = vsel %vm1745_vm3, %v2991_v27, 0.0  ;;  %v2901_v8 = vadd.s32 4294967295, %v1072_v36  ;;  %v1297_v38 = vsub.s32 %v3932_v31, %v1072_v36 }
 0x316   : >> { %vm6035_vm2 = vcmp.eq.s32.totalorder %v1327_v29, 4  ;;  %v1811_v63 = vsel %vm1746_vm15, %v2992_v14, 0.0  ;;  %vm1875_vm8 = vcmp.eq.s32.totalorder %v1328_v23, 4  ;;  %v1298_v58 = vsub.s32 %v3936_v13, %v1072_v36  ;;  %v2929_v29 = vld [vmem:[%s5919_s2 + $0x1c0] sm:$0xff] }
 0x317   : >> { %v1939_v4 = vsel %vm6035_vm2, %v3023_v44, 0.0  ;;  %v1714_v20 = vadd.f32 %v1682_v7, %v1585_v30  ;;  %vm1121_vm9 = vcmp.gt.s32.totalorder %v2901_v8, 0  ;;  %v5034_v50 = vadd.s32 2, %v1297_v38  ;;  %v2961_v38 = vld [vmem:[%s5919_s2 + $0x2c0] sm:$0xff] }
 0x318   : >> { %v1842_v7 = vadd.f32 %v1810_v24, %v1713_v3  ;;  %v1122_v15 = vsel %vm1121_vm9, %v2901_v8, 0  ;;  %vm6036_vm2 = vcmp.lt.s32.totalorder %v3936_v13, %v4925_v61  ;;  %vm6037_vm14 = vcmp.ge.s32.totalorder %v3936_v13, %v4907_v28 }
 0x319   : >> { %vm5055_vm5 = vmand %vm6037_vm14, %vm6036_vm2  ;;  %v1843_v27 = vadd.f32 %v1811_v63, %v1714_v20  ;;  %vm1361_vm15 = vcmp.eq.s32.totalorder %v5034_v50, 0  ;;  %vm1489_vm3 = vcmp.eq.s32.totalorder %v5034_v50, 1  ;;  %vm1618_vm9 = vcmp.eq.s32.totalorder %v5034_v50, 2 }
 0x31a   : >> { %v1940_v44 = vsel %vm1875_vm8, %v3024_v22, 0.0  ;;  %v1425_v10 = vsel %vm1361_vm15, %v1393_v60, 0.0  ;;  %v1554_v9 = vsel %vm1489_vm3, %v2929_v29, 0.0  ;;  %v6040_v61 = vshra.s32 %v4892_v16, 4  ;;  %v2993_v22 = vld [vmem:[%s5919_s2 + $0x3c0] sm:$0xff] }
 0x31b   : >> { %vm1153_vm14 = vcmp.lt.s32.totalorder %v1122_v15, 13  ;;  %v1586_v3 = vadd.f32 %v1554_v9, %v1425_v10  ;;  %v1683_v30 = vsel %vm1618_vm9, %v2961_v38, 0.0  ;;  %v5068_v20 = vadd.s32 2, %v1298_v58  ;;  %v2962_v9 = vld [vmem:[%s5919_s2 + $0x2c8] sm:$0xff] }
 0x31c   : >> { %v5066_v14 = vadd.s32 %v3928_v17, %v6040_v61  ;;  %v6041_v63 = vsel %vm4057_vm13, %v4030_v35, -1e+30  ;;  %v2002_v16 = vsel %vm5055_vm5, %v5021_v32, -1e+30  ;;  %v5079_v8 = vadd.f32 %v1939_v4, %v1842_v7  ;;  %v1394_v4 = vld [vmem:[%s5919_s2 + $0xc8] sm:$0xff]  ;;  %v2935_v32 = vld [vmem:[%s5919_s2 + $0x1f0] sm:$0xff] }
 0x31d   : >> { %vm1747_vm8 = vcmp.eq.s32.totalorder %v5034_v50, 3  ;;  %v5091_v60 = vadd.f32 %v1940_v44, %v1843_v27  ;;  %v5098_v7 = vadd.s32 112, %v3923_v1  ;;  %v6043_v53 = vsel %vm4097_vm6, %v4065_v11, -1e+30  ;;  %v2930_v44 = vld [vmem:[%s5919_s2 + $0x1c8] sm:$0xff] }
 0x31e   : >> { %v2902_v29 = vadd.s32 4294967295, %v5066_v14  ;;  %v5107_v10 = vsel %vm1153_vm14, %v1122_v15, 13  ;;  %v1715_v27 = vadd.f32 %v1683_v30, %v1586_v3  ;;  %vm1876_vm13 = vcmp.eq.s32.totalorder %v5034_v50, 4  ;;  %vm6050_vm14 = vmmov %vm6045_vm4 }
 0x31f   : >> { %v6044_v11 = vsel %vm4272_vm1, %v4178_v47, -1e+30  ;;  %v1812_v61 = vsel %vm1747_vm8, %v2993_v22, 0.0  ;;  %vm1362_vm6 = vcmp.eq.s32.totalorder %v5068_v20, 0  ;;  %vm6046_vm15 = vcmp.lt.s32.totalorder %v3932_v31, %v5003_v19 }
 0x320   : >> { %vm6047_vm3 = vcmp.ge.s32.totalorder %v3932_v31, %v4972_v5  ;;  %v1426_v3 = vsel %vm1362_vm6, %v1394_v4, 0.0  ;;  %vm1490_vm1 = vcmp.eq.s32.totalorder %v5068_v20, 1  ;;  %vm1619_vm9 = vcmp.eq.s32.totalorder %v5068_v20, 2 }
 0x321   : >> { %vm5134_vm2 = vmand %vm6047_vm3, %vm6046_vm15  ;;  %v1684_v22 = vsel %vm1619_vm9, %v2962_v9, 0.0  ;;  %vm6051_vm8 = vcmp.lt.s32.totalorder %v3936_v13, %v5003_v19  ;;  %v1844_v4 = vadd.f32 %v1812_v61, %v1715_v27  ;;  %vm1748_vm15 = vcmp.eq.s32.totalorder %v5068_v20, 3 }
 0x322   : >> { %v2003_v19 = vsel %vm5134_vm2, %v5079_v8, -1e+30  ;;  %vm1185_vm3 = vcmp.ge.s32.totalorder %v3932_v31, %v5107_v10  ;;  %v6055_v27 = vsel %vm4288_vm11, %v4188_v52, -1e+30  ;;  %vm1877_vm9 = vcmp.eq.s32.totalorder %v5068_v20, 4 }
 0x348   : >> { %v2131_v28 = vpop.f32.mrb[0].mxu0 }
 0x349   : >> { %v5074_v24 = vadd.f32 %v2131_v28, %v6041_v63  ;;  %v2133_v23 = vpop.f32.mrb[1].mxu0  ;;  %v5146_v63 = vadd.s32 3, %v5107_v10 }
 0x34a   : >> { %v5089_v35 = vadd.f32 %v2133_v23, %v6042_v34  ;;  %v2135_v58 = vpop.f32.mrb[2].mxu0  ;;  %v1555_v23 = vsel %vm1490_vm1, %v2930_v44, 0.0  ;;  %vm1123_vm1 = vcmp.gt.s32.totalorder %v2902_v29, 0 }
 0x34b   : >> { %v5104_v38 = vadd.f32 %v2135_v58, %v6043_v53  ;;  %v2137_v45 = vpop.f32.mrb[3].mxu0  ;;  %v1587_v53 = vadd.f32 %v1555_v23, %v1426_v3  ;;  %v1124_v61 = vsel %vm1123_vm1, %v2902_v29, 0  ;;  %v6056_v3 = vsel %vm4306_vm12, %v4276_v26, -1e+30 }
 0x34c   : >> { %v5120_v59 = vadd.f32 %v2137_v45, %v6044_v11  ;;  %v2210_v15 = vsel %vm6045_vm4, %v5089_v35, -inf  ;;  %vm6052_vm4 = vcmp.ge.s32.totalorder %v3936_v13, %v4972_v5  ;;  %v2994_v45 = vld [vmem:[%s5919_s2 + $0x3c8] sm:$0xff]  ;;  %v1941_v5 = vsel %vm1876_vm13, %v3025_v48, 0.0 }
 0x34d   : >> { %v2211_v28 = vmax.f32 %v5074_v24, %v2210_v15  ;;  %vm5155_vm6 = vmand %vm6052_vm4, %vm6051_vm8  ;;  %v1716_v15 = vadd.f32 %v1684_v22, %v1587_v53  ;;  %vm1233_vm11 = vcmp.lt.s32.totalorder %v3932_v31, %v5146_v63  ;;  %v1813_v25 = vsel %vm1748_vm15, %v2994_v45, 0.0  ;;  %v1395_v22 = vld [vmem:[%s5919_s2 + $0xd0] sm:$0xff]  ;;  %v3026_v53 = vld [vmem:[%s5919_s2 + $0x4c8] sm:$0xff] }
 0x34e   : >> { %v2214_v30 = vsel %vm6050_vm14, %v5120_v59, -inf  ;;  %v2004_v52 = vsel %vm5155_vm6, %v5091_v60, -1e+30  ;;  %v6057_v29 = vsel %vm4318_vm10, %v4310_v51, -1e+30  ;;  %vm1155_vm12 = vcmp.lt.s32.totalorder %v1124_v61, 13  ;;  %vm6060_vm10 = vmmov %vm6050_vm14 }
 0x34f   : >> { %2212 = vmax.xlane.f32.xlu0 %v2211_v28  ;;  %v2215_v34 = vmax.f32 %v5104_v38, %v2214_v30  ;;  %v1299_v28 = vsub.s32 %v3932_v31, %v5066_v14  ;;  %v5197_v30 = vadd.f32 %v1941_v5, %v1844_v4  ;;  %vm6058_vm13 = vnez %v5965_v2  ;;  %vm6061_vm4 = vmmov %vm6060_vm10 }
 0x350   : >> { %v2141_v44 = vpop.f32.mrb[4].mxu0  ;;  %v6059_v51 = vsel %vm6058_vm13, %v4322_v21, -1e+30  ;;  %v1300_v45 = vsub.s32 %v3936_v13, %v5066_v14  ;;  %v1845_v5 = vadd.f32 %v1813_v25, %v1716_v15  ;;  %v2963_v21 = vld [vmem:[%s5919_s2 + $0x2d0] sm:$0xff]  ;;  %vm5235_vm15 = vmand %vm1185_vm3, %vm1233_vm11  ;;  %v5240_v20 = vsel %vm1155_vm12, %v1124_v61, 13 }
 0x351   : >> { %v5174_v9 = vadd.f32 %v2141_v44, %v6055_v27  ;;  %v2143_v11 = vpop.f32.mrb[5].mxu0  ;;  %2216 = vmax.xlane.f32.xlu1 %v2215_v34  ;;  %v5199_v23 = vadd.s32 2, %v1299_v28  ;;  %v2931_v34 = vld [vmem:[%s5919_s2 + $0x1d0] sm:$0xff]  ;;  %v1942_v15 = vsel %vm1877_vm9, %v3026_v53, 0.0  ;;  %vm1186_vm13 = vcmp.ge.s32.totalorder %v3936_v13, %v5107_v10 }
 0x352   : >> { %v5182_v50 = vadd.f32 %v2143_v11, %v6056_v3  ;;  %v2145_v48 = vpop.f32.mrb[6].mxu0  ;;  %v1057_v3 = vshra.s32 %v5098_v7, 4  ;;  %vm1234_vm3 = vcmp.lt.s32.totalorder %v3936_v13, %v5146_v63  ;;  %v2995_v61 = vld [vmem:[%s5919_s2 + $0x3d0] sm:$0xff]  ;;  %vm6064_vm12 = vnez %v5969_v39 }
 0x353   : >> { %v5195_v56 = vadd.f32 %v2145_v48, %v6057_v29  ;;  %v2147_v26 = vpop.f32.mrb[7].mxu0  ;;  %vm1363_vm14 = vcmp.eq.s32.totalorder %v5199_v23, 0  ;;  %vm1491_vm8 = vcmp.eq.s32.totalorder %v5199_v23, 1  ;;  %vm1620_vm1 = vcmp.eq.s32.totalorder %v5199_v23, 2  ;;  %v3027_v63 = vld [vmem:[%s5919_s2 + $0x4d0] sm:$0xff] }
 0x354   : >> { %v5211_v55 = vadd.f32 %v2147_v26, %v6059_v51  ;;  %v2218_v4 = vsel %vm6060_vm10, %v5182_v50, -inf  ;;  %v1427_v27 = vsel %vm1363_vm14, %v1395_v22, 0.0  ;;  %v1556_v11 = vsel %vm1491_vm8, %v2931_v34, 0.0 }
 0x355   : >> { %v2219_v44 = vmax.f32 %v5174_v9, %v2218_v4  ;;  %v1588_v28 = vadd.f32 %v1556_v11, %v1427_v27  ;;  %v1685_v25 = vsel %vm1620_vm1, %v2963_v21, 0.0  ;;  %vm1749_vm11 = vcmp.eq.s32.totalorder %v5199_v23, 3  ;;  %v1396_v21 = vld [vmem:[%s5919_s2 + $0xd8] sm:$0xff]  ;;  %vm5305_vm1 = vmand %vm1186_vm13, %vm1234_vm3 }
 0x356   : >> { %v2222_v2 = vsel %vm6061_vm4, %v5211_v55, -inf  ;;  %v6065_v29 = vsel %vm6064_vm12, %v4429_v49, -1e+30  ;;  %v2005_v34 = vsel %vm5235_vm15, %v5197_v30, -1e+30  ;;  %v5263_v51 = vadd.s32 3, %v5240_v20  ;;  %vm6074_vm13 = vmmov %vm6061_vm4 }
 0x357   : >> { %2220 = vmax.xlane.f32.xlu0 %v2219_v44  ;;  %v2223_v22 = vmax.f32 %v5195_v56, %v2222_v2  ;;  %vm6066_vm10 = vnez %v5973_v6  ;;  %v5271_v49 = vadd.f32 %v1942_v15, %v1845_v5  ;;  %vm1878_vm9 = vcmp.eq.s32.totalorder %v5199_v23, 4  ;;  %v2932_v2 = vld [vmem:[%s5919_s2 + $0x1d8] sm:$0xff] }
 0x358   : >> { %v2151_v48 = vpop.f32.mrb[8].mxu0  ;;  %v6067_v4 = vsel %vm6066_vm10, %v4439_v42, -1e+30  ;;  %v5274_v44 = vadd.s32 2, %v1300_v45  ;;  %vm6068_vm14 = vnez %v5977_v41  ;;  %v1717_v27 = vadd.f32 %v1685_v25, %v1588_v28 }
 0x359   : >> { %v5256_v26 = vadd.f32 %v2151_v48, %v6065_v29  ;;  %v2153_v7 = vpop.f32.mrb[9].mxu0  ;;  %v6069_v42 = vsel %vm6068_vm14, %v4456_v12, -1e+30  ;;  %v1814_v45 = vsel %vm1749_vm11, %v2995_v61, 0.0  ;;  %v1074_v11 = vadd.s32 %v3928_v17, %v1057_v3  ;;  %v2996_v29 = vld [vmem:[%s5919_s2 + $0x3d8] sm:$0xff] }
 0x35a   : >> { %v5269_v53 = vadd.f32 %v2153_v7, %v6067_v4  ;;  %v2155_v39 = vpop.f32.mrb[10].mxu0  ;;  %vm6070_vm8 = vnez %v5983_v57  ;;  %vm1364_vm11 = vcmp.eq.s32.totalorder %v5274_v44, 0  ;;  %vm1492_vm12 = vcmp.eq.s32.totalorder %v5274_v44, 1 }
 0x35b   : >> { %v5286_v6 = vadd.f32 %v2155_v39, %v6069_v42  ;;  %v2157_v5 = vpop.f32.mrb[11].mxu0  ;;  %2224 = vmax.xlane.f32.xlu0 %v2223_v22  ;;  %v6071_v15 = vsel %vm6070_vm8, %v4545_v43, -1e+30  ;;  %v2964_v43 = vld [vmem:[%s5919_s2 + $0x2d8] sm:$0xff]  ;;  %v1428_v28 = vsel %vm1364_vm11, %v1396_v21, 0.0  ;;  %v1557_v10 = vsel %vm1492_vm12, %v2932_v2, 0.0 }
 0x35c   : >> { %v5295_v48 = vadd.f32 %v2157_v5, %v6071_v15  ;;  %v2226_v41 = vsel %vm6061_vm4, %v5269_v53, -inf  ;;  %v1039_v3 = vadd.s32 120, %v3923_v1  ;;  %v1589_v61 = vadd.f32 %v1557_v10, %v1428_v28 }
 0x35d   : >> { %v2227_v57 = vmax.f32 %v5256_v26, %v2226_v41  ;;  %vm1621_vm3 = vcmp.eq.s32.totalorder %v5274_v44, 2  ;;  %vm1750_vm10 = vcmp.eq.s32.totalorder %v5274_v44, 3  ;;  %v2006_v22 = vsel %vm5305_vm1, %v5271_v49, -1e+30  ;;  %v3000_v49 = vld [vmem:[%s5919_s2 + $0x3f8] sm:$0xff] }
 0x35e   : >> { %v2230_v25 = vsel %vm6074_vm13, %v5295_v48, -inf  ;;  %v1846_v1 = vadd.f32 %v1814_v45, %v1717_v27  ;;  %v1686_v4 = vsel %vm1621_vm3, %v2964_v43, 0.0  ;;  %v1943_v21 = vsel %vm1878_vm9, %v3027_v63, 0.0  ;;  %v3028_v43 = vld [vmem:[%s5919_s2 + $0x4d8] sm:$0xff] }
 0x35f   : >> { %2228 = vmax.xlane.f32.xlu1 %v2227_v57  ;;  %v2231_v7 = vmax.f32 %v5286_v6, %v2230_v25  ;;  %v1718_v2 = vadd.f32 %v1686_v4, %v1589_v61  ;;  %v2903_v42 = vadd.s32 4294967295, %v1074_v11  ;;  %v1301_v5 = vsub.s32 %v3932_v31, %v1074_v11  ;;  %v6082_v61 = vld [vmem:[#allocation3_spill] sm:$0xff] }
 0x360   : >> { %v2161_v39 = vpop.f32.mrb[12].mxu0  ;;  %vm6075_vm14 = vnez %v5988_v54  ;;  %vm1187_vm8 = vcmp.ge.s32.totalorder %v3932_v31, %v5240_v20  ;;  %vm1235_vm4 = vcmp.lt.s32.totalorder %v3932_v31, %v5263_v51  ;;  %v1815_v23 = vsel %vm1750_vm10, %v2996_v29, 0.0 }
 0x361   : >> { %v6076_v15 = vsel %vm6075_vm14, %v4597_v0, -1e+30  ;;  %v2163_v57 = vpop.f32.mrb[13].mxu0  ;;  %2232 = vmax.xlane.f32.xlu0 %v2231_v7  ;;  %vm1879_vm9 = vcmp.eq.s32.totalorder %v5274_v44, 4  ;;  %v1302_v27 = vsub.s32 %v3936_v13, %v1074_v11  ;;  %vm6077_vm11 = vnez %v5993_v33 }
 0x362   : >> { %v5337_v41 = vadd.f32 %v2161_v39, %v6076_v15  ;;  %v6078_v0 = vsel %vm6077_vm11, %v4645_v46, -1e+30  ;;  %v2165_v45 = vpop.f32.mrb[14].mxu0  ;;  %vm1188_vm12 = vcmp.ge.s32.totalorder %v3936_v13, %v5240_v20  ;;  %vm1125_vm13 = vcmp.gt.s32.totalorder %v2903_v42, 0  ;;  %v2965_v39 = vld [vmem:[%s5919_s2 + $0x2e0] sm:$0xff]  ;;  %v3030_v20 = vld [vmem:[%s5919_s2 + $0x4e8] sm:$0xff] }
 0x363   : >> { %v5351_v54 = vadd.f32 %v2163_v57, %v6078_v0  ;;  %v1333_v63 = vadd.s32 2, %v1301_v5  ;;  %v1058_v28 = vshra.s32 %v1039_v3, 4  ;;  %vm6079_vm3 = vnez %v6000_v37  ;;  %v2167_v46 = vpop.f32.mrb[15].mxu0  ;;  %v3029_v0 = vld [vmem:[%s5919_s2 + $0x4e0] sm:$0xff] }
 0x364   : >> { %v6080_v11 = vsel %vm6079_vm3, %v4719_v62, -1e+30  ;;  %v5364_v10 = vadd.f32 %v1943_v21, %v1846_v1  ;;  %vm1236_vm10 = vcmp.lt.s32.totalorder %v3936_v13, %v5263_v51  ;;  %v1126_v25 = vsel %vm1125_vm13, %v2903_v42, 0  ;;  %v1397_v62 = vld [vmem:[%s5919_s2 + $0xe0] sm:$0xff] }
 0x365   : >> { %v5362_v33 = vadd.f32 %v2165_v45, %v6080_v11  ;;  %vm6081_vm14 = vnez %v6005_v18  ;;  %vm6084_vm11 = vcmask 261120   ;;  %v1847_v3 = vadd.f32 %v1815_v23, %v1718_v2  ;;  %v2933_v1 = vld [vmem:[%s5919_s2 + $0x1e0] sm:$0xff] }
 0x366   : >> { %v6083_v29 = vsel %vm6081_vm14, %v6082_v61, -1e+30  ;;  %v2234_v37 = vsel %vm6084_vm11, %v5351_v54, -inf  ;;  %vm1157_vm3 = vcmp.lt.s32.totalorder %v1126_v25, 13  ;;  %v1944_v18 = vsel %vm1879_vm9, %v3028_v43, 0.0  ;;  %v2997_v42 = vld [vmem:[%s5919_s2 + $0x3e0] sm:$0xff] }
 0x367   : >> { %v5372_v7 = vadd.f32 %v2167_v46, %v6083_v29  ;;  %v2235_v4 = vmax.f32 %v5337_v41, %v2234_v37  ;;  %vm1365_vm13 = vcmp.eq.s32.totalorder %v1333_v63, 0  ;;  %vm1493_vm14 = vcmp.eq.s32.totalorder %v1333_v63, 1  ;;  %v1398_v37 = vld [vmem:[%s5919_s2 + $0xe8] sm:$0xff] }
 0x368   : >> { %v5390_v2 = vsel %vm1157_vm3, %v1126_v25, 13  ;;  %v5395_v5 = vadd.s32 2, %v1302_v27  ;;  %v5398_v44 = vadd.s32 %v3928_v17, %v1058_v28  ;;  %v1429_v57 = vsel %vm1365_vm13, %v1397_v62, 0.0  ;;  %v2171_v45 = vpop.f32.mrb[16].mxu0  ;;  %v6085_v27 = vld [vmem:[#allocation5_spill] sm:$0xff]  ;;  %v6087_v17 = vld [vmem:[#allocation4_spill] sm:$0xff] }
 0x369   : >> { %v2238_v21 = vsel %vm6084_vm11, %v5372_v7, -inf  ;;  %2236 = vmax.xlane.f32.xlu1 %v2235_v4  ;;  %v1558_v23 = vsel %vm1493_vm14, %v2933_v1, 0.0  ;;  %vm1622_vm9 = vcmp.eq.s32.totalorder %v1333_v63, 2  ;;  %v5404_v43 = vadd.f32 %v1944_v18, %v1847_v3  ;;  %v2173_v61 = vpop.f32.mrb[17].mxu0  ;;  %v6090_v62 = vld [vmem:[#allocation6_spill] sm:$0xff] }
 0x36a   : >> { %v2239_v15 = vmax.f32 %v5362_v33, %v2238_v21  ;;  %v1590_v11 = vadd.f32 %v1558_v23, %v1429_v57  ;;  %v1687_v46 = vsel %vm1622_vm9, %v2965_v39, 0.0  ;;  %vm1751_vm3 = vcmp.eq.s32.totalorder %v1333_v63, 3  ;;  %v2175_v18 = vpop.f32.mrb[18].mxu0  ;;  %v6092_v57 = vld [vmem:[#allocation9_spill] sm:$0xff]  ;;  %v6094_v23 = vld [vmem:[#allocation8_spill] sm:$0xff] }
 0x36b   : >> { %vm6086_vm11 = vnez %v6085_v27  ;;  %vm1189_vm13 = vcmp.ge.s32.totalorder %v3932_v31, %v5390_v2  ;;  %v1816_v29 = vsel %vm1751_vm3, %v2997_v42, 0.0  ;;  %vm1880_vm14 = vcmp.eq.s32.totalorder %v1333_v63, 4  ;;  %v2934_v63 = vld [vmem:[%s5919_s2 + $0x1e8] sm:$0xff] }
 0x36c   : >> { %v6088_v28 = vsel %vm6086_vm11, %v6087_v17, -1e+30  ;;  %2240 = vmax.xlane.f32.xlu0 %v2239_v15  ;;  %v6091_v1 = vsel %vm4866_vm7, %v6090_v62, -1e+30  ;;  %v5424_v39 = vadd.s32 3, %v5390_v2  ;;  %v1719_v21 = vadd.f32 %v1687_v46, %v1590_v11  ;;  %v2966_v42 = vld [vmem:[%s5919_s2 + $0x2e8] sm:$0xff] }
 0x36d   : >> { %v5410_v25 = vadd.f32 %v2171_v45, %v6088_v28  ;;  %v5421_v4 = vadd.f32 %v2173_v61, %v6091_v1  ;;  %v1945_v15 = vsel %vm1880_vm14, %v3029_v0, 0.0  ;;  %vm6093_vm9 = vnez %v6092_v57  ;;  %v2177_v17 = vpop.f32.mrb[19].mxu0  ;;  %v2998_v0 = vld [vmem:[%s5919_s2 + $0x3e8] sm:$0xff]  ;;  %v6097_v46 = vld [vmem:[#allocation10_spill] sm:$0xff] }
 0x36e   : >> { %v6095_v45 = vsel %vm6093_vm9, %v6094_v23, -1e+30  ;;  %vm1366_vm7 = vcmp.eq.s32.totalorder %v5395_v5, 0  ;;  %vm1494_vm3 = vcmp.eq.s32.totalorder %v5395_v5, 1  ;;  %vm1623_vm11 = vcmp.eq.s32.totalorder %v5395_v5, 2  ;;  %vm5458_vm9 = vmand %vm1187_vm8, %vm1235_vm4 }
 0x36f   : >> { %v5436_v27 = vadd.f32 %v2175_v18, %v6095_v45  ;;  %v6098_v28 = vsel %vm4956_vm0, %v6097_v46, -1e+30  ;;  %vm6099_vm14 = vcmask 261120   ;;  %v1848_v1 = vadd.f32 %v1816_v29, %v1719_v21  ;;  %vm5469_vm0 = vmand %vm1188_vm12, %vm1236_vm10 }
 0x370   : >> { %v5448_v61 = vadd.f32 %v2177_v17, %v6098_v28  ;;  %v2242_v3 = vsel %vm6099_vm14, %v5421_v4, -inf  ;;  %v1430_v18 = vsel %vm1366_vm7, %v1398_v37, 0.0  ;;  %v1559_v45 = vsel %vm1494_vm3, %v2934_v63, 0.0  ;;  %vm6104_vm4 = vmmov %vm6099_vm14  ;;  %v2181_v11 = vpop.f32.mrb[20].mxu0 }
 0x371   : >> { %v2243_v57 = vmax.f32 %v5410_v25, %v2242_v3  ;;  %v1688_v17 = vsel %vm1623_vm11, %v2966_v42, 0.0  ;;  %vm1752_vm8 = vcmp.eq.s32.totalorder %v5395_v5, 3  ;;  %vm1237_vm7 = vcmp.lt.s32.totalorder %v3932_v31, %v5424_v39 }
 0x372   : >> { %v2246_v29 = vsel %vm6104_vm4, %v5448_v61, -inf  ;;  %v1591_v37 = vadd.f32 %v1559_v45, %v1430_v18  ;;  %v1817_v21 = vsel %vm1752_vm8, %v2998_v0, 0.0  ;;  %vm1881_vm12 = vcmp.eq.s32.totalorder %v5395_v5, 4  ;;  %v6105_v18 = vld [vmem:[#allocation12_spill] sm:$0xff]  ;;  %vm5506_vm3 = vmand %vm1189_vm13, %vm1237_vm7  ;;  %v2967_v5 = vld [vmem:[%s5919_s2 + $0x2f0] sm:$0xff] }
 0x373   : >> { %2244 = vmax.xlane.f32.xlu1 %v2243_v57  ;;  %v2247_v51 = vmax.f32 %v5436_v27, %v2246_v29  ;;  %v2904_v63 = vadd.s32 4294967295, %v5398_v44  ;;  %v1303_v42 = vsub.s32 %v3932_v31, %v5398_v44  ;;  %v2008_v0 = vsel %vm5469_vm0, %v5404_v43, -1e+30  ;;  %v2183_v29 = vpop.f32.mrb[21].mxu0  ;;  %v3032_v43 = vld [vmem:[%s5919_s2 + $0x4f8] sm:$0xff] }
 0x374   : >> { %v5492_v28 = vadd.f32 %v1945_v15, %v1848_v1  ;;  %v1720_v3 = vadd.f32 %v1688_v17, %v1591_v37  ;;  %vm6106_vm10 = vnez %v6105_v18  ;;  %vm1190_vm11 = vcmp.ge.s32.totalorder %v3936_v13, %v5390_v2  ;;  %v2185_v17 = vpop.f32.mrb[22].mxu0  ;;  %v1399_v18 = vld [vmem:[%s5919_s2 + $0xf0] sm:$0xff] }
 0x375   : >> { %v6107_v57 = vsel %vm6106_vm10, %v4982_v40, -1e+30  ;;  %2248 = vmax.xlane.f32.xlu0 %v2247_v51  ;;  %vm1238_vm14 = vcmp.lt.s32.totalorder %v3936_v13, %v5424_v39  ;;  %vm1127_vm8 = vcmp.gt.s32.totalorder %v2904_v63, 0  ;;  %v1304_v40 = vsub.s32 %v3936_v13, %v5398_v44  ;;  %v2187_v36 = vpop.f32.mrb[23].mxu0 }
 0x376   : >> { %v5498_v45 = vadd.f32 %v2181_v11, %v6107_v57  ;;  %v1335_v15 = vadd.s32 2, %v1303_v42  ;;  %v5520_v1 = vadd.f32 %v2183_v29, %v2002_v16  ;;  %v1849_v37 = vadd.f32 %v1817_v21, %v1720_v3  ;;  %v2999_v3 = vld [vmem:[%s5919_s2 + $0x3f0] sm:$0xff] }
 0x377   : >> { %v1946_v51 = vsel %vm1881_vm12, %v3030_v20, 0.0  ;;  %v1128_v11 = vsel %vm1127_vm8, %v2904_v63, 0  ;;  %v5531_v44 = vadd.f32 %v2185_v17, %v2003_v19  ;;  %v5540_v16 = vadd.f32 %v2187_v36, %v2004_v52  ;;  %v3031_v57 = vld [vmem:[%s5919_s2 + $0x4f0] sm:$0xff] }
 0x378   : >> { %vm1159_vm5 = vcmp.lt.s32.totalorder %v1128_v11, 13  ;;  %vm1367_vm13 = vcmp.eq.s32.totalorder %v1335_v15, 0  ;;  %vm1495_vm4 = vcmp.eq.s32.totalorder %v1335_v15, 1  ;;  %vm6110_vm7 = vcmask 261120  }
 0x379   : >> { %v2250_v47 = vsel %vm6110_vm7, %v5520_v1, -inf  ;;  %v2009_v8 = vsel %vm5506_vm3, %v5492_v28, -1e+30  ;;  %v5547_v19 = vsel %vm1159_vm5, %v1128_v11, 13  ;;  %v1431_v60 = vsel %vm1367_vm13, %v1399_v18, 0.0  ;;  %vm6111_vm2 = vmmov %vm6110_vm7  ;;  %v2191_v11 = vpop.f32.mrb[24].mxu0 }
 0x37a   : >> { %v2251_v21 = vmax.f32 %v5498_v45, %v2250_v47  ;;  %v5554_v58 = vadd.s32 3, %v5547_v19  ;;  %v1336_v52 = vadd.s32 2, %v1304_v40  ;;  %v2254_v20 = vsel %vm6111_vm2, %v5540_v16, -inf  ;;  %v2193_v36 = vpop.f32.mrb[25].mxu0  ;;  %vm6113_vm1 = vmmov %vm6111_vm2 }
 0x37b   : >> { %v1978_v63 = vadd.f32 %v1946_v51, %v1849_v37  ;;  %v1560_v42 = vsel %vm1495_vm4, %v2935_v32, 0.0  ;;  %vm1624_vm6 = vcmp.eq.s32.totalorder %v1335_v15, 2  ;;  %v2255_v29 = vmax.f32 %v5531_v44, %v2254_v20  ;;  %v1400_v37 = vld [vmem:[%s5919_s2 + $0xf8] sm:$0xff]  ;;  %v2195_v14 = vpop.f32.mrb[26].mxu0  ;;  %vm6118_vm2 = vmmov %vm6113_vm1 }
 0x37c   : >> { %2252 = vmax.xlane.f32.xlu1 %v2251_v21  ;;  %vm1191_vm12 = vcmp.ge.s32.totalorder %v3932_v31, %v5547_v19  ;;  %v1592_v40 = vadd.f32 %v1560_v42, %v1431_v60  ;;  %v1689_v17 = vsel %vm1624_vm6, %v2967_v5, 0.0  ;;  %vm1239_vm10 = vcmp.lt.s32.totalorder %v3932_v31, %v5554_v58  ;;  %v2936_v51 = vld [vmem:[%s5919_s2 + $0x1f8] sm:$0xff]  ;;  %v2197_v60 = vpop.f32.mrb[27].mxu0  ;;  %vm6119_vm3 = vmmov %vm6113_vm1 }
 0x37d   : >> { %vm1753_vm8 = vcmp.eq.s32.totalorder %v1335_v15, 3  ;;  %vm1882_vm5 = vcmp.eq.s32.totalorder %v1335_v15, 4  ;;  %vm1192_vm13 = vcmp.ge.s32.totalorder %v3936_v13, %v5547_v19  ;;  %v5581_v18 = vadd.f32 %v2191_v11, %v2005_v34  ;;  %2256 = vmax.xlane.f32.xlu0 %v2255_v29  ;;  %v2968_v5 = vld [vmem:[%s5919_s2 + $0x2f8] sm:$0xff]  ;;  %vm5629_vm0 = vmand %vm1191_vm12, %vm1239_vm10 }
 0x37e   : >> { %v1721_v15 = vadd.f32 %v1689_v17, %v1592_v40  ;;  %v1818_v32 = vsel %vm1753_vm8, %v2999_v3, 0.0  ;;  %v1947_v47 = vsel %vm1882_vm5, %v3031_v57, 0.0  ;;  %v5590_v21 = vadd.f32 %v2193_v36, %v2006_v22  ;;  %vm6120_vm10 = vmmov %vm6113_vm1 }
 0x37f   : >> { %vm1368_vm4 = vcmp.eq.s32.totalorder %v1336_v52, 0  ;;  %vm1496_vm15 = vcmp.eq.s32.totalorder %v1336_v52, 1  ;;  %vm1625_vm7 = vcmp.eq.s32.totalorder %v1336_v52, 2  ;;  %v6112_v30 = vsel %vm5458_vm9, %v5364_v10, -1e+30  ;;  %vm5615_vm9 = vmand %vm1190_vm11, %vm1238_vm14 }
 0x380   : >> { %v5596_v34 = vadd.f32 %v2195_v14, %v6112_v30  ;;  %v1850_v20 = vadd.f32 %v1818_v32, %v1721_v15  ;;  %v1432_v42 = vsel %vm1368_vm4, %v1400_v37, 0.0  ;;  %v1561_v3 = vsel %vm1496_vm15, %v2936_v51, 0.0  ;;  %v2201_v37 = vpop.f32.mrb[28].mxu0  ;;  %v3287_v30 = vld [vmem:[%s3869_s16 + $0x30] sm:$0xff]  ;;  %vm6121_vm8 = vmmov %vm6113_vm1 }
 0x381   : >> { %v5605_v12 = vadd.f32 %v2197_v60, %v2008_v0  ;;  %v2258_v22 = vsel %vm6113_vm1, %v5590_v21, -inf  ;;  %v1593_v62 = vadd.f32 %v1561_v3, %v1432_v42  ;;  %v1690_v57 = vsel %vm1625_vm7, %v2968_v5, 0.0  ;;  %v3288_v60 = vld [vmem:[%s3869_s16 + $0x40] sm:$0xff]  ;;  %v5671_v3 = vpop.permute.xlu0 %2500  ;;  %vm6122_vm5 = vmmov %vm6113_vm1 }
 0x382   : >> { %v2259_v23 = vmax.f32 %v5581_v18, %v2258_v22  ;;  %v1979_v39 = vadd.f32 %v1947_v47, %v1850_v20  ;;  %vm1754_vm11 = vcmp.eq.s32.totalorder %v1336_v52, 3  ;;  %vm1883_vm14 = vcmp.eq.s32.totalorder %v1336_v52, 4  ;;  %v5667_v20 = vpop.permute.xlu1 %2498  ;;  %vm6124_vm4 = vmmov %vm6113_vm1 }
 0x383   : >> { %v2262_v0 = vsel %vm6118_vm2, %v5605_v12, -inf  ;;  %vm1240_vm6 = vcmp.lt.s32.totalorder %v3936_v13, %v5554_v58  ;;  %v1722_v29 = vadd.f32 %v1690_v57, %v1593_v62  ;;  %v1819_v40 = vsel %vm1754_vm11, %v3000_v49, 0.0  ;;  %v2203_v58 = vpop.f32.mrb[29].mxu0  ;;  %vm6125_vm15 = vmmov %vm6113_vm1 }
 0x384   : >> { %2260 = vmax.xlane.f32.xlu1 %v2259_v23  ;;  %v2010_v17 = vsel %vm5615_vm9, %v1978_v63, -1e+30  ;;  %v2263_v31 = vmax.f32 %v5596_v34, %v2262_v0  ;;  %v1948_v11 = vsel %vm1883_vm14, %v3032_v43, 0.0  ;;  %v2011_v51 = vsel %vm5629_vm0, %v1979_v39, -1e+30  ;;  %vm1272_vm12 = vmand %vm1192_vm13, %vm1240_vm6  ;;  %v2205_v15 = vpop.f32.mrb[30].mxu0 }
 0x385   : >> { %v1851_v52 = vadd.f32 %v1819_v40, %v1722_v29  ;;  %v5646_v36 = vadd.f32 %v2201_v37, %v2009_v8  ;;  %v5651_v63 = vadd.f32 %v2203_v58, %v2010_v17  ;;  %v5653_v47 = vadd.f32 %v2205_v15, %v2011_v51  ;;  %v2207_v5 = vpop.f32.mrb[31].mxu0  ;;  %v5675_v22 = vpop.permute.xlu0 %2506  ;;  %vm6123_vm13 = vmmov %vm6113_vm1 }
 0x386   : >> { %2264 = vmax.xlane.f32.xlu0 %v2263_v31  ;;  %v5669_v42 = vpop.permute.xlu1 %2502  ;;  %vm6126_vm7 = vmmov %vm6113_vm1 }
 0x387   : >> { %v1980_v32 = vadd.f32 %v1948_v11, %v1851_v52  ;;  %v2266_v28 = vsel %vm6119_vm3, %v5651_v63, -inf  ;;  %vm6127_vm9 = vmmov %vm6113_vm1 }
 0x388   : >> { %v2267_v14 = vmax.f32 %v5646_v36, %v2266_v28  ;;  %vm6128_vm0 = vmmov %vm6113_vm1 }
 0x389   : >> { %v2012_v46 = vsel %vm1272_vm12, %v1980_v32, -1e+30  ;;  %vm6129_vm11 = vmmov %vm6128_vm0 }
 0x38a   : >> { %v5657_v8 = vadd.f32 %v2207_v5, %v2012_v46  ;;  %2268 = vmax.xlane.f32.xlu1 %v2267_v14  ;;  %v5673_v49 = vpop.permute.xlu1 %2504  ;;  %vm6130_vm14 = vmmov %vm6128_vm0 }
 0x38b   : >> { %vm6131_vm2 = vmmov %vm6128_vm0 }
 0x38c   : >> { %v2270_v13 = vsel %vm6120_vm10, %v5657_v8, -inf  ;;  %vm6132_vm6 = vmmov %vm6128_vm0 }
 0x38d   : >> { %v2271_v19 = vmax.f32 %v5653_v47, %v2270_v13  ;;  %vm6133_vm12 = vmmov %vm6128_vm0 }
 0x38e   : >> { %v5677_v10 = vpop.permute.xlu1 %2508  ;;  %vm6134_vm3 = vmmov %vm6128_vm0 }
 0x38f   : >> { %2272 = vmax.xlane.f32.xlu0 %v2271_v19  ;;  %vm6135_vm10 = vmmov %vm6128_vm0 }
 0x39b   : >> { %2510 = vrot.lane.b32.xlu1 %v3287_v30, %s3342_s18 }
 0x3a5   : >> { %2514 = vrot.lane.b32.xlu0 %v3288_v60, %s3342_s18 }
 0x3dc   : >> { %v2213_v62 = vpop.xlane.xlu0 %2212 }
 0x3dd   : >> { %v2274_v57 = vsub.f32 %v5074_v24, %v2213_v62  ;;  %v2275_v43 = vsub.f32 %v5089_v35, %v2213_v62 }
 0x3de   : >> { %v2217_v23 = vpop.xlane.xlu1 %2216 }
 0x3df   : >> { %v2306_v2 = vmul.f32 1.442695, %v2274_v57  ;;  %v2308_v39 = vmul.f32 1.442695, %v2275_v43  ;;  %v2276_v0 = vsub.f32 %v5104_v38, %v2217_v23  ;;  %v2277_v29 = vsub.f32 %v5120_v59, %v2217_v23 }
 0x3e1   : >> { %3191 = vpow2.f32 %v2306_v2  ;;  %v2310_v40 = vmul.f32 1.442695, %v2276_v0  ;;  %v2312_v17 = vmul.f32 1.442695, %v2277_v29 }
 0x3e2   : >> { %3193 = vpow2.f32 %v2308_v39 }
 0x3e3   : >> { %3195 = vpow2.f32 %v2310_v40 }
 0x3e4   : >> { %3197 = vpow2.f32 %v2312_v17  ;;  %v2221_v31 = vpop.xlane.xlu0 %2220 }
 0x3e5   : >> { %v2278_v11 = vsub.f32 %v5174_v9, %v2221_v31  ;;  %v2279_v24 = vsub.f32 %v5182_v50, %v2221_v31 }
 0x3e7   : >> { %v2314_v37 = vmul.f32 1.442695, %v2278_v11  ;;  %v2316_v35 = vmul.f32 1.442695, %v2279_v24 }
 0x3e8   : >> { %v2225_v51 = vpop.xlane.xlu0 %2224 }
 0x3e9   : >> { %3199 = vpow2.f32 %v2314_v37  ;;  %v2280_v52 = vsub.f32 %v5195_v56, %v2225_v51  ;;  %v2281_v38 = vsub.f32 %v5211_v55, %v2225_v51 }
 0x3ea   : >> { %3201 = vpow2.f32 %v2316_v35 }
 0x3eb   : >> { %v5687_v59 = vpop.eup %3191  ;;  %v2318_v58 = vmul.f32 1.442695, %v2280_v52  ;;  %v2320_v15 = vmul.f32 1.442695, %v2281_v38 }
 0x3ec   : >> { %v5689_v32 = vpop.eup %3193  ;;  %v2229_v5 = vpop.xlane.xlu1 %2228 }
 0x3ed   : >> { %v5691_v46 = vpop.eup %3195  ;;  %3203 = vpow2.f32 %v2318_v58  ;;  %v2282_v9 = vsub.f32 %v5256_v26, %v2229_v5  ;;  %v2283_v50 = vsub.f32 %v5269_v53, %v2229_v5  ;;  %v2370_v56 = vsel %vm6121_vm8, %v5689_v32, 0.0  ;;  %vm6136_vm8 = vmmov %vm6128_vm0 }
 0x3ee   : >> { %v5697_v28 = vpop.eup %3197  ;;  %3205 = vpow2.f32 %v2320_v15  ;;  %v2233_v55 = vpop.xlane.xlu0 %2232  ;;  %v2371_v14 = vadd.f32 %v5687_v59, %v2370_v56 }
 0x3ef   : >> { %v2322_v13 = vmul.f32 1.442695, %v2282_v9  ;;  %v2324_v19 = vmul.f32 1.442695, %v2283_v50  ;;  %v2284_v30 = vsub.f32 %v5286_v6, %v2233_v55  ;;  %v2285_v60 = vsub.f32 %v5295_v48, %v2233_v55 }
 0x3f0   : >> { %2372 = vadd.xlane.f32.xlu1 %v2371_v14  ;;  %v2374_v26 = vsel %vm6122_vm5, %v5697_v28, 0.0  ;;  %vm6137_vm5 = vmmov %vm6128_vm0 }
 0x3f1   : >> { %3207 = vpow2.f32 %v2322_v13  ;;  %v2326_v53 = vmul.f32 1.442695, %v2284_v30  ;;  %v2328_v62 = vmul.f32 1.442695, %v2285_v60  ;;  %v2375_v57 = vadd.f32 %v5691_v46, %v2374_v26 }
 0x3f2   : >> { %3209 = vpow2.f32 %v2324_v19 }
 0x3f3   : >> { %v5705_v43 = vpop.eup %3199  ;;  %3211 = vpow2.f32 %v2326_v53  ;;  %2376 = vadd.xlane.f32.xlu0 %v2375_v57 }
 0x3f4   : >> { %v5707_v23 = vpop.eup %3201  ;;  %3213 = vpow2.f32 %v2328_v62 }
 0x3f5   : >> { %v2378_v39 = vsel %vm6123_vm13, %v5707_v23, 0.0  ;;  %vm6138_vm13 = vmmov %vm6128_vm0 }
 0x3f6   : >> { %v2237_v6 = vpop.xlane.xlu1 %2236  ;;  %v2379_v29 = vadd.f32 %v5705_v43, %v2378_v39 }
 0x3f7   : >> { %v2286_v48 = vsub.f32 %v5337_v41, %v2237_v6  ;;  %v2287_v2 = vsub.f32 %v5351_v54, %v2237_v6  ;;  %v5714_v40 = vpop.eup %3203 }
 0x3f8   : >> { %v5718_v37 = vpop.eup %3205  ;;  %2380 = vadd.xlane.f32.xlu1 %v2379_v29 }
 0x3f9   : >> { %v2241_v0 = vpop.xlane.xlu0 %2240  ;;  %v2330_v17 = vmul.f32 1.442695, %v2286_v48  ;;  %v2332_v31 = vmul.f32 1.442695, %v2287_v2  ;;  %v2382_v35 = vsel %vm6124_vm4, %v5718_v37, 0.0  ;;  %vm6139_vm4 = vmmov %vm6128_vm0 }
 0x3fa   : >> { %v2288_v11 = vsub.f32 %v5362_v33, %v2241_v0  ;;  %v2289_v24 = vsub.f32 %v5372_v7, %v2241_v0  ;;  %v2383_v51 = vadd.f32 %v5714_v40, %v2382_v35 }
 0x3fb   : >> { %3215 = vpow2.f32 %v2330_v17  ;;  %v5723_v52 = vpop.eup %3207 }
 0x3fc   : >> { %v2334_v41 = vmul.f32 1.442695, %v2288_v11  ;;  %v2336_v54 = vmul.f32 1.442695, %v2289_v24  ;;  %3217 = vpow2.f32 %v2332_v31  ;;  %v5725_v38 = vpop.eup %3209  ;;  %2384 = vadd.xlane.f32.xlu0 %v2383_v51 }
 0x3fd   : >> { %v5727_v7 = vpop.eup %3211  ;;  %v2386_v5 = vsel %vm6125_vm15, %v5725_v38, 0.0  ;;  %vm6140_vm15 = vmmov %vm6128_vm0 }
 0x3fe   : >> { %3219 = vpow2.f32 %v2334_v41  ;;  %v5733_v9 = vpop.eup %3213  ;;  %v2387_v56 = vadd.f32 %v5723_v52, %v2386_v5 }
 0x3ff   : >> { %3221 = vpow2.f32 %v2336_v54 }
 0x400   : >> { %v2245_v33 = vpop.xlane.xlu1 %2244  ;;  %2388 = vadd.xlane.f32.xlu1 %v2387_v56 }
 0x401   : >> { %v2290_v58 = vsub.f32 %v5410_v25, %v2245_v33  ;;  %v2291_v15 = vsub.f32 %v5421_v4, %v2245_v33  ;;  %v2390_v25 = vsel %vm6126_vm7, %v5733_v9, 0.0  ;;  %vm6141_vm7 = vmmov %vm6128_vm0 }
 0x402   : >> { %v2249_v50 = vpop.xlane.xlu0 %2248  ;;  %v2391_v60 = vadd.f32 %v5727_v7, %v2390_v25 }
 0x403   : >> { %v2338_v55 = vmul.f32 1.442695, %v2290_v58  ;;  %v2340_v14 = vmul.f32 1.442695, %v2291_v15  ;;  %v2292_v13 = vsub.f32 %v5436_v27, %v2249_v50  ;;  %v2293_v19 = vsub.f32 %v5448_v61, %v2249_v50 }
 0x404   : >> { %2392 = vadd.xlane.f32.xlu0 %v2391_v60 }
 0x405   : >> { %3223 = vpow2.f32 %v2338_v55  ;;  %v2342_v4 = vmul.f32 1.442695, %v2292_v13  ;;  %v2344_v30 = vmul.f32 1.442695, %v2293_v19  ;;  %v5741_v26 = vpop.eup %3215 }
 0x406   : >> { %3225 = vpow2.f32 %v2340_v14  ;;  %v5743_v53 = vpop.eup %3217 }
 0x407   : >> { %3227 = vpow2.f32 %v2342_v4  ;;  %v2394_v6 = vsel %vm6113_vm1, %v5743_v53, 0.0  ;;  %vm6143_vm1 = vmmov %vm6128_vm0 }
 0x408   : >> { %3229 = vpow2.f32 %v2344_v30  ;;  %v5745_v62 = vpop.eup %3219  ;;  %v2395_v39 = vadd.f32 %v5741_v26, %v2394_v6  ;;  %v3289_v6 = vld [vmem:[%s3869_s16 + $0x38] sm:$0xff] }
 0x409   : >> { %v2253_v27 = vpop.xlane.xlu1 %2252  ;;  %v5751_v48 = vpop.eup %3221 }
 0x40a   : >> { %v2294_v61 = vsub.f32 %v5498_v45, %v2253_v27  ;;  %v2295_v57 = vsub.f32 %v5520_v1, %v2253_v27  ;;  %v2257_v2 = vpop.xlane.xlu0 %2256  ;;  %2396 = vadd.xlane.f32.xlu1 %v2395_v39  ;;  %v2398_v45 = vsel %vm6127_vm9, %v5751_v48, 0.0  ;;  %vm6144_vm9 = vmmov %vm6128_vm0 }
 0x40b   : >> { %v2296_v17 = vsub.f32 %v5531_v44, %v2257_v2  ;;  %v2297_v31 = vsub.f32 %v5540_v16, %v2257_v2  ;;  %v2399_v24 = vadd.f32 %v5745_v62, %v2398_v45 }
 0x40c   : >> { %v2346_v0 = vmul.f32 1.442695, %v2294_v61  ;;  %v2348_v29 = vmul.f32 1.442695, %v2295_v57 }
 0x40d   : >> { %v2350_v1 = vmul.f32 1.442695, %v2296_v17  ;;  %v2352_v11 = vmul.f32 1.442695, %v2297_v31  ;;  %2400 = vadd.xlane.f32.xlu0 %v2399_v24  ;;  %v3290_v17 = vld [vmem:[%s3869_s16 + $0x48] sm:$0xff] }
 0x40e   : >> { %3231 = vpow2.f32 %v2346_v0 }
 0x40f   : >> { %3233 = vpow2.f32 %v2348_v29  ;;  %v5759_v41 = vpop.eup %3223 }
 0x410   : >> { %3235 = vpow2.f32 %v2350_v1  ;;  %v5761_v54 = vpop.eup %3225 }
 0x411   : >> { %3237 = vpow2.f32 %v2352_v11  ;;  %v2261_v44 = vpop.xlane.xlu1 %2260  ;;  %v5763_v35 = vpop.eup %3227  ;;  %v2402_v33 = vsel %vm6128_vm0, %v5761_v54, 0.0 }
 0x412   : >> { %v2298_v16 = vsub.f32 %v5581_v18, %v2261_v44  ;;  %v2299_v51 = vsub.f32 %v5590_v21, %v2261_v44  ;;  %v5769_v58 = vpop.eup %3229  ;;  %v2403_v15 = vadd.f32 %v5759_v41, %v2402_v33 }
 0x413   : >> { %v2406_v56 = vsel %vm6129_vm11, %v5769_v58, 0.0  ;;  %v2265_v2 = vpop.xlane.xlu0 %2264  ;;  %vm6145_vm11 = vmmov %vm6128_vm0 }
 0x414   : >> { %v2354_v5 = vmul.f32 1.442695, %v2298_v16  ;;  %v2356_v50 = vmul.f32 1.442695, %v2299_v51  ;;  %2404 = vadd.xlane.f32.xlu1 %v2403_v15  ;;  %v2407_v55 = vadd.f32 %v5763_v35, %v2406_v56  ;;  %v2301_v39 = vsub.f32 %v5605_v12, %v2265_v2 }
 0x415   : >> { %v2300_v29 = vsub.f32 %v5596_v34, %v2265_v2 }
 0x416   : >> { %3239 = vpow2.f32 %v2354_v5  ;;  %2408 = vadd.xlane.f32.xlu0 %v2407_v55  ;;  %v2360_v31 = vmul.f32 1.442695, %v2301_v39 }
 0x417   : >> { %3241 = vpow2.f32 %v2356_v50  ;;  %v2269_v1 = vpop.xlane.xlu1 %2268  ;;  %v2358_v11 = vmul.f32 1.442695, %v2300_v29 }
 0x418   : >> { %v5775_v18 = vpop.eup %3231  ;;  %3243 = vpow2.f32 %v2360_v31  ;;  %v2303_v44 = vsub.f32 %v5651_v63, %v2269_v1  ;;  %v2302_v12 = vsub.f32 %v5646_v36, %v2269_v1 }
 0x419   : >> { %v5777_v21 = vpop.eup %3233  ;;  %3245 = vpow2.f32 %v2358_v11 }
 0x41a   : >> { %v5779_v14 = vpop.eup %3235  ;;  %v2410_v13 = vsel %vm6130_vm14, %v5777_v21, 0.0  ;;  %v2364_v33 = vmul.f32 1.442695, %v2303_v44  ;;  %v2362_v34 = vmul.f32 1.442695, %v2302_v12  ;;  %vm6146_vm14 = vmmov %vm6128_vm0 }
 0x41b   : >> { %v5783_v19 = vpop.eup %3237  ;;  %v2411_v25 = vadd.f32 %v5775_v18, %v2410_v13 }
 0x41c   : >> { %v2414_v4 = vsel %vm6131_vm2, %v5783_v19, 0.0  ;;  %v2273_v0 = vpop.xlane.xlu0 %2272  ;;  %vm6147_vm2 = vmmov %vm6128_vm0 }
 0x41d   : >> { %2412 = vadd.xlane.f32.xlu1 %v2411_v25  ;;  %v2415_v30 = vadd.f32 %v5779_v14, %v2414_v4  ;;  %v2305_v45 = vsub.f32 %v5657_v8, %v2273_v0  ;;  %v2304_v24 = vsub.f32 %v5653_v47, %v2273_v0 }
 0x41f   : >> { %2416 = vadd.xlane.f32.xlu0 %v2415_v30  ;;  %v2368_v16 = vmul.f32 1.442695, %v2305_v45  ;;  %v2366_v51 = vmul.f32 1.442695, %v2304_v24  ;;  %v2511_v30 = vpop.permute.xlu1 %2510 }
 0x420   : >> { %v5789_v60 = vpop.eup %3239 }
 0x421   : >> { %v5791_v27 = vpop.eup %3241  ;;  %3247 = vpow2.f32 %v2368_v16 }
 0x422   : >> { %v2418_v61 = vsel %vm6132_vm6, %v5791_v27, 0.0  ;;  %3249 = vpow2.f32 %v2366_v51  ;;  %v5806_v15 = vpop.eup %3243 }
 0x423   : >> { %v2419_v57 = vadd.f32 %v5789_v60, %v2418_v61  ;;  %3251 = vpow2.f32 %v2364_v33  ;;  %v5808_v8 = vpop.eup %3245  ;;  %v2422_v47 = vsel %vm6133_vm12, %v5806_v15, 0.0  ;;  %v2515_v61 = vpop.permute.xlu0 %2514 }
 0x424   : >> { %3253 = vpow2.f32 %v2362_v34  ;;  %v2423_v63 = vadd.f32 %v5808_v8, %v2422_v47 }
 0x425   : >> { %2420 = vadd.xlane.f32.xlu0 %v2419_v57 }
 0x42b   : >> { %v5812_v5 = vpop.eup %3247 }
 0x42c   : >> { %v5815_v50 = vpop.eup %3249  ;;  %v2430_v36 = vsel %vm6134_vm3, %v5812_v5, 0.0 }
 0x42d   : >> { %v5819_v56 = vpop.eup %3251  ;;  %v2431_v55 = vadd.f32 %v5815_v50, %v2430_v36 }
 0x42e   : >> { %2512 = vrot.lane.b32.xlu1 %v3289_v6, %s3342_s18  ;;  %v5822_v13 = vpop.eup %3253  ;;  %v2426_v25 = vsel %vm6135_vm10, %v5819_v56, 0.0 }
 0x42f   : >> { %v2427_v4 = vadd.f32 %v5822_v13, %v2426_v25 }
 0x43b   : >> { %2516 = vrot.lane.b32.xlu0 %v3290_v17, %s3342_s18 }
 0x452   : >> { %2424 = vadd.xlane.f32.xlu1 %v2423_v63 }
 0x456   : >> { %2432 = vadd.xlane.f32.xlu1 %v2431_v55 }
 0x45a   : >> { %2428 = vadd.xlane.f32.xlu0 %v2427_v4 }
 0x47d   : >> { %v2373_v57 = vpop.xlane.xlu1 %2372 }
 0x47e   : >> { %3255 = vrcp.f32 %v2373_v57 }
 0x480   : >> { %v2377_v6 = vpop.xlane.xlu0 %2376 }
 0x481   : >> { %3257 = vrcp.f32 %v2377_v6 }
 0x483   : >> { %2528 = vxpose.xlu1.c.b16.start [1/8] (narrow) %v5667_v20, 32 }
 0x485   : >> { %v2381_v2 = vpop.xlane.xlu1 %2380 }
 0x486   : >> { %3259 = vrcp.f32 %v2381_v2 }
 0x487   : >> { %2529 = vxpose.xlu1.c.b16.cont [2/8] (narrow) %v5671_v3, 32  ;;  %2544 = vxpose.xlu0.c.b16.start [1/2] (short) (narrow) %v2515_v61, 32 }
 0x488   : >> { %v3256_v39 = vpop.eup %3255 }
 0x489   : >> { %v2385_v0 = vpop.xlane.xlu0 %2384  ;;  %v2451_v17 = vmul.f32 %v3256_v39, %v5689_v32  ;;  %v2450_v31 = vmul.f32 %v3256_v39, %v5687_v59 }
 0x48a   : >> { %3261 = vrcp.f32 %v2385_v0 }
 0x48b   : >> { %2530 = vxpose.xlu1.c.b16.cont [3/8] (narrow) %v5669_v42, 32  ;;  %v3258_v29 = vpop.eup %3257 }
 0x48c   : >> { %v2453_v20 = vmul.f32 %v3258_v29, %v5697_v28  ;;  %v2452_v45 = vmul.f32 %v3258_v29, %v5691_v46 }
 0x48d   : >> { %v2389_v3 = vpop.xlane.xlu1 %2388 }
 0x48e   : >> { %v2483_v1 = vpack.c.bf16 %v2453_v20, %v2451_v17  ;;  %v2482_v42 = vpack.c.bf16 %v2452_v45, %v2450_v31  ;;  %3263 = vrcp.f32 %v2389_v3 }
 0x48f   : >> { %2531 = vxpose.xlu1.c.b16.cont [4/8] (narrow) %v5673_v49, 32 }
 0x490   : >> { %3041 = vmatprep.subr.msk.bf16.mxu1 %vm6136_vm8, %v2483_v1  ;;  %v3260_v49 = vpop.eup %3259  ;;  %v6142_v1 = vmov 0  }
 0x491   : >> { %v2393_v11 = vpop.xlane.xlu0 %2392  ;;  %2591 = vmatpush1.bf16.xpose.msra.mxu1 %v2482_v42  ;;  %v2455_v59 = vmul.f32 %v3260_v49, %v5707_v23  ;;  %v2454_v24 = vmul.f32 %v3260_v49, %v5705_v43 }
 0x492   : >> { %3265 = vrcp.f32 %v2393_v11 }
 0x493   : >> { %2532 = vxpose.xlu1.c.b16.cont [5/8] (narrow) %v5675_v22, 32 }
 0x494   : >> { %v3262_v32 = vpop.eup %3261 }
 0x495   : >> { %v2457_v46 = vmul.f32 %v3262_v32, %v5718_v37  ;;  %v2456_v22 = vmul.f32 %v3262_v32, %v5714_v40 }
 0x497   : >> { %2533 = vxpose.xlu1.c.b16.cont [6/8] (narrow) %v5677_v10, 32  ;;  %v2397_v28 = vpop.xlane.xlu1 %2396  ;;  %v2485_v44 = vpack.c.bf16 %v2457_v46, %v2455_v59  ;;  %v2484_v16 = vpack.c.bf16 %v2456_v22, %v2454_v24 }
 0x498   : >> { %3267 = vrcp.f32 %v2397_v28  ;;  %v3264_v51 = vpop.eup %3263 }
 0x499   : >> { %3042 = vmatprep.subr.msk.bf16.mxu1 %vm6137_vm5, %v2485_v44  ;;  %v2459_v33 = vmul.f32 %v3264_v51, %v5725_v38  ;;  %v2458_v40 = vmul.f32 %v3264_v51, %v5723_v52 }
 0x49a   : >> { %v2401_v12 = vpop.xlane.xlu0 %2400  ;;  %2593 = vmatpush1.bf16.xpose.msra.mxu1 %v2484_v16 }
 0x49b   : >> { %2534 = vxpose.xlu1.c.b16.cont [7/8] (narrow) %v2511_v30, 32  ;;  %3269 = vrcp.f32 %v2401_v12 }
 0x49c   : >> { %v3266_v10 = vpop.eup %3265 }
 0x49d   : >> { %v2461_v23 = vmul.f32 %v3266_v10, %v5733_v9  ;;  %v2460_v37 = vmul.f32 %v3266_v10, %v5727_v7 }
 0x49f   : >> { %v2487_v34 = vpack.c.bf16 %v2461_v23, %v2459_v33  ;;  %v2486_v63 = vpack.c.bf16 %v2460_v37, %v2458_v40  ;;  %v2647_v33 = vld [vmem:[%s5923_s6 + $0x10] sm:$0xff]  ;;  %v2648_v23 = vld [vmem:[%s5923_s6 + $0x18] sm:$0xff] }
 0x4a1   : >> { %v2405_v43 = vpop.xlane.xlu1 %2404  ;;  %3043 = vmatprep.subr.msk.bf16.mxu1 %vm6138_vm13, %v2487_v34 }
 0x4a2   : >> { %3271 = vrcp.f32 %v2405_v43  ;;  %v3268_v36 = vpop.eup %3267  ;;  %2595 = vmatpush1.bf16.xpose.msra.mxu1 %v2486_v63 }
 0x4a3   : >> { %v2409_v47 = vpop.xlane.xlu0 %2408  ;;  %v2463_v25 = vmul.f32 %v3268_v36, %v5743_v53  ;;  %v2462_v52 = vmul.f32 %v3268_v36, %v5741_v26 }
 0x4a4   : >> { %3273 = vrcp.f32 %v2409_v47 }
 0x4a5   : >> { %v3270_v55 = vpop.eup %3269 }
 0x4a6   : >> { %v2465_v38 = vmul.f32 %v3270_v55, %v5751_v48  ;;  %v2464_v9 = vmul.f32 %v3270_v55, %v5745_v62 }
 0x4a8   : >> { %v2489_v4 = vpack.c.bf16 %v2465_v38, %v2463_v25  ;;  %v2488_v61 = vpack.c.bf16 %v2464_v9, %v2462_v52  ;;  %v3190_v9 = vld [vmem:[%s5922_s5 + $0x8] sm:$0xff]  }
 0x4aa   : >> { %v2413_v7 = vpop.xlane.xlu1 %2412  ;;  %3044 = vmatprep.subr.msk.bf16.mxu1 %vm6139_vm4, %v2489_v4 }
 0x4ab   : >> { %3275 = vrcp.f32 %v2413_v7  ;;  %2597 = vmatpush1.bf16.xpose.msra.mxu1 %v2488_v61 }
 0x4ac   : >> { %v2417_v30 = vpop.xlane.xlu0 %2416  ;;  %v3272_v57 = vpop.eup %3271 }
 0x4ad   : >> { %3277 = vrcp.f32 %v2417_v30  ;;  %v2467_v53 = vmul.f32 %v3272_v57, %v5761_v54  ;;  %v2466_v26 = vmul.f32 %v3272_v57, %v5759_v41 }
 0x4ae   : >> { %v2513_v6 = vpop.permute.xlu1 %2512  ;;  %v3274_v2 = vpop.eup %3273 }
 0x4af   : >> { %2535 = vxpose.xlu1.c.b16.end [8/8] (narrow) %v2513_v6, 32  ;;  %v2469_v48 = vmul.f32 %v3274_v2, %v5769_v58  ;;  %v2468_v62 = vmul.f32 %v3274_v2, %v5763_v35 }
 0x4b1   : >> { %v2491_v0 = vpack.c.bf16 %v2469_v48, %v2467_v53  ;;  %v2490_v17 = vpack.c.bf16 %v2468_v62, %v2466_v26 }
 0x4b2   : >> { %v2421_v39 = vpop.xlane.xlu0 %2420 }
 0x4b3   : >> { %3045 = vmatprep.subr.msk.bf16.mxu1 %vm6140_vm15, %v2491_v0  ;;  %3279 = vrcp.f32 %v2421_v39 }
 0x4b4   : >> { %2599 = vmatpush1.bf16.xpose.msra.mxu1 %v2490_v17 }
 0x4b5   : >> { %v3276_v29 = vpop.eup %3275 }
 0x4b6   : >> { %v2517_v20 = vpop.permute.xlu0 %2516  ;;  %v2471_v45 = vmul.f32 %v3276_v29, %v5777_v21  ;;  %v2470_v35 = vmul.f32 %v3276_v29, %v5775_v18 }
 0x4b7   : >> { %v3278_v31 = vpop.eup %3277  ;;  %2545 = vxpose.xlu0.c.b16.end [2/2] (short) (narrow) %v2517_v20, 32 }
 0x4b8   : >> { %v2473_v54 = vmul.f32 %v3278_v31, %v5783_v19  ;;  %v2472_v58 = vmul.f32 %v3278_v31, %v5779_v14 }
 0x4ba   : >> { %v2493_v3 = vpack.c.bf16 %v2473_v54, %v2471_v45  ;;  %v2492_v41 = vpack.c.bf16 %v2472_v58, %v2470_v35 }
 0x4bc   : >> { %3046 = vmatprep.subr.msk.bf16.mxu1 %vm6141_vm7, %v2493_v3 }
 0x4bd   : >> { %2601 = vmatpush1.bf16.xpose.msra.mxu1 %v2492_v41  ;;  %v3280_v21 = vpop.eup %3279 }
 0x4be   : >> { %v2475_v14 = vmul.f32 %v3280_v21, %v5791_v27  ;;  %v2474_v18 = vmul.f32 %v3280_v21, %v5789_v60 }
 0x4c0   : >> { %3188 = vset.pattern.permute.xlu0 %v6142_v1 }
 0x4df   : >> { %v2425_v42 = vpop.xlane.xlu1 %2424 }
 0x4e0   : >> { %3281 = vrcp.f32 %v2425_v42 }
 0x4e3   : >> { %v2433_v11 = vpop.xlane.xlu1 %2432 }
 0x4e4   : >> { %3283 = vrcp.f32 %v2433_v11 }
 0x4e7   : >> { %v2429_v49 = vpop.xlane.xlu0 %2428 }
 0x4e8   : >> { %3285 = vrcp.f32 %v2429_v49 }
 0x4ea   : >> { %v3282_v19 = vpop.eup %3281 }
 0x4eb   : >> { %v2477_v32 = vmul.f32 %v3282_v19, %v5806_v15  ;;  %v2476_v28 = vmul.f32 %v3282_v19, %v5808_v8 }
 0x4ed   : >> { %v2495_v59 = vpack.c.bf16 %v2477_v32, %v2475_v14  ;;  %v2494_v46 = vpack.c.bf16 %v2476_v28, %v2474_v18 }
 0x4ee   : >> { %v3284_v24 = vpop.eup %3283 }
 0x4ef   : >> { %3047 = vmatprep.subr.msk.bf16.mxu1 %vm6143_vm1, %v2495_v59  ;;  %v2481_v16 = vmul.f32 %v3284_v24, %v5812_v5  ;;  %v2480_v27 = vmul.f32 %v3284_v24, %v5815_v50  ;;  %v3189_v5 = vld [vmem:[%s5922_s5] sm:$0xff]  }
 0x4f0   : >> { %2603 = vmatpush1.bf16.xpose.msra.mxu1 %v2494_v46  ;;  %v2645_v50 = vld [vmem:[%s5923_s6] sm:$0xff] }
 0x4f1   : >> { %2651 = vperm.xlu0 %3188, %v2645_v50  }
 0x4f2   : >> { %v3286_v22 = vpop.eup %3285 }
 0x4f3   : >> { %v2479_v44 = vmul.f32 %v3286_v22, %v5819_v56  ;;  %v2478_v12 = vmul.f32 %v3286_v22, %v5822_v13  ;;  %v2646_v13 = vld [vmem:[%s5923_s6 + $0x8] sm:$0xff] }
 0x4f5   : >> { %v2497_v15 = vpack.c.bf16 %v2481_v16, %v2479_v44  ;;  %v2496_v51 = vpack.c.bf16 %v2480_v27, %v2478_v12  ;;  %2656 = vperm.xlu0 %3188, %v2646_v13  }
 0x4f7   : >> { %3048 = vmatprep.subr.msk.bf16.mxu1 %vm6144_vm9, %v2497_v15 }
 0x4f8   : >> { %2605 = vmatpush1.bf16.xpose.msra.mxu1 %v2496_v51 }
 0x4f9   : >> { %v2536_v60 = vpop.trf.xlu1  ;;  %2661 = vperm.xlu0 %3188, %v2647_v33  }
 0x4fd   : >> { %v2537_v56 = vpop.trf.xlu1  ;;  %2666 = vperm.xlu0 %3188, %v2648_v23  }
 0x519   : >> { %v2552_v8 = vpop.trf.xlu0 }
 0x51a   : >> { %3049 = vmatprep.mubr.msk.bf16.mxu1 %vm6128_vm0, %v2552_v8 }
 0x51b   : >> { %2623 = vmatmul.mubr.bf16.vlgmr.msra.gmra.mrb[0].mxu1 %v2536_v60 }
 0x51d   : >> { %v2553_v10 = vpop.trf.xlu0 }
 0x51e   : >> { %3050 = vmatprep.mubr.msk.bf16.mxu1 %vm6145_vm11, %v2553_v10 }
 0x523   : >> { %2631 = vmatmul.mubr.bf16.gmra.mrb[4].mxu1 %v2537_v56 }
 0x524   : >> { %3122 = vmatprep.mubr.msk.bf16.mxu1 %vm6146_vm14, %v3189_v5 }
 0x570   : >> { %v2652_v7 = vpop.permute.xlu0 %2651 }
 0x574   : >> { %v2657_v4 = vpop.permute.xlu0 %2656 }
 0x578   : >> { %v2662_v52 = vpop.permute.xlu0 %2661 }
 0x57c   : >> { %v2667_v6 = vpop.permute.xlu0 %2666 }
 0x5ee   : >> { %v2624_v37 = vpop.f32.mrb[0].mxu1 }
 0x5ef   : >> { %v2626_v43 = vpop.f32.mrb[1].mxu1 }
 0x5f0   : >> { %v2627_v34 = vpop.f32.mrb[2].mxu1 }
 0x5f1   : >> { %v2643_v40 = vpack.c.bf16 %v2627_v34, %v2624_v37  ;;  %v2629_v47 = vpop.f32.mrb[3].mxu1 }
 0x5f3   : >> { %3118 = vmatprep.subr.bf16.mxu1 %v2643_v40 }
 0x5f4   : >> { %3119 = vmatpush3.bf16.msra.mxu1 %v2643_v40 }
 0x5f6   : >> { %v2632_v63 = vpop.f32.mrb[4].mxu1 }
 0x5f7   : >> { %v2634_v36 = vpop.f32.mrb[5].mxu1 }
 0x5f8   : >> { %v2635_v55 = vpop.f32.mrb[6].mxu1 }
 0x5f9   : >> { %v2644_v25 = vpack.c.bf16 %v2635_v55, %v2632_v63  ;;  %v2637_v38 = vpop.f32.mrb[7].mxu1 }
 0x5fb   : >> { %3120 = vmatprep.subr.bf16.mxu1 %v2644_v25 }
 0x5fc   : >> { %3121 = vmatpush3.bf16.msra.mxu1 %v2644_v25 }
 0x5ff   : >> { %3123 = vmatmul.mubr.msk.bf16.vlgmr.msra.gmra.mrb[8].mxu1 %vm6147_vm2, %v3190_v9 }
 0x6d2   : >> { %v3124_v30 = vpop.f32.mrb[8].mxu1  ;;  %987 = sbr.rel (!%p985_p9) target bundleno = 423 (0x1a7), region = 92 }
 0x6d3   : >> { %v2728_v61 = vadd.f32 %v3124_v30, %v2662_v52  ;;  %v2719_v57 = vpop.f32.mrb[9].mxu1 }
 0x6d4   : >> { %v2720_v2 = vadd.f32 %v2719_v57, %v2652_v7  ;;  %v3125_v53 = vpop.f32.mrb[10].mxu1 }
 0x6d5   : >> { %2740 = vst [vmem:[%s2737_s14 + $0x20] sm:$0xff] %v2728_v61  ;;  %v2731_v48 = vadd.f32 %v3125_v53, %v2667_v6  ;;  %v2722_v62 = vpop.f32.mrb[11].mxu1 }
 0x6d6   : >> { %2738 = vst [vmem:[%s2737_s14] sm:$0xff] %v2720_v2  ;;  %v2723_v39 = vadd.f32 %v2722_v62, %v2657_v4 }
 0x6d7   : >> { %2741 = vst [vmem:[%s2737_s14 + $0x30] sm:$0xff] %v2731_v48 }
 0x6d8   : >> { %2739 = vst [vmem:[%s2737_s14 + $0x10] sm:$0xff] %v2723_v39 }
 0x6d9 PF: > { %s17_s28 = sadd.s32 1, %s3333_s28   ;;  %s6148_s24 = smov %s3325_s26 }
 0x6da   : > { %p14_p10 = scmp.ge.s32.totalorder %s17_s28, 6   ;;  %s6149_s25 = smov %s3329_s27 }
 0x6db   : > { %s6150_s26 = smov %s6153_s29  ;;  %s6151_s27 = smov %s6157_s30 }
 0x6dc   :  { %16 = sbr.rel (!%p14_p10) target bundleno = 3 (0x3), region = 103 }

</bundles_post_ra>
